<compile_context>
chip_gen: v6e
topology: v6e:2x2x1
jax: 0.10.0
libtpu: 0.0.40
codegen_flags: <defaults>
</compile_context>

<pallas_src>
import jax
import jax.numpy as jnp
from jax.experimental import pallas as pl
from jax.experimental.pallas import tpu as pltpu

ITERS = 3
ATTN_EPS = 1e-8   # SlotAttention eps
LN_EPS = 1e-5     # torch.nn.LayerNorm default eps


def _layernorm(x, g, b):
    mean = jnp.mean(x, axis=-1, keepdims=True)
    var = jnp.mean(jnp.square(x - mean), axis=-1, keepdims=True)
    return (x - mean) * jax.lax.rsqrt(var + LN_EPS) * g + b


def _flatten_batch(ref, bblk):
    """(bblk, M, d) ref -> (bblk*M, d) value, via sublane concat (no reshape)."""
    if bblk == 1:
        return ref[0]
    return jnp.concatenate([ref[i] for i in range(bblk)], axis=0)


def slot_attention_kernel(
    inputs_ref,    # (bblk, n, d)
    noise_ref,     # (bblk, S, d)
    stats_ref,     # (2S, d)  = [slots_mu ; slots_sigma]
    vec_ref,       # (8, d)   = [ln_in_g, ln_in_b, ln_s_g, ln_s_b, ln_m_g, ln_m_b, b1, b2]
    gru_b_ref,     # (2, 3d)  = [b_ih ; b_hh]
    w_proj_ref,    # (d, 5d)  = [Wk^T | Wv^T | Wq^T | W1^T | W2^T]
    w_gru_ref,     # (d, 6d)  = [W_ih^T | W_hh^T]
    slots_out_ref,  # (bblk, S, d)
    attn_out_ref,   # (bblk, S, n)
):
    bblk, n, d = inputs_ref.shape
    S = noise_ref.shape[1]

    # ---- unpack consolidated parameter slabs (each read once, reused) ----
    vec = vec_ref[...]
    ln_in_g, ln_in_b = vec[0:1], vec[1:2]
    ln_s_g, ln_s_b = vec[2:3], vec[3:4]
    ln_m_g, ln_m_b = vec[4:5], vec[5:6]
    b1, b2 = vec[6:7], vec[7:8]

    gb = gru_b_ref[...]
    b_ih, b_hh = gb[0:1], gb[1:2]

    wp = w_proj_ref[...]
    wkv = wp[:, 0:2 * d]            # fused K/V projection weight (d, 2d)
    wq = wp[:, 2 * d:3 * d]
    w1 = wp[:, 3 * d:4 * d]
    w2 = wp[:, 4 * d:5 * d]

    wg = w_gru_ref[...]
    w_ih = wg[:, 0:3 * d]
    w_hh = wg[:, 3 * d:6 * d]

    st = stats_ref[...]
    mu, sigma = st[0:S], st[S:2 * S]
    if bblk > 1:
        mu = jnp.concatenate([mu] * bblk, axis=0)
        sigma = jnp.concatenate([sigma] * bblk, axis=0)

    # ---- slot init (noise supplied explicitly => deterministic) ----
    noise = _flatten_batch(noise_ref, bblk)               # (bblk*S, d)
    slots = mu + sigma * noise                            # (bblk*S, d)

    # ---- input LayerNorm + fused K/V projection (constant across iters) ----
    x = _flatten_batch(inputs_ref, bblk)                  # (bblk*n, d)
    x_n = _layernorm(x, ln_in_g, ln_in_b)
    kv = jnp.dot(x_n, wkv, preferred_element_type=jnp.float32)   # (bblk*n, 2d)
    k_all = kv[:, 0:d]
    v_all = kv[:, d:2 * d]

    for it in range(ITERS):
        slots_prev = slots

        slots_norm = _layernorm(slots, ln_s_g, ln_s_b)
        q_all = jnp.dot(slots_norm, wq, preferred_element_type=jnp.float32)  # (bblk*S, d)

        upd_blocks = []
        for bb in range(bblk):
            q_b = q_all[bb * S:(bb + 1) * S]               # (S, d)
            k_b = k_all[bb * n:(bb + 1) * n]               # (n, d)
            v_b = v_all[bb * n:(bb + 1) * n]               # (n, d)

            # Attention in (S, n) layout directly: q @ k^T on the MXU
            # (contraction on d of both operands), no XLU transposes.
            logits = jax.lax.dot_general(
                q_b, k_b, (((1,), (1,)), ((), ())),
                preferred_element_type=jnp.float32)        # (S, n)

            # softmax over slots == reduction over axis 0 in this layout.
            m = jnp.max(logits, axis=0, keepdims=True)     # (1, n)
            e = jnp.exp(logits - m)
            p = e * pl.reciprocal(jnp.sum(e, axis=0, keepdims=True), approx=True)
            # + eps then renormalize over slots (matches the given module).
            p = p + ATTN_EPS
            p = p * pl.reciprocal(jnp.sum(p, axis=0, keepdims=True), approx=True)

            if it == ITERS - 1:
                attn_out_ref[bb] = p                       # self.attn (S, n)

            upd_blocks.append(
                jnp.dot(p, v_b, preferred_element_type=jnp.float32))  # (S, d)

        updates = upd_blocks[0] if bblk == 1 else jnp.concatenate(upd_blocks, axis=0)

        # GRUCell(input=updates, hidden=slots_prev), gates in torch order r,z,n
        gx = jnp.dot(updates, w_ih, preferred_element_type=jnp.float32) + b_ih
        gh = jnp.dot(slots_prev, w_hh, preferred_element_type=jnp.float32) + b_hh
        r = jax.nn.sigmoid(gx[:, 0:d] + gh[:, 0:d])
        z = jax.nn.sigmoid(gx[:, d:2 * d] + gh[:, d:2 * d])
        n_gate = jnp.tanh(gx[:, 2 * d:3 * d] + r * gh[:, 2 * d:3 * d])
        slots = (1.0 - z) * n_gate + z * slots_prev

        # slots = slots + mlp(LayerNorm(slots))
        sm = _layernorm(slots, ln_m_g, ln_m_b)
        h = jnp.maximum(
            jnp.dot(sm, w1, preferred_element_type=jnp.float32) + b1, 0.0)
        slots = slots + jnp.dot(h, w2, preferred_element_type=jnp.float32) + b2

    for bb in range(bblk):
        slots_out_ref[bb] = slots[bb * S:(bb + 1) * S]


def pack_slot_attention_params(params):
    """Consolidate the 19 per-parameter tensors into 5 DMA-friendly slabs."""
    (mu, sigma, ln_in_g, ln_in_b, ln_s_g, ln_s_b,
     wq_t, wk_t, wv_t, w_ih_t, w_hh_t, b_ih, b_hh,
     ln_m_g, ln_m_b, w1_t, b1, w2_t, b2) = params
    stats = jnp.concatenate([mu, sigma], axis=0)                        # (2S, d)
    vec = jnp.concatenate([ln_in_g, ln_in_b, ln_s_g, ln_s_b,
                           ln_m_g, ln_m_b, b1, b2], axis=0)             # (8, d)
    gru_b = jnp.concatenate([b_ih, b_hh], axis=0)                       # (2, 3d)
    w_proj = jnp.concatenate([wk_t, wv_t, wq_t, w1_t, w2_t], axis=1)    # (d, 5d)
    w_gru = jnp.concatenate([w_ih_t, w_hh_t], axis=1)                   # (d, 6d)
    return stats, vec, gru_b, w_proj, w_gru


def slot_attention(inputs, noise, packed_params, *, num_blocks=None):
    b, n, d = inputs.shape
    S = noise.shape[1]
    stats, vec, gru_b, w_proj, w_gru = packed_params

    # Keep >= 2 parallel grid steps when b >= 2 so both v7x TensorCores get
    # work; fold the remaining batch into the sublane axis within each step
    # (helps MXU occupancy / per-step overhead on single-TC v5e/v6e too).
    if num_blocks is None:
        num_blocks = min(b, 2)
    assert b % num_blocks == 0, "batch must be divisible by num_blocks"
    bblk = b // num_blocks

    def fixed(shape):
        return pl.BlockSpec(shape, lambda i: (0, 0))

    def batched(shape):
        return pl.BlockSpec(shape, lambda i: (i, 0, 0))

    in_specs = [
        batched((bblk, n, d)),        # inputs
        batched((bblk, S, d)),        # slot-init noise
        fixed((2 * S, d)),            # [mu ; sigma]
        fixed((8, d)),                # LN gammas/betas + MLP biases
        fixed((2, 3 * d)),            # GRU biases
        fixed((d, 5 * d)),            # [Wk|Wv|Wq|W1|W2]^T
        fixed((d, 6 * d)),            # [W_ih|W_hh]^T
    ]
    out_specs = (
        batched((bblk, S, d)),
        batched((bblk, S, n)),
    )
    out_shape = (
        jax.ShapeDtypeStruct((b, S, d), jnp.float32),
        jax.ShapeDtypeStruct((b, S, n), jnp.float32),
    )
    return pl.pallas_call(
        slot_attention_kernel,
        grid=(num_blocks,),
        in_specs=in_specs,
        out_specs=out_specs,
        out_shape=out_shape,
        compiler_params=pltpu.CompilerParams(dimension_semantics=("parallel",)),
    )(inputs, noise, stats, vec, gru_b, w_proj, w_gru)


def slot_attention_ref(inputs, noise, params):
    """Pure-JAX reference (matches the given PyTorch module) for checking."""
    (mu, sigma, ln_in_g, ln_in_b, ln_s_g, ln_s_b,
     wq_t, wk_t, wv_t, w_ih_t, w_hh_t, b_ih, b_hh,
     ln_m_g, ln_m_b, w1_t, b1, w2_t, b2) = params
    d = inputs.shape[-1]

    def ln(x, g, b):
        m = jnp.mean(x, axis=-1, keepdims=True)
        v = jnp.mean(jnp.square(x - m), axis=-1, keepdims=True)
        return (x - m) / jnp.sqrt(v + LN_EPS) * g + b

    slots = mu[None] + sigma[None] * noise
    x = ln(inputs, ln_in_g, ln_in_b)
    k = x @ wk_t
    v = x @ wv_t
    attn_t = None
    for _ in range(ITERS):
        slots_prev = slots
        q = ln(slots, ln_s_g, ln_s_b) @ wq_t
        logits = jnp.einsum('bnd,bsd->bns', k, q)
        attn = jax.nn.softmax(logits, axis=-1) + ATTN_EPS
        attn = attn / attn.sum(-1, keepdims=True)
        attn_t = jnp.swapaxes(attn, -1, -2)
        updates = attn_t @ v
        gx = updates @ w_ih_t + b_ih
        gh = slots_prev @ w_hh_t + b_hh
        r = jax.nn.sigmoid(gx[..., :d] + gh[..., :d])
        z = jax.nn.sigmoid(gx[..., d:2 * d] + gh[..., d:2 * d])
        ng = jnp.tanh(gx[..., 2 * d:] + r * gh[..., 2 * d:])
        slots = (1.0 - z) * ng + z * slots_prev
        sm = ln(slots, ln_m_g, ln_m_b)
        slots = slots + jnp.maximum(sm @ w1_t + b1, 0.0) @ w2_t + b2
    return slots, attn_t


if __name__ == "__main__":
    # inputs: (batch, num_patches, dim) with num_patches = 8x8 patch grid.
    # batch=4 so each of the 2 parallel grid steps folds 2 batch elements.
    b, n, d, S = 4, 64, 32, 8

    key = jax.random.PRNGKey(0)
    keys = jax.random.split(key, 12)
    inputs = jax.random.normal(keys[0], (b, n, d), jnp.float32)
    noise = jax.random.normal(keys[1], (b, S, d), jnp.float32)

    scale = 1.0 / jnp.sqrt(jnp.float32(d))
    params = (
        jax.random.normal(keys[2], (S, d)),                 # slots_mu (1,S,d) squeezed
        jnp.ones((S, d), jnp.float32),                      # slots_sigma
        jnp.ones((1, d)), jnp.zeros((1, d)),                # norm_inputs gamma/beta
        jnp.ones((1, d)), jnp.zeros((1, d)),                # norm_slots gamma/beta
        jax.random.normal(keys[3], (d, d)) * scale,         # project_q (W^T)
        jax.random.normal(keys[4], (d, d)) * scale,         # project_k (W^T)
        jax.random.normal(keys[5], (d, d)) * scale,         # project_v (W^T)
        jax.random.normal(keys[6], (d, 3 * d)) * scale,     # GRU weight_ih^T
        jax.random.normal(keys[7], (d, 3 * d)) * scale,     # GRU weight_hh^T
        jax.random.normal(keys[8], (1, 3 * d)) * scale,     # GRU bias_ih
        jax.random.normal(keys[9], (1, 3 * d)) * scale,     # GRU bias_hh
        jnp.ones((1, d)), jnp.zeros((1, d)),                # norm_mlp gamma/beta
        jax.random.normal(keys[10], (d, d)) * scale,        # mlp[0] W^T
        jnp.zeros((1, d)),                                  # mlp[0] bias
        jax.random.normal(keys[11], (d, d)) * scale,        # mlp[2] W^T
        jnp.zeros((1, d)),                                  # mlp[2] bias
    )
    params = tuple(p.astype(jnp.float32) for p in params)
    packed = pack_slot_attention_params(params)

    slots, attn = slot_attention(inputs, noise, packed)
    jax.block_until_ready((slots, attn))

    slots_ref, attn_ref = slot_attention_ref(inputs, noise, params)
    assert jnp.allclose(slots, slots_ref, atol=5e-2, rtol=5e-2), "slots mismatch"
    assert jnp.allclose(attn, attn_ref, atol=5e-2, rtol=5e-2), "attn mismatch"

    print("KERNEL_OK")
</pallas_src>

<mosaic_0001>
module attributes {stable_mosaic.version = 11 : i64} {
  func.func @slot_attention_kernel(%arg0: i32, %arg1: memref<2x64x32xf32, #tpu.memory_space<vmem>>, %arg2: memref<2x8x32xf32, #tpu.memory_space<vmem>>, %arg3: memref<16x32xf32, #tpu.memory_space<vmem>>, %arg4: memref<8x32xf32, #tpu.memory_space<vmem>>, %arg5: memref<2x96xf32, #tpu.memory_space<vmem>>, %arg6: memref<32x160xf32, #tpu.memory_space<vmem>>, %arg7: memref<32x192xf32, #tpu.memory_space<vmem>>, %arg8: memref<2x8x32xf32, #tpu.memory_space<vmem>>, %arg9: memref<2x8x64xf32, #tpu.memory_space<vmem>>) attributes {dimension_semantics = [#tpu.dimension_semantics<parallel>], iteration_bounds = array<i64: 2>, scalar_prefetch = 0 : i64, scratch_operands = 0 : i64, tpu.core_type = #tpu.core_type<tc>, window_params = [{transform_indices = @transform_0, window_bounds = array<i64: 2, 64, 32>}, {transform_indices = @transform_1, window_bounds = array<i64: 2, 8, 32>}, {pipeline_mode = #tpu.pipeline_mode<synchronous>, transform_indices = @transform_2, window_bounds = array<i64: 16, 32>}, {pipeline_mode = #tpu.pipeline_mode<synchronous>, transform_indices = @transform_3, window_bounds = array<i64: 8, 32>}, {pipeline_mode = #tpu.pipeline_mode<synchronous>, transform_indices = @transform_4, window_bounds = array<i64: 2, 96>}, {pipeline_mode = #tpu.pipeline_mode<synchronous>, transform_indices = @transform_5, window_bounds = array<i64: 32, 160>}, {pipeline_mode = #tpu.pipeline_mode<synchronous>, transform_indices = @transform_6, window_bounds = array<i64: 32, 192>}, {transform_indices = @transform_7, window_bounds = array<i64: 2, 8, 32>}, {transform_indices = @transform_8, window_bounds = array<i64: 2, 8, 64>}]} {
    %c0 = arith.constant 0 : index
    %c0_0 = arith.constant 0 : index
    %0 = vector.load %arg4[%c0, %c0_0] : memref<8x32xf32, #tpu.memory_space<vmem>>, vector<8x32xf32>
    %1 = vector.extract_strided_slice %0 {offsets = [0, 0], sizes = [1, 32], strides = [1, 1]} : vector<8x32xf32> to vector<1x32xf32>
    %2 = vector.extract_strided_slice %0 {offsets = [1, 0], sizes = [1, 32], strides = [1, 1]} : vector<8x32xf32> to vector<1x32xf32>
    %3 = vector.extract_strided_slice %0 {offsets = [2, 0], sizes = [1, 32], strides = [1, 1]} : vector<8x32xf32> to vector<1x32xf32>
    %4 = vector.extract_strided_slice %0 {offsets = [3, 0], sizes = [1, 32], strides = [1, 1]} : vector<8x32xf32> to vector<1x32xf32>
    %5 = vector.extract_strided_slice %0 {offsets = [4, 0], sizes = [1, 32], strides = [1, 1]} : vector<8x32xf32> to vector<1x32xf32>
    %6 = vector.extract_strided_slice %0 {offsets = [5, 0], sizes = [1, 32], strides = [1, 1]} : vector<8x32xf32> to vector<1x32xf32>
    %7 = vector.extract_strided_slice %0 {offsets = [6, 0], sizes = [1, 32], strides = [1, 1]} : vector<8x32xf32> to vector<1x32xf32>
    %8 = vector.extract_strided_slice %0 {offsets = [7, 0], sizes = [1, 32], strides = [1, 1]} : vector<8x32xf32> to vector<1x32xf32>
    %c0_1 = arith.constant 0 : index
    %c0_2 = arith.constant 0 : index
    %9 = vector.load %arg5[%c0_1, %c0_2] : memref<2x96xf32, #tpu.memory_space<vmem>>, vector<2x96xf32>
    %10 = vector.extract_strided_slice %9 {offsets = [0, 0], sizes = [1, 96], strides = [1, 1]} : vector<2x96xf32> to vector<1x96xf32>
    %11 = vector.extract_strided_slice %9 {offsets = [1, 0], sizes = [1, 96], strides = [1, 1]} : vector<2x96xf32> to vector<1x96xf32>
    %c0_3 = arith.constant 0 : index
    %c0_4 = arith.constant 0 : index
    %12 = vector.load %arg6[%c0_3, %c0_4] : memref<32x160xf32, #tpu.memory_space<vmem>>, vector<32x160xf32>
    %13 = vector.extract_strided_slice %12 {offsets = [0, 0], sizes = [32, 64], strides = [1, 1]} : vector<32x160xf32> to vector<32x64xf32>
    %14 = vector.extract_strided_slice %12 {offsets = [0, 64], sizes = [32, 32], strides = [1, 1]} : vector<32x160xf32> to vector<32x32xf32>
    %15 = vector.extract_strided_slice %12 {offsets = [0, 96], sizes = [32, 32], strides = [1, 1]} : vector<32x160xf32> to vector<32x32xf32>
    %16 = vector.extract_strided_slice %12 {offsets = [0, 128], sizes = [32, 32], strides = [1, 1]} : vector<32x160xf32> to vector<32x32xf32>
    %c0_5 = arith.constant 0 : index
    %c0_6 = arith.constant 0 : index
    %17 = vector.load %arg7[%c0_5, %c0_6] : memref<32x192xf32, #tpu.memory_space<vmem>>, vector<32x192xf32>
    %18 = vector.extract_strided_slice %17 {offsets = [0, 0], sizes = [32, 96], strides = [1, 1]} : vector<32x192xf32> to vector<32x96xf32>
    %19 = vector.extract_strided_slice %17 {offsets = [0, 96], sizes = [32, 96], strides = [1, 1]} : vector<32x192xf32> to vector<32x96xf32>
    %c0_7 = arith.constant 0 : index
    %c0_8 = arith.constant 0 : index
    %20 = vector.load %arg3[%c0_7, %c0_8] : memref<16x32xf32, #tpu.memory_space<vmem>>, vector<16x32xf32>
    %21 = vector.extract_strided_slice %20 {offsets = [0, 0], sizes = [8, 32], strides = [1, 1]} : vector<16x32xf32> to vector<8x32xf32>
    %22 = vector.extract_strided_slice %20 {offsets = [8, 0], sizes = [8, 32], strides = [1, 1]} : vector<16x32xf32> to vector<8x32xf32>
    %23 = tpu.concatenate %21, %21 in 0 : vector<8x32xf32>, vector<8x32xf32> -> vector<16x32xf32>
    %24 = tpu.concatenate %22, %22 in 0 : vector<8x32xf32>, vector<8x32xf32> -> vector<16x32xf32>
    %c0_9 = arith.constant 0 : index
    %c0_10 = arith.constant 0 : index
    %c0_11 = arith.constant 0 : index
    %25 = vector.load %arg2[%c0_9, %c0_10, %c0_11] : memref<2x8x32xf32, #tpu.memory_space<vmem>>, vector<1x8x32xf32>
    %26 = vector.shape_cast %25 : vector<1x8x32xf32> to vector<8x32xf32>
    %c1 = arith.constant 1 : index
    %c0_12 = arith.constant 0 : index
    %c0_13 = arith.constant 0 : index
    %27 = vector.load %arg2[%c1, %c0_12, %c0_13] : memref<2x8x32xf32, #tpu.memory_space<vmem>>, vector<1x8x32xf32>
    %28 = vector.shape_cast %27 : vector<1x8x32xf32> to vector<8x32xf32>
    %29 = tpu.concatenate %26, %28 in 0 : vector<8x32xf32>, vector<8x32xf32> -> vector<16x32xf32>
    %30 = arith.mulf %24, %29 : vector<16x32xf32>
    %31 = arith.addf %23, %30 : vector<16x32xf32>
    %c0_14 = arith.constant 0 : index
    %c0_15 = arith.constant 0 : index
    %c0_16 = arith.constant 0 : index
    %32 = vector.load %arg1[%c0_14, %c0_15, %c0_16] : memref<2x64x32xf32, #tpu.memory_space<vmem>>, vector<1x64x32xf32>
    %33 = vector.shape_cast %32 : vector<1x64x32xf32> to vector<64x32xf32>
    %c1_17 = arith.constant 1 : index
    %c0_18 = arith.constant 0 : index
    %c0_19 = arith.constant 0 : index
    %34 = vector.load %arg1[%c1_17, %c0_18, %c0_19] : memref<2x64x32xf32, #tpu.memory_space<vmem>>, vector<1x64x32xf32>
    %35 = vector.shape_cast %34 : vector<1x64x32xf32> to vector<64x32xf32>
    %36 = tpu.concatenate %33, %35 in 0 : vector<64x32xf32>, vector<64x32xf32> -> vector<128x32xf32>
    %cst = arith.constant dense<0.000000e+00> : vector<128xf32>
    %37 = vector.multi_reduction <add>, %36, %cst [1] : vector<128x32xf32> to vector<128xf32>
    %38 = vector.shape_cast %37 : vector<128xf32> to vector<128x1xf32>
    %cst_20 = arith.constant 3.200000e+01 : f32
    %39 = vector.broadcast %cst_20 : f32 to vector<128x1xf32>
    %40 = arith.divf %38, %39 : vector<128x1xf32>
    %41 = vector.broadcast %40 : vector<128x1xf32> to vector<128x32xf32>
    %42 = arith.subf %36, %41 : vector<128x32xf32>
    %43 = arith.mulf %42, %42 : vector<128x32xf32>
    %cst_21 = arith.constant dense<0.000000e+00> : vector<128xf32>
    %44 = vector.multi_reduction <add>, %43, %cst_21 [1] : vector<128x32xf32> to vector<128xf32>
    %45 = vector.shape_cast %44 : vector<128xf32> to vector<128x1xf32>
    %cst_22 = arith.constant 3.200000e+01 : f32
    %46 = vector.broadcast %cst_22 : f32 to vector<128x1xf32>
    %47 = arith.divf %45, %46 : vector<128x1xf32>
    %48 = vector.broadcast %40 : vector<128x1xf32> to vector<128x32xf32>
    %49 = arith.subf %36, %48 : vector<128x32xf32>
    %cst_23 = arith.constant 9.99999974E-6 : f32
    %50 = vector.broadcast %cst_23 : f32 to vector<128x1xf32>
    %51 = arith.addf %47, %50 : vector<128x1xf32>
    %52 = math.rsqrt %51 : vector<128x1xf32>
    %53 = vector.broadcast %52 : vector<128x1xf32> to vector<128x32xf32>
    %54 = arith.mulf %49, %53 : vector<128x32xf32>
    %55 = vector.broadcast %1 : vector<1x32xf32> to vector<128x32xf32>
    %56 = arith.mulf %54, %55 : vector<128x32xf32>
    %57 = vector.broadcast %2 : vector<1x32xf32> to vector<128x32xf32>
    %58 = arith.addf %56, %57 : vector<128x32xf32>
    %cst_24 = arith.constant dense<0.000000e+00> : vector<128x64xf32>
    %59 = tpu.matmul %58, %13, %cst_24 {dimension_numbers = #tpu.dot_dimension_numbers<[1], [0], [0], [1], [0, 0, 1, 1], [], []>} : vector<128x32xf32>, vector<32x64xf32>, vector<128x64xf32> -> vector<128x64xf32>
    %60 = vector.extract_strided_slice %59 {offsets = [0, 0], sizes = [128, 32], strides = [1, 1]} : vector<128x64xf32> to vector<128x32xf32>
    %61 = vector.extract_strided_slice %59 {offsets = [0, 32], sizes = [128, 32], strides = [1, 1]} : vector<128x64xf32> to vector<128x32xf32>
    %cst_25 = arith.constant dense<0.000000e+00> : vector<16xf32>
    %62 = vector.multi_reduction <add>, %31, %cst_25 [1] : vector<16x32xf32> to vector<16xf32>
    %63 = vector.shape_cast %62 : vector<16xf32> to vector<16x1xf32>
    %cst_26 = arith.constant 3.200000e+01 : f32
    %64 = vector.broadcast %cst_26 : f32 to vector<16x1xf32>
    %65 = arith.divf %63, %64 : vector<16x1xf32>
    %66 = vector.broadcast %65 : vector<16x1xf32> to vector<16x32xf32>
    %67 = arith.subf %31, %66 : vector<16x32xf32>
    %68 = arith.mulf %67, %67 : vector<16x32xf32>
    %cst_27 = arith.constant dense<0.000000e+00> : vector<16xf32>
    %69 = vector.multi_reduction <add>, %68, %cst_27 [1] : vector<16x32xf32> to vector<16xf32>
    %70 = vector.shape_cast %69 : vector<16xf32> to vector<16x1xf32>
    %cst_28 = arith.constant 3.200000e+01 : f32
    %71 = vector.broadcast %cst_28 : f32 to vector<16x1xf32>
    %72 = arith.divf %70, %71 : vector<16x1xf32>
    %73 = vector.broadcast %65 : vector<16x1xf32> to vector<16x32xf32>
    %74 = arith.subf %31, %73 : vector<16x32xf32>
    %cst_29 = arith.constant 9.99999974E-6 : f32
    %75 = vector.broadcast %cst_29 : f32 to vector<16x1xf32>
    %76 = arith.addf %72, %75 : vector<16x1xf32>
    %77 = math.rsqrt %76 : vector<16x1xf32>
    %78 = vector.broadcast %77 : vector<16x1xf32> to vector<16x32xf32>
    %79 = arith.mulf %74, %78 : vector<16x32xf32>
    %80 = vector.broadcast %3 : vector<1x32xf32> to vector<16x32xf32>
    %81 = arith.mulf %79, %80 : vector<16x32xf32>
    %82 = vector.broadcast %4 : vector<1x32xf32> to vector<16x32xf32>
    %83 = arith.addf %81, %82 : vector<16x32xf32>
    %cst_30 = arith.constant dense<0.000000e+00> : vector<16x32xf32>
    %84 = tpu.matmul %83, %14, %cst_30 {dimension_numbers = #tpu.dot_dimension_numbers<[1], [0], [0], [1], [0, 0, 1, 1], [], []>} : vector<16x32xf32>, vector<32x32xf32>, vector<16x32xf32> -> vector<16x32xf32>
    %85 = vector.extract_strided_slice %84 {offsets = [0, 0], sizes = [8, 32], strides = [1, 1]} : vector<16x32xf32> to vector<8x32xf32>
    %86 = vector.extract_strided_slice %60 {offsets = [0, 0], sizes = [64, 32], strides = [1, 1]} : vector<128x32xf32> to vector<64x32xf32>
    %87 = vector.extract_strided_slice %61 {offsets = [0, 0], sizes = [64, 32], strides = [1, 1]} : vector<128x32xf32> to vector<64x32xf32>
    %cst_31 = arith.constant dense<0.000000e+00> : vector<8x64xf32>
    %88 = tpu.matmul %85, %86, %cst_31 {dimension_numbers = #tpu.dot_dimension_numbers<[1], [1], [0], [0], [0, 0, 1, 0], [], []>} : vector<8x32xf32>, vector<64x32xf32>, vector<8x64xf32> -> vector<8x64xf32>
    %cst_32 = arith.constant dense<0xFF800000> : vector<64xf32>
    %89 = vector.multi_reduction <maximumf>, %88, %cst_32 [0] : vector<8x64xf32> to vector<64xf32>
    %90 = vector.shape_cast %89 : vector<64xf32> to vector<1x64xf32>
    %91 = vector.broadcast %90 : vector<1x64xf32> to vector<8x64xf32>
    %92 = arith.subf %88, %91 : vector<8x64xf32>
    %93 = math.exp %92 : vector<8x64xf32>
    %cst_33 = arith.constant dense<0.000000e+00> : vector<64xf32>
    %94 = vector.multi_reduction <add>, %93, %cst_33 [0] : vector<8x64xf32> to vector<64xf32>
    %95 = vector.shape_cast %94 : vector<64xf32> to vector<1x64xf32>
    %96 = tpu.reciprocal %95 {approx = true} : vector<1x64xf32> -> vector<1x64xf32>
    %97 = vector.broadcast %96 : vector<1x64xf32> to vector<8x64xf32>
    %98 = arith.mulf %93, %97 : vector<8x64xf32>
    %cst_34 = arith.constant 9.99999993E-9 : f32
    %99 = vector.broadcast %cst_34 : f32 to vector<8x64xf32>
    %100 = arith.addf %98, %99 : vector<8x64xf32>
    %cst_35 = arith.constant dense<0.000000e+00> : vector<64xf32>
    %101 = vector.multi_reduction <add>, %100, %cst_35 [0] : vector<8x64xf32> to vector<64xf32>
    %102 = vector.shape_cast %101 : vector<64xf32> to vector<1x64xf32>
    %103 = tpu.reciprocal %102 {approx = true} : vector<1x64xf32> -> vector<1x64xf32>
    %104 = vector.broadcast %103 : vector<1x64xf32> to vector<8x64xf32>
    %105 = arith.mulf %100, %104 : vector<8x64xf32>
    %cst_36 = arith.constant dense<0.000000e+00> : vector<8x32xf32>
    %106 = tpu.matmul %105, %87, %cst_36 {dimension_numbers = #tpu.dot_dimension_numbers<[1], [0], [0], [1], [0, 0, 1, 1], [], []>} : vector<8x64xf32>, vector<64x32xf32>, vector<8x32xf32> -> vector<8x32xf32>
    %107 = vector.extract_strided_slice %84 {offsets = [8, 0], sizes = [8, 32], strides = [1, 1]} : vector<16x32xf32> to vector<8x32xf32>
    %108 = vector.extract_strided_slice %60 {offsets = [64, 0], sizes = [64, 32], strides = [1, 1]} : vector<128x32xf32> to vector<64x32xf32>
    %109 = vector.extract_strided_slice %61 {offsets = [64, 0], sizes = [64, 32], strides = [1, 1]} : vector<128x32xf32> to vector<64x32xf32>
    %cst_37 = arith.constant dense<0.000000e+00> : vector<8x64xf32>
    %110 = tpu.matmul %107, %108, %cst_37 {dimension_numbers = #tpu.dot_dimension_numbers<[1], [1], [0], [0], [0, 0, 1, 0], [], []>} : vector<8x32xf32>, vector<64x32xf32>, vector<8x64xf32> -> vector<8x64xf32>
    %cst_38 = arith.constant dense<0xFF800000> : vector<64xf32>
    %111 = vector.multi_reduction <maximumf>, %110, %cst_38 [0] : vector<8x64xf32> to vector<64xf32>
    %112 = vector.shape_cast %111 : vector<64xf32> to vector<1x64xf32>
    %113 = vector.broadcast %112 : vector<1x64xf32> to vector<8x64xf32>
    %114 = arith.subf %110, %113 : vector<8x64xf32>
    %115 = math.exp %114 : vector<8x64xf32>
    %cst_39 = arith.constant dense<0.000000e+00> : vector<64xf32>
    %116 = vector.multi_reduction <add>, %115, %cst_39 [0] : vector<8x64xf32> to vector<64xf32>
    %117 = vector.shape_cast %116 : vector<64xf32> to vector<1x64xf32>
    %118 = tpu.reciprocal %117 {approx = true} : vector<1x64xf32> -> vector<1x64xf32>
    %119 = vector.broadcast %118 : vector<1x64xf32> to vector<8x64xf32>
    %120 = arith.mulf %115, %119 : vector<8x64xf32>
    %cst_40 = arith.constant 9.99999993E-9 : f32
    %121 = vector.broadcast %cst_40 : f32 to vector<8x64xf32>
    %122 = arith.addf %120, %121 : vector<8x64xf32>
    %cst_41 = arith.constant dense<0.000000e+00> : vector<64xf32>
    %123 = vector.multi_reduction <add>, %122, %cst_41 [0] : vector<8x64xf32> to vector<64xf32>
    %124 = vector.shape_cast %123 : vector<64xf32> to vector<1x64xf32>
    %125 = tpu.reciprocal %124 {approx = true} : vector<1x64xf32> -> vector<1x64xf32>
    %126 = vector.broadcast %125 : vector<1x64xf32> to vector<8x64xf32>
    %127 = arith.mulf %122, %126 : vector<8x64xf32>
    %cst_42 = arith.constant dense<0.000000e+00> : vector<8x32xf32>
    %128 = tpu.matmul %127, %109, %cst_42 {dimension_numbers = #tpu.dot_dimension_numbers<[1], [0], [0], [1], [0, 0, 1, 1], [], []>} : vector<8x64xf32>, vector<64x32xf32>, vector<8x32xf32> -> vector<8x32xf32>
    %129 = tpu.concatenate %106, %128 in 0 : vector<8x32xf32>, vector<8x32xf32> -> vector<16x32xf32>
    %cst_43 = arith.constant dense<0.000000e+00> : vector<16x96xf32>
    %130 = tpu.matmul %129, %18, %cst_43 {dimension_numbers = #tpu.dot_dimension_numbers<[1], [0], [0], [1], [0, 0, 1, 1], [], []>} : vector<16x32xf32>, vector<32x96xf32>, vector<16x96xf32> -> vector<16x96xf32>
    %131 = vector.broadcast %10 : vector<1x96xf32> to vector<16x96xf32>
    %132 = arith.addf %130, %131 : vector<16x96xf32>
    %cst_44 = arith.constant dense<0.000000e+00> : vector<16x96xf32>
    %133 = tpu.matmul %31, %19, %cst_44 {dimension_numbers = #tpu.dot_dimension_numbers<[1], [0], [0], [1], [0, 0, 1, 1], [], []>} : vector<16x32xf32>, vector<32x96xf32>, vector<16x96xf32> -> vector<16x96xf32>
    %134 = vector.broadcast %11 : vector<1x96xf32> to vector<16x96xf32>
    %135 = arith.addf %133, %134 : vector<16x96xf32>
    %136 = vector.extract_strided_slice %132 {offsets = [0, 0], sizes = [16, 32], strides = [1, 1]} : vector<16x96xf32> to vector<16x32xf32>
    %137 = vector.extract_strided_slice %135 {offsets = [0, 0], sizes = [16, 32], strides = [1, 1]} : vector<16x96xf32> to vector<16x32xf32>
    %138 = arith.addf %136, %137 : vector<16x32xf32>
    %139 = arith.negf %138 : vector<16x32xf32>
    %140 = math.exp %139 : vector<16x32xf32>
    %cst_45 = arith.constant 1.000000e+00 : f32
    %141 = vector.broadcast %cst_45 : f32 to vector<16x32xf32>
    %142 = arith.addf %141, %140 : vector<16x32xf32>
    %143 = arith.divf %141, %142 : vector<16x32xf32>
    %144 = vector.extract_strided_slice %132 {offsets = [0, 32], sizes = [16, 32], strides = [1, 1]} : vector<16x96xf32> to vector<16x32xf32>
    %145 = vector.extract_strided_slice %135 {offsets = [0, 32], sizes = [16, 32], strides = [1, 1]} : vector<16x96xf32> to vector<16x32xf32>
    %146 = arith.addf %144, %145 : vector<16x32xf32>
    %147 = arith.negf %146 : vector<16x32xf32>
    %148 = math.exp %147 : vector<16x32xf32>
    %cst_46 = arith.constant 1.000000e+00 : f32
    %149 = vector.broadcast %cst_46 : f32 to vector<16x32xf32>
    %150 = arith.addf %149, %148 : vector<16x32xf32>
    %151 = arith.divf %149, %150 : vector<16x32xf32>
    %152 = vector.extract_strided_slice %132 {offsets = [0, 64], sizes = [16, 32], strides = [1, 1]} : vector<16x96xf32> to vector<16x32xf32>
    %153 = vector.extract_strided_slice %135 {offsets = [0, 64], sizes = [16, 32], strides = [1, 1]} : vector<16x96xf32> to vector<16x32xf32>
    %154 = arith.mulf %143, %153 : vector<16x32xf32>
    %155 = arith.addf %152, %154 : vector<16x32xf32>
    %156 = math.tanh %155 : vector<16x32xf32>
    %cst_47 = arith.constant 1.000000e+00 : f32
    %157 = vector.broadcast %cst_47 : f32 to vector<16x32xf32>
    %158 = arith.subf %157, %151 : vector<16x32xf32>
    %159 = arith.mulf %158, %156 : vector<16x32xf32>
    %160 = arith.mulf %151, %31 : vector<16x32xf32>
    %161 = arith.addf %159, %160 : vector<16x32xf32>
    %cst_48 = arith.constant dense<0.000000e+00> : vector<16xf32>
    %162 = vector.multi_reduction <add>, %161, %cst_48 [1] : vector<16x32xf32> to vector<16xf32>
    %163 = vector.shape_cast %162 : vector<16xf32> to vector<16x1xf32>
    %cst_49 = arith.constant 3.200000e+01 : f32
    %164 = vector.broadcast %cst_49 : f32 to vector<16x1xf32>
    %165 = arith.divf %163, %164 : vector<16x1xf32>
    %166 = vector.broadcast %165 : vector<16x1xf32> to vector<16x32xf32>
    %167 = arith.subf %161, %166 : vector<16x32xf32>
    %168 = arith.mulf %167, %167 : vector<16x32xf32>
    %cst_50 = arith.constant dense<0.000000e+00> : vector<16xf32>
    %169 = vector.multi_reduction <add>, %168, %cst_50 [1] : vector<16x32xf32> to vector<16xf32>
    %170 = vector.shape_cast %169 : vector<16xf32> to vector<16x1xf32>
    %cst_51 = arith.constant 3.200000e+01 : f32
    %171 = vector.broadcast %cst_51 : f32 to vector<16x1xf32>
    %172 = arith.divf %170, %171 : vector<16x1xf32>
    %173 = vector.broadcast %165 : vector<16x1xf32> to vector<16x32xf32>
    %174 = arith.subf %161, %173 : vector<16x32xf32>
    %cst_52 = arith.constant 9.99999974E-6 : f32
    %175 = vector.broadcast %cst_52 : f32 to vector<16x1xf32>
    %176 = arith.addf %172, %175 : vector<16x1xf32>
    %177 = math.rsqrt %176 : vector<16x1xf32>
    %178 = vector.broadcast %177 : vector<16x1xf32> to vector<16x32xf32>
    %179 = arith.mulf %174, %178 : vector<16x32xf32>
    %180 = vector.broadcast %5 : vector<1x32xf32> to vector<16x32xf32>
    %181 = arith.mulf %179, %180 : vector<16x32xf32>
    %182 = vector.broadcast %6 : vector<1x32xf32> to vector<16x32xf32>
    %183 = arith.addf %181, %182 : vector<16x32xf32>
    %cst_53 = arith.constant dense<0.000000e+00> : vector<16x32xf32>
    %184 = tpu.matmul %183, %15, %cst_53 {dimension_numbers = #tpu.dot_dimension_numbers<[1], [0], [0], [1], [0, 0, 1, 1], [], []>} : vector<16x32xf32>, vector<32x32xf32>, vector<16x32xf32> -> vector<16x32xf32>
    %185 = vector.broadcast %7 : vector<1x32xf32> to vector<16x32xf32>
    %186 = arith.addf %184, %185 : vector<16x32xf32>
    %cst_54 = arith.constant 0.000000e+00 : f32
    %187 = vector.broadcast %cst_54 : f32 to vector<16x32xf32>
    %188 = arith.maximumf %186, %187 : vector<16x32xf32>
    %cst_55 = arith.constant dense<0.000000e+00> : vector<16x32xf32>
    %189 = tpu.matmul %188, %16, %cst_55 {dimension_numbers = #tpu.dot_dimension_numbers<[1], [0], [0], [1], [0, 0, 1, 1], [], []>} : vector<16x32xf32>, vector<32x32xf32>, vector<16x32xf32> -> vector<16x32xf32>
    %190 = arith.addf %161, %189 : vector<16x32xf32>
    %191 = vector.broadcast %8 : vector<1x32xf32> to vector<16x32xf32>
    %192 = arith.addf %190, %191 : vector<16x32xf32>
    %cst_56 = arith.constant dense<0.000000e+00> : vector<16xf32>
    %193 = vector.multi_reduction <add>, %192, %cst_56 [1] : vector<16x32xf32> to vector<16xf32>
    %194 = vector.shape_cast %193 : vector<16xf32> to vector<16x1xf32>
    %cst_57 = arith.constant 3.200000e+01 : f32
    %195 = vector.broadcast %cst_57 : f32 to vector<16x1xf32>
    %196 = arith.divf %194, %195 : vector<16x1xf32>
    %197 = vector.broadcast %196 : vector<16x1xf32> to vector<16x32xf32>
    %198 = arith.subf %192, %197 : vector<16x32xf32>
    %199 = arith.mulf %198, %198 : vector<16x32xf32>
    %cst_58 = arith.constant dense<0.000000e+00> : vector<16xf32>
    %200 = vector.multi_reduction <add>, %199, %cst_58 [1] : vector<16x32xf32> to vector<16xf32>
    %201 = vector.shape_cast %200 : vector<16xf32> to vector<16x1xf32>
    %cst_59 = arith.constant 3.200000e+01 : f32
    %202 = vector.broadcast %cst_59 : f32 to vector<16x1xf32>
    %203 = arith.divf %201, %202 : vector<16x1xf32>
    %204 = vector.broadcast %196 : vector<16x1xf32> to vector<16x32xf32>
    %205 = arith.subf %192, %204 : vector<16x32xf32>
    %cst_60 = arith.constant 9.99999974E-6 : f32
    %206 = vector.broadcast %cst_60 : f32 to vector<16x1xf32>
    %207 = arith.addf %203, %206 : vector<16x1xf32>
    %208 = math.rsqrt %207 : vector<16x1xf32>
    %209 = vector.broadcast %208 : vector<16x1xf32> to vector<16x32xf32>
    %210 = arith.mulf %205, %209 : vector<16x32xf32>
    %211 = vector.broadcast %3 : vector<1x32xf32> to vector<16x32xf32>
    %212 = arith.mulf %210, %211 : vector<16x32xf32>
    %213 = vector.broadcast %4 : vector<1x32xf32> to vector<16x32xf32>
    %214 = arith.addf %212, %213 : vector<16x32xf32>
    %cst_61 = arith.constant dense<0.000000e+00> : vector<16x32xf32>
    %215 = tpu.matmul %214, %14, %cst_61 {dimension_numbers = #tpu.dot_dimension_numbers<[1], [0], [0], [1], [0, 0, 1, 1], [], []>} : vector<16x32xf32>, vector<32x32xf32>, vector<16x32xf32> -> vector<16x32xf32>
    %216 = vector.extract_strided_slice %215 {offsets = [0, 0], sizes = [8, 32], strides = [1, 1]} : vector<16x32xf32> to vector<8x32xf32>
    %217 = vector.extract_strided_slice %60 {offsets = [0, 0], sizes = [64, 32], strides = [1, 1]} : vector<128x32xf32> to vector<64x32xf32>
    %218 = vector.extract_strided_slice %61 {offsets = [0, 0], sizes = [64, 32], strides = [1, 1]} : vector<128x32xf32> to vector<64x32xf32>
    %cst_62 = arith.constant dense<0.000000e+00> : vector<8x64xf32>
    %219 = tpu.matmul %216, %217, %cst_62 {dimension_numbers = #tpu.dot_dimension_numbers<[1], [1], [0], [0], [0, 0, 1, 0], [], []>} : vector<8x32xf32>, vector<64x32xf32>, vector<8x64xf32> -> vector<8x64xf32>
    %cst_63 = arith.constant dense<0xFF800000> : vector<64xf32>
    %220 = vector.multi_reduction <maximumf>, %219, %cst_63 [0] : vector<8x64xf32> to vector<64xf32>
    %221 = vector.shape_cast %220 : vector<64xf32> to vector<1x64xf32>
    %222 = vector.broadcast %221 : vector<1x64xf32> to vector<8x64xf32>
    %223 = arith.subf %219, %222 : vector<8x64xf32>
    %224 = math.exp %223 : vector<8x64xf32>
    %cst_64 = arith.constant dense<0.000000e+00> : vector<64xf32>
    %225 = vector.multi_reduction <add>, %224, %cst_64 [0] : vector<8x64xf32> to vector<64xf32>
    %226 = vector.shape_cast %225 : vector<64xf32> to vector<1x64xf32>
    %227 = tpu.reciprocal %226 {approx = true} : vector<1x64xf32> -> vector<1x64xf32>
    %228 = vector.broadcast %227 : vector<1x64xf32> to vector<8x64xf32>
    %229 = arith.mulf %224, %228 : vector<8x64xf32>
    %cst_65 = arith.constant 9.99999993E-9 : f32
    %230 = vector.broadcast %cst_65 : f32 to vector<8x64xf32>
    %231 = arith.addf %229, %230 : vector<8x64xf32>
    %cst_66 = arith.constant dense<0.000000e+00> : vector<64xf32>
    %232 = vector.multi_reduction <add>, %231, %cst_66 [0] : vector<8x64xf32> to vector<64xf32>
    %233 = vector.shape_cast %232 : vector<64xf32> to vector<1x64xf32>
    %234 = tpu.reciprocal %233 {approx = true} : vector<1x64xf32> -> vector<1x64xf32>
    %235 = vector.broadcast %234 : vector<1x64xf32> to vector<8x64xf32>
    %236 = arith.mulf %231, %235 : vector<8x64xf32>
    %cst_67 = arith.constant dense<0.000000e+00> : vector<8x32xf32>
    %237 = tpu.matmul %236, %218, %cst_67 {dimension_numbers = #tpu.dot_dimension_numbers<[1], [0], [0], [1], [0, 0, 1, 1], [], []>} : vector<8x64xf32>, vector<64x32xf32>, vector<8x32xf32> -> vector<8x32xf32>
    %238 = vector.extract_strided_slice %215 {offsets = [8, 0], sizes = [8, 32], strides = [1, 1]} : vector<16x32xf32> to vector<8x32xf32>
    %239 = vector.extract_strided_slice %60 {offsets = [64, 0], sizes = [64, 32], strides = [1, 1]} : vector<128x32xf32> to vector<64x32xf32>
    %240 = vector.extract_strided_slice %61 {offsets = [64, 0], sizes = [64, 32], strides = [1, 1]} : vector<128x32xf32> to vector<64x32xf32>
    %cst_68 = arith.constant dense<0.000000e+00> : vector<8x64xf32>
    %241 = tpu.matmul %238, %239, %cst_68 {dimension_numbers = #tpu.dot_dimension_numbers<[1], [1], [0], [0], [0, 0, 1, 0], [], []>} : vector<8x32xf32>, vector<64x32xf32>, vector<8x64xf32> -> vector<8x64xf32>
    %cst_69 = arith.constant dense<0xFF800000> : vector<64xf32>
    %242 = vector.multi_reduction <maximumf>, %241, %cst_69 [0] : vector<8x64xf32> to vector<64xf32>
    %243 = vector.shape_cast %242 : vector<64xf32> to vector<1x64xf32>
    %244 = vector.broadcast %243 : vector<1x64xf32> to vector<8x64xf32>
    %245 = arith.subf %241, %244 : vector<8x64xf32>
    %246 = math.exp %245 : vector<8x64xf32>
    %cst_70 = arith.constant dense<0.000000e+00> : vector<64xf32>
    %247 = vector.multi_reduction <add>, %246, %cst_70 [0] : vector<8x64xf32> to vector<64xf32>
    %248 = vector.shape_cast %247 : vector<64xf32> to vector<1x64xf32>
    %249 = tpu.reciprocal %248 {approx = true} : vector<1x64xf32> -> vector<1x64xf32>
    %250 = vector.broadcast %249 : vector<1x64xf32> to vector<8x64xf32>
    %251 = arith.mulf %246, %250 : vector<8x64xf32>
    %cst_71 = arith.constant 9.99999993E-9 : f32
    %252 = vector.broadcast %cst_71 : f32 to vector<8x64xf32>
    %253 = arith.addf %251, %252 : vector<8x64xf32>
    %cst_72 = arith.constant dense<0.000000e+00> : vector<64xf32>
    %254 = vector.multi_reduction <add>, %253, %cst_72 [0] : vector<8x64xf32> to vector<64xf32>
    %255 = vector.shape_cast %254 : vector<64xf32> to vector<1x64xf32>
    %256 = tpu.reciprocal %255 {approx = true} : vector<1x64xf32> -> vector<1x64xf32>
    %257 = vector.broadcast %256 : vector<1x64xf32> to vector<8x64xf32>
    %258 = arith.mulf %253, %257 : vector<8x64xf32>
    %cst_73 = arith.constant dense<0.000000e+00> : vector<8x32xf32>
    %259 = tpu.matmul %258, %240, %cst_73 {dimension_numbers = #tpu.dot_dimension_numbers<[1], [0], [0], [1], [0, 0, 1, 1], [], []>} : vector<8x64xf32>, vector<64x32xf32>, vector<8x32xf32> -> vector<8x32xf32>
    %260 = tpu.concatenate %237, %259 in 0 : vector<8x32xf32>, vector<8x32xf32> -> vector<16x32xf32>
    %cst_74 = arith.constant dense<0.000000e+00> : vector<16x96xf32>
    %261 = tpu.matmul %260, %18, %cst_74 {dimension_numbers = #tpu.dot_dimension_numbers<[1], [0], [0], [1], [0, 0, 1, 1], [], []>} : vector<16x32xf32>, vector<32x96xf32>, vector<16x96xf32> -> vector<16x96xf32>
    %262 = vector.broadcast %10 : vector<1x96xf32> to vector<16x96xf32>
    %263 = arith.addf %261, %262 : vector<16x96xf32>
    %cst_75 = arith.constant dense<0.000000e+00> : vector<16x96xf32>
    %264 = tpu.matmul %192, %19, %cst_75 {dimension_numbers = #tpu.dot_dimension_numbers<[1], [0], [0], [1], [0, 0, 1, 1], [], []>} : vector<16x32xf32>, vector<32x96xf32>, vector<16x96xf32> -> vector<16x96xf32>
    %265 = vector.broadcast %11 : vector<1x96xf32> to vector<16x96xf32>
    %266 = arith.addf %264, %265 : vector<16x96xf32>
    %267 = vector.extract_strided_slice %263 {offsets = [0, 0], sizes = [16, 32], strides = [1, 1]} : vector<16x96xf32> to vector<16x32xf32>
    %268 = vector.extract_strided_slice %266 {offsets = [0, 0], sizes = [16, 32], strides = [1, 1]} : vector<16x96xf32> to vector<16x32xf32>
    %269 = arith.addf %267, %268 : vector<16x32xf32>
    %270 = arith.negf %269 : vector<16x32xf32>
    %271 = math.exp %270 : vector<16x32xf32>
    %cst_76 = arith.constant 1.000000e+00 : f32
    %272 = vector.broadcast %cst_76 : f32 to vector<16x32xf32>
    %273 = arith.addf %272, %271 : vector<16x32xf32>
    %274 = arith.divf %272, %273 : vector<16x32xf32>
    %275 = vector.extract_strided_slice %263 {offsets = [0, 32], sizes = [16, 32], strides = [1, 1]} : vector<16x96xf32> to vector<16x32xf32>
    %276 = vector.extract_strided_slice %266 {offsets = [0, 32], sizes = [16, 32], strides = [1, 1]} : vector<16x96xf32> to vector<16x32xf32>
    %277 = arith.addf %275, %276 : vector<16x32xf32>
    %278 = arith.negf %277 : vector<16x32xf32>
    %279 = math.exp %278 : vector<16x32xf32>
    %cst_77 = arith.constant 1.000000e+00 : f32
    %280 = vector.broadcast %cst_77 : f32 to vector<16x32xf32>
    %281 = arith.addf %280, %279 : vector<16x32xf32>
    %282 = arith.divf %280, %281 : vector<16x32xf32>
    %283 = vector.extract_strided_slice %263 {offsets = [0, 64], sizes = [16, 32], strides = [1, 1]} : vector<16x96xf32> to vector<16x32xf32>
    %284 = vector.extract_strided_slice %266 {offsets = [0, 64], sizes = [16, 32], strides = [1, 1]} : vector<16x96xf32> to vector<16x32xf32>
    %285 = arith.mulf %274, %284 : vector<16x32xf32>
    %286 = arith.addf %283, %285 : vector<16x32xf32>
    %287 = math.tanh %286 : vector<16x32xf32>
    %cst_78 = arith.constant 1.000000e+00 : f32
    %288 = vector.broadcast %cst_78 : f32 to vector<16x32xf32>
    %289 = arith.subf %288, %282 : vector<16x32xf32>
    %290 = arith.mulf %289, %287 : vector<16x32xf32>
    %291 = arith.mulf %282, %192 : vector<16x32xf32>
    %292 = arith.addf %290, %291 : vector<16x32xf32>
    %cst_79 = arith.constant dense<0.000000e+00> : vector<16xf32>
    %293 = vector.multi_reduction <add>, %292, %cst_79 [1] : vector<16x32xf32> to vector<16xf32>
    %294 = vector.shape_cast %293 : vector<16xf32> to vector<16x1xf32>
    %cst_80 = arith.constant 3.200000e+01 : f32
    %295 = vector.broadcast %cst_80 : f32 to vector<16x1xf32>
    %296 = arith.divf %294, %295 : vector<16x1xf32>
    %297 = vector.broadcast %296 : vector<16x1xf32> to vector<16x32xf32>
    %298 = arith.subf %292, %297 : vector<16x32xf32>
    %299 = arith.mulf %298, %298 : vector<16x32xf32>
    %cst_81 = arith.constant dense<0.000000e+00> : vector<16xf32>
    %300 = vector.multi_reduction <add>, %299, %cst_81 [1] : vector<16x32xf32> to vector<16xf32>
    %301 = vector.shape_cast %300 : vector<16xf32> to vector<16x1xf32>
    %cst_82 = arith.constant 3.200000e+01 : f32
    %302 = vector.broadcast %cst_82 : f32 to vector<16x1xf32>
    %303 = arith.divf %301, %302 : vector<16x1xf32>
    %304 = vector.broadcast %296 : vector<16x1xf32> to vector<16x32xf32>
    %305 = arith.subf %292, %304 : vector<16x32xf32>
    %cst_83 = arith.constant 9.99999974E-6 : f32
    %306 = vector.broadcast %cst_83 : f32 to vector<16x1xf32>
    %307 = arith.addf %303, %306 : vector<16x1xf32>
    %308 = math.rsqrt %307 : vector<16x1xf32>
    %309 = vector.broadcast %308 : vector<16x1xf32> to vector<16x32xf32>
    %310 = arith.mulf %305, %309 : vector<16x32xf32>
    %311 = vector.broadcast %5 : vector<1x32xf32> to vector<16x32xf32>
    %312 = arith.mulf %310, %311 : vector<16x32xf32>
    %313 = vector.broadcast %6 : vector<1x32xf32> to vector<16x32xf32>
    %314 = arith.addf %312, %313 : vector<16x32xf32>
    %cst_84 = arith.constant dense<0.000000e+00> : vector<16x32xf32>
    %315 = tpu.matmul %314, %15, %cst_84 {dimension_numbers = #tpu.dot_dimension_numbers<[1], [0], [0], [1], [0, 0, 1, 1], [], []>} : vector<16x32xf32>, vector<32x32xf32>, vector<16x32xf32> -> vector<16x32xf32>
    %316 = vector.broadcast %7 : vector<1x32xf32> to vector<16x32xf32>
    %317 = arith.addf %315, %316 : vector<16x32xf32>
    %cst_85 = arith.constant 0.000000e+00 : f32
    %318 = vector.broadcast %cst_85 : f32 to vector<16x32xf32>
    %319 = arith.maximumf %317, %318 : vector<16x32xf32>
    %cst_86 = arith.constant dense<0.000000e+00> : vector<16x32xf32>
    %320 = tpu.matmul %319, %16, %cst_86 {dimension_numbers = #tpu.dot_dimension_numbers<[1], [0], [0], [1], [0, 0, 1, 1], [], []>} : vector<16x32xf32>, vector<32x32xf32>, vector<16x32xf32> -> vector<16x32xf32>
    %321 = arith.addf %292, %320 : vector<16x32xf32>
    %322 = vector.broadcast %8 : vector<1x32xf32> to vector<16x32xf32>
    %323 = arith.addf %321, %322 : vector<16x32xf32>
    %cst_87 = arith.constant dense<0.000000e+00> : vector<16xf32>
    %324 = vector.multi_reduction <add>, %323, %cst_87 [1] : vector<16x32xf32> to vector<16xf32>
    %325 = vector.shape_cast %324 : vector<16xf32> to vector<16x1xf32>
    %cst_88 = arith.constant 3.200000e+01 : f32
    %326 = vector.broadcast %cst_88 : f32 to vector<16x1xf32>
    %327 = arith.divf %325, %326 : vector<16x1xf32>
    %328 = vector.broadcast %327 : vector<16x1xf32> to vector<16x32xf32>
    %329 = arith.subf %323, %328 : vector<16x32xf32>
    %330 = arith.mulf %329, %329 : vector<16x32xf32>
    %cst_89 = arith.constant dense<0.000000e+00> : vector<16xf32>
    %331 = vector.multi_reduction <add>, %330, %cst_89 [1] : vector<16x32xf32> to vector<16xf32>
    %332 = vector.shape_cast %331 : vector<16xf32> to vector<16x1xf32>
    %cst_90 = arith.constant 3.200000e+01 : f32
    %333 = vector.broadcast %cst_90 : f32 to vector<16x1xf32>
    %334 = arith.divf %332, %333 : vector<16x1xf32>
    %335 = vector.broadcast %327 : vector<16x1xf32> to vector<16x32xf32>
    %336 = arith.subf %323, %335 : vector<16x32xf32>
    %cst_91 = arith.constant 9.99999974E-6 : f32
    %337 = vector.broadcast %cst_91 : f32 to vector<16x1xf32>
    %338 = arith.addf %334, %337 : vector<16x1xf32>
    %339 = math.rsqrt %338 : vector<16x1xf32>
    %340 = vector.broadcast %339 : vector<16x1xf32> to vector<16x32xf32>
    %341 = arith.mulf %336, %340 : vector<16x32xf32>
    %342 = vector.broadcast %3 : vector<1x32xf32> to vector<16x32xf32>
    %343 = arith.mulf %341, %342 : vector<16x32xf32>
    %344 = vector.broadcast %4 : vector<1x32xf32> to vector<16x32xf32>
    %345 = arith.addf %343, %344 : vector<16x32xf32>
    %cst_92 = arith.constant dense<0.000000e+00> : vector<16x32xf32>
    %346 = tpu.matmul %345, %14, %cst_92 {dimension_numbers = #tpu.dot_dimension_numbers<[1], [0], [0], [1], [0, 0, 1, 1], [], []>} : vector<16x32xf32>, vector<32x32xf32>, vector<16x32xf32> -> vector<16x32xf32>
    %347 = vector.extract_strided_slice %346 {offsets = [0, 0], sizes = [8, 32], strides = [1, 1]} : vector<16x32xf32> to vector<8x32xf32>
    %348 = vector.extract_strided_slice %60 {offsets = [0, 0], sizes = [64, 32], strides = [1, 1]} : vector<128x32xf32> to vector<64x32xf32>
    %349 = vector.extract_strided_slice %61 {offsets = [0, 0], sizes = [64, 32], strides = [1, 1]} : vector<128x32xf32> to vector<64x32xf32>
    %cst_93 = arith.constant dense<0.000000e+00> : vector<8x64xf32>
    %350 = tpu.matmul %347, %348, %cst_93 {dimension_numbers = #tpu.dot_dimension_numbers<[1], [1], [0], [0], [0, 0, 1, 0], [], []>} : vector<8x32xf32>, vector<64x32xf32>, vector<8x64xf32> -> vector<8x64xf32>
    %cst_94 = arith.constant dense<0xFF800000> : vector<64xf32>
    %351 = vector.multi_reduction <maximumf>, %350, %cst_94 [0] : vector<8x64xf32> to vector<64xf32>
    %352 = vector.shape_cast %351 : vector<64xf32> to vector<1x64xf32>
    %353 = vector.broadcast %352 : vector<1x64xf32> to vector<8x64xf32>
    %354 = arith.subf %350, %353 : vector<8x64xf32>
    %355 = math.exp %354 : vector<8x64xf32>
    %cst_95 = arith.constant dense<0.000000e+00> : vector<64xf32>
    %356 = vector.multi_reduction <add>, %355, %cst_95 [0] : vector<8x64xf32> to vector<64xf32>
    %357 = vector.shape_cast %356 : vector<64xf32> to vector<1x64xf32>
    %358 = tpu.reciprocal %357 {approx = true} : vector<1x64xf32> -> vector<1x64xf32>
    %359 = vector.broadcast %358 : vector<1x64xf32> to vector<8x64xf32>
    %360 = arith.mulf %355, %359 : vector<8x64xf32>
    %cst_96 = arith.constant 9.99999993E-9 : f32
    %361 = vector.broadcast %cst_96 : f32 to vector<8x64xf32>
    %362 = arith.addf %360, %361 : vector<8x64xf32>
    %cst_97 = arith.constant dense<0.000000e+00> : vector<64xf32>
    %363 = vector.multi_reduction <add>, %362, %cst_97 [0] : vector<8x64xf32> to vector<64xf32>
    %364 = vector.shape_cast %363 : vector<64xf32> to vector<1x64xf32>
    %365 = tpu.reciprocal %364 {approx = true} : vector<1x64xf32> -> vector<1x64xf32>
    %366 = vector.broadcast %365 : vector<1x64xf32> to vector<8x64xf32>
    %367 = arith.mulf %362, %366 : vector<8x64xf32>
    %c0_98 = arith.constant 0 : index
    %c0_99 = arith.constant 0 : index
    %c0_100 = arith.constant 0 : index
    %368 = vector.load %arg9[%c0_98, %c0_99, %c0_100] : memref<2x8x64xf32, #tpu.memory_space<vmem>>, vector<1x8x64xf32>
    %369 = vector.shape_cast %368 : vector<1x8x64xf32> to vector<8x64xf32>
    %370 = vector.shape_cast %367 : vector<8x64xf32> to vector<1x8x64xf32>
    tpu.vector_store %arg9[%c0_98, %c0_99, %c0_100], %370 {strides = array<i32>} : memref<2x8x64xf32, #tpu.memory_space<vmem>>, vector<1x8x64xf32>,
    %cst_101 = arith.constant dense<0.000000e+00> : vector<8x32xf32>
    %371 = tpu.matmul %367, %349, %cst_101 {dimension_numbers = #tpu.dot_dimension_numbers<[1], [0], [0], [1], [0, 0, 1, 1], [], []>} : vector<8x64xf32>, vector<64x32xf32>, vector<8x32xf32> -> vector<8x32xf32>
    %372 = vector.extract_strided_slice %346 {offsets = [8, 0], sizes = [8, 32], strides = [1, 1]} : vector<16x32xf32> to vector<8x32xf32>
    %373 = vector.extract_strided_slice %60 {offsets = [64, 0], sizes = [64, 32], strides = [1, 1]} : vector<128x32xf32> to vector<64x32xf32>
    %374 = vector.extract_strided_slice %61 {offsets = [64, 0], sizes = [64, 32], strides = [1, 1]} : vector<128x32xf32> to vector<64x32xf32>
    %cst_102 = arith.constant dense<0.000000e+00> : vector<8x64xf32>
    %375 = tpu.matmul %372, %373, %cst_102 {dimension_numbers = #tpu.dot_dimension_numbers<[1], [1], [0], [0], [0, 0, 1, 0], [], []>} : vector<8x32xf32>, vector<64x32xf32>, vector<8x64xf32> -> vector<8x64xf32>
    %cst_103 = arith.constant dense<0xFF800000> : vector<64xf32>
    %376 = vector.multi_reduction <maximumf>, %375, %cst_103 [0] : vector<8x64xf32> to vector<64xf32>
    %377 = vector.shape_cast %376 : vector<64xf32> to vector<1x64xf32>
    %378 = vector.broadcast %377 : vector<1x64xf32> to vector<8x64xf32>
    %379 = arith.subf %375, %378 : vector<8x64xf32>
    %380 = math.exp %379 : vector<8x64xf32>
    %cst_104 = arith.constant dense<0.000000e+00> : vector<64xf32>
    %381 = vector.multi_reduction <add>, %380, %cst_104 [0] : vector<8x64xf32> to vector<64xf32>
    %382 = vector.shape_cast %381 : vector<64xf32> to vector<1x64xf32>
    %383 = tpu.reciprocal %382 {approx = true} : vector<1x64xf32> -> vector<1x64xf32>
    %384 = vector.broadcast %383 : vector<1x64xf32> to vector<8x64xf32>
    %385 = arith.mulf %380, %384 : vector<8x64xf32>
    %cst_105 = arith.constant 9.99999993E-9 : f32
    %386 = vector.broadcast %cst_105 : f32 to vector<8x64xf32>
    %387 = arith.addf %385, %386 : vector<8x64xf32>
    %cst_106 = arith.constant dense<0.000000e+00> : vector<64xf32>
    %388 = vector.multi_reduction <add>, %387, %cst_106 [0] : vector<8x64xf32> to vector<64xf32>
    %389 = vector.shape_cast %388 : vector<64xf32> to vector<1x64xf32>
    %390 = tpu.reciprocal %389 {approx = true} : vector<1x64xf32> -> vector<1x64xf32>
    %391 = vector.broadcast %390 : vector<1x64xf32> to vector<8x64xf32>
    %392 = arith.mulf %387, %391 : vector<8x64xf32>
    %c1_107 = arith.constant 1 : index
    %c0_108 = arith.constant 0 : index
    %c0_109 = arith.constant 0 : index
    %393 = vector.load %arg9[%c1_107, %c0_108, %c0_109] : memref<2x8x64xf32, #tpu.memory_space<vmem>>, vector<1x8x64xf32>
    %394 = vector.shape_cast %393 : vector<1x8x64xf32> to vector<8x64xf32>
    %395 = vector.shape_cast %392 : vector<8x64xf32> to vector<1x8x64xf32>
    tpu.vector_store %arg9[%c1_107, %c0_108, %c0_109], %395 {strides = array<i32>} : memref<2x8x64xf32, #tpu.memory_space<vmem>>, vector<1x8x64xf32>,
    %cst_110 = arith.constant dense<0.000000e+00> : vector<8x32xf32>
    %396 = tpu.matmul %392, %374, %cst_110 {dimension_numbers = #tpu.dot_dimension_numbers<[1], [0], [0], [1], [0, 0, 1, 1], [], []>} : vector<8x64xf32>, vector<64x32xf32>, vector<8x32xf32> -> vector<8x32xf32>
    %397 = tpu.concatenate %371, %396 in 0 : vector<8x32xf32>, vector<8x32xf32> -> vector<16x32xf32>
    %cst_111 = arith.constant dense<0.000000e+00> : vector<16x96xf32>
    %398 = tpu.matmul %397, %18, %cst_111 {dimension_numbers = #tpu.dot_dimension_numbers<[1], [0], [0], [1], [0, 0, 1, 1], [], []>} : vector<16x32xf32>, vector<32x96xf32>, vector<16x96xf32> -> vector<16x96xf32>
    %399 = vector.broadcast %10 : vector<1x96xf32> to vector<16x96xf32>
    %400 = arith.addf %398, %399 : vector<16x96xf32>
    %cst_112 = arith.constant dense<0.000000e+00> : vector<16x96xf32>
    %401 = tpu.matmul %323, %19, %cst_112 {dimension_numbers = #tpu.dot_dimension_numbers<[1], [0], [0], [1], [0, 0, 1, 1], [], []>} : vector<16x32xf32>, vector<32x96xf32>, vector<16x96xf32> -> vector<16x96xf32>
    %402 = vector.broadcast %11 : vector<1x96xf32> to vector<16x96xf32>
    %403 = arith.addf %401, %402 : vector<16x96xf32>
    %404 = vector.extract_strided_slice %400 {offsets = [0, 0], sizes = [16, 32], strides = [1, 1]} : vector<16x96xf32> to vector<16x32xf32>
    %405 = vector.extract_strided_slice %403 {offsets = [0, 0], sizes = [16, 32], strides = [1, 1]} : vector<16x96xf32> to vector<16x32xf32>
    %406 = arith.addf %404, %405 : vector<16x32xf32>
    %407 = arith.negf %406 : vector<16x32xf32>
    %408 = math.exp %407 : vector<16x32xf32>
    %cst_113 = arith.constant 1.000000e+00 : f32
    %409 = vector.broadcast %cst_113 : f32 to vector<16x32xf32>
    %410 = arith.addf %409, %408 : vector<16x32xf32>
    %411 = arith.divf %409, %410 : vector<16x32xf32>
    %412 = vector.extract_strided_slice %400 {offsets = [0, 32], sizes = [16, 32], strides = [1, 1]} : vector<16x96xf32> to vector<16x32xf32>
    %413 = vector.extract_strided_slice %403 {offsets = [0, 32], sizes = [16, 32], strides = [1, 1]} : vector<16x96xf32> to vector<16x32xf32>
    %414 = arith.addf %412, %413 : vector<16x32xf32>
    %415 = arith.negf %414 : vector<16x32xf32>
    %416 = math.exp %415 : vector<16x32xf32>
    %cst_114 = arith.constant 1.000000e+00 : f32
    %417 = vector.broadcast %cst_114 : f32 to vector<16x32xf32>
    %418 = arith.addf %417, %416 : vector<16x32xf32>
    %419 = arith.divf %417, %418 : vector<16x32xf32>
    %420 = vector.extract_strided_slice %400 {offsets = [0, 64], sizes = [16, 32], strides = [1, 1]} : vector<16x96xf32> to vector<16x32xf32>
    %421 = vector.extract_strided_slice %403 {offsets = [0, 64], sizes = [16, 32], strides = [1, 1]} : vector<16x96xf32> to vector<16x32xf32>
    %422 = arith.mulf %411, %421 : vector<16x32xf32>
    %423 = arith.addf %420, %422 : vector<16x32xf32>
    %424 = math.tanh %423 : vector<16x32xf32>
    %cst_115 = arith.constant 1.000000e+00 : f32
    %425 = vector.broadcast %cst_115 : f32 to vector<16x32xf32>
    %426 = arith.subf %425, %419 : vector<16x32xf32>
    %427 = arith.mulf %426, %424 : vector<16x32xf32>
    %428 = arith.mulf %419, %323 : vector<16x32xf32>
    %429 = arith.addf %427, %428 : vector<16x32xf32>
    %cst_116 = arith.constant dense<0.000000e+00> : vector<16xf32>
    %430 = vector.multi_reduction <add>, %429, %cst_116 [1] : vector<16x32xf32> to vector<16xf32>
    %431 = vector.shape_cast %430 : vector<16xf32> to vector<16x1xf32>
    %cst_117 = arith.constant 3.200000e+01 : f32
    %432 = vector.broadcast %cst_117 : f32 to vector<16x1xf32>
    %433 = arith.divf %431, %432 : vector<16x1xf32>
    %434 = vector.broadcast %433 : vector<16x1xf32> to vector<16x32xf32>
    %435 = arith.subf %429, %434 : vector<16x32xf32>
    %436 = arith.mulf %435, %435 : vector<16x32xf32>
    %cst_118 = arith.constant dense<0.000000e+00> : vector<16xf32>
    %437 = vector.multi_reduction <add>, %436, %cst_118 [1] : vector<16x32xf32> to vector<16xf32>
    %438 = vector.shape_cast %437 : vector<16xf32> to vector<16x1xf32>
    %cst_119 = arith.constant 3.200000e+01 : f32
    %439 = vector.broadcast %cst_119 : f32 to vector<16x1xf32>
    %440 = arith.divf %438, %439 : vector<16x1xf32>
    %441 = vector.broadcast %433 : vector<16x1xf32> to vector<16x32xf32>
    %442 = arith.subf %429, %441 : vector<16x32xf32>
    %cst_120 = arith.constant 9.99999974E-6 : f32
    %443 = vector.broadcast %cst_120 : f32 to vector<16x1xf32>
    %444 = arith.addf %440, %443 : vector<16x1xf32>
    %445 = math.rsqrt %444 : vector<16x1xf32>
    %446 = vector.broadcast %445 : vector<16x1xf32> to vector<16x32xf32>
    %447 = arith.mulf %442, %446 : vector<16x32xf32>
    %448 = vector.broadcast %5 : vector<1x32xf32> to vector<16x32xf32>
    %449 = arith.mulf %447, %448 : vector<16x32xf32>
    %450 = vector.broadcast %6 : vector<1x32xf32> to vector<16x32xf32>
    %451 = arith.addf %449, %450 : vector<16x32xf32>
    %cst_121 = arith.constant dense<0.000000e+00> : vector<16x32xf32>
    %452 = tpu.matmul %451, %15, %cst_121 {dimension_numbers = #tpu.dot_dimension_numbers<[1], [0], [0], [1], [0, 0, 1, 1], [], []>} : vector<16x32xf32>, vector<32x32xf32>, vector<16x32xf32> -> vector<16x32xf32>
    %453 = vector.broadcast %7 : vector<1x32xf32> to vector<16x32xf32>
    %454 = arith.addf %452, %453 : vector<16x32xf32>
    %cst_122 = arith.constant 0.000000e+00 : f32
    %455 = vector.broadcast %cst_122 : f32 to vector<16x32xf32>
    %456 = arith.maximumf %454, %455 : vector<16x32xf32>
    %cst_123 = arith.constant dense<0.000000e+00> : vector<16x32xf32>
    %457 = tpu.matmul %456, %16, %cst_123 {dimension_numbers = #tpu.dot_dimension_numbers<[1], [0], [0], [1], [0, 0, 1, 1], [], []>} : vector<16x32xf32>, vector<32x32xf32>, vector<16x32xf32> -> vector<16x32xf32>
    %458 = arith.addf %429, %457 : vector<16x32xf32>
    %459 = vector.broadcast %8 : vector<1x32xf32> to vector<16x32xf32>
    %460 = arith.addf %458, %459 : vector<16x32xf32>
    %461 = vector.extract_strided_slice %460 {offsets = [0, 0], sizes = [8, 32], strides = [1, 1]} : vector<16x32xf32> to vector<8x32xf32>
    %c0_124 = arith.constant 0 : index
    %c0_125 = arith.constant 0 : index
    %c0_126 = arith.constant 0 : index
    %462 = vector.load %arg8[%c0_124, %c0_125, %c0_126] : memref<2x8x32xf32, #tpu.memory_space<vmem>>, vector<1x8x32xf32>
    %463 = vector.shape_cast %462 : vector<1x8x32xf32> to vector<8x32xf32>
    %464 = vector.shape_cast %461 : vector<8x32xf32> to vector<1x8x32xf32>
    tpu.vector_store %arg8[%c0_124, %c0_125, %c0_126], %464 {strides = array<i32>} : memref<2x8x32xf32, #tpu.memory_space<vmem>>, vector<1x8x32xf32>,
    %465 = vector.extract_strided_slice %460 {offsets = [8, 0], sizes = [8, 32], strides = [1, 1]} : vector<16x32xf32> to vector<8x32xf32>
    %c1_127 = arith.constant 1 : index
    %c0_128 = arith.constant 0 : index
    %c0_129 = arith.constant 0 : index
    %466 = vector.load %arg8[%c1_127, %c0_128, %c0_129] : memref<2x8x32xf32, #tpu.memory_space<vmem>>, vector<1x8x32xf32>
    %467 = vector.shape_cast %466 : vector<1x8x32xf32> to vector<8x32xf32>
    %468 = vector.shape_cast %465 : vector<8x32xf32> to vector<1x8x32xf32>
    tpu.vector_store %arg8[%c1_127, %c0_128, %c0_129], %468 {strides = array<i32>} : memref<2x8x32xf32, #tpu.memory_space<vmem>>, vector<1x8x32xf32>,
    return
  }
  func.func @transform_0(%arg0: i32) -> (i32, i32, i32) {
    %c0_i32 = arith.constant 0 : i32
    %c0_i32_0 = arith.constant 0 : i32
    %c0_i32_1 = arith.constant 0 : i32
    return %arg0, %c0_i32, %c0_i32_0 : i32, i32, i32
  }
  func.func @transform_1(%arg0: i32) -> (i32, i32, i32) {
    %c0_i32 = arith.constant 0 : i32
    %c0_i32_0 = arith.constant 0 : i32
    %c0_i32_1 = arith.constant 0 : i32
    return %arg0, %c0_i32, %c0_i32_0 : i32, i32, i32
  }
  func.func @transform_2(%arg0: i32) -> (i32, i32) {
    %c0_i32 = arith.constant 0 : i32
    %c0_i32_0 = arith.constant 0 : i32
    %c0_i32_1 = arith.constant 0 : i32
    return %c0_i32, %c0_i32_0 : i32, i32
  }
  func.func @transform_3(%arg0: i32) -> (i32, i32) {
    %c0_i32 = arith.constant 0 : i32
    %c0_i32_0 = arith.constant 0 : i32
    %c0_i32_1 = arith.constant 0 : i32
    return %c0_i32, %c0_i32_0 : i32, i32
  }
  func.func @transform_4(%arg0: i32) -> (i32, i32) {
    %c0_i32 = arith.constant 0 : i32
    %c0_i32_0 = arith.constant 0 : i32
    %c0_i32_1 = arith.constant 0 : i32
    return %c0_i32, %c0_i32_0 : i32, i32
  }
  func.func @transform_5(%arg0: i32) -> (i32, i32) {
    %c0_i32 = arith.constant 0 : i32
    %c0_i32_0 = arith.constant 0 : i32
    %c0_i32_1 = arith.constant 0 : i32
    return %c0_i32, %c0_i32_0 : i32, i32
  }
  func.func @transform_6(%arg0: i32) -> (i32, i32) {
    %c0_i32 = arith.constant 0 : i32
    %c0_i32_0 = arith.constant 0 : i32
    %c0_i32_1 = arith.constant 0 : i32
    return %c0_i32, %c0_i32_0 : i32, i32
  }
  func.func @transform_7(%arg0: i32) -> (i32, i32, i32) {
    %c0_i32 = arith.constant 0 : i32
    %c0_i32_0 = arith.constant 0 : i32
    %c0_i32_1 = arith.constant 0 : i32
    return %arg0, %c0_i32, %c0_i32_0 : i32, i32, i32
  }
  func.func @transform_8(%arg0: i32) -> (i32, i32, i32) {
    %c0_i32 = arith.constant 0 : i32
    %c0_i32_0 = arith.constant 0 : i32
    %c0_i32_1 = arith.constant 0 : i32
    return %arg0, %c0_i32, %c0_i32_0 : i32, i32, i32
  }
}

</mosaic_0001>

<bundles_post_ra>
// kernel: tpu_custom_call.1
= control target key start
LH: loop header
LB: loop body
LE: loop exit
PB: predicated region body
PF: predicated region fallthrough
CT: control target
= control target key end

     0   :  { %14 = vsyncpa [#allocation3], 0  ;;  %s6428_s0 = inlined_call_operand.vmem [shape: f32[4,64,32], index: 0, kind: input, shape index: {}]   ;;  %s6429_s1 = inlined_call_operand.vmem [shape: f32[4,8,32], index: 1, kind: input, shape index: {}]   ;;  %s6430_s2 = inlined_call_operand.vmem [shape: f32[16,32], index: 2, kind: input, shape index: {}]   ;;  %s6431_s3 = inlined_call_operand.vmem [shape: f32[8,32], index: 3, kind: input, shape index: {}]   ;;  %s6432_s4 = inlined_call_operand.vmem [shape: f32[2,96], index: 4, kind: input, shape index: {}]   ;;  %s6433_s5 = inlined_call_operand.vmem [shape: f32[32,160], index: 5, kind: input, shape index: {}]   ;;  %s6434_s6 = inlined_call_operand.vmem [shape: f32[32,192], index: 6, kind: input, shape index: {}]   ;;  %s6435_s7 = inlined_call_operand.hbm [shape: f32[4,8,32], index: 7, kind: output, shape index: {0}]   ;;  %s6436_s8 = inlined_call_operand.hbm [shape: f32[4,8,64], index: 8, kind: output, shape index: {1}]  }
   0x1   :  { %16 = vsyncpa [#allocation3 + $0x1], 0 }
   0x2   :  { %17 = vsyncpa [#allocation5], 0 }
   0x3   :  { %19 = vsyncpa [#allocation5 + $0x1], 0  ;;  %s5066_s27 = smov 0   ;;  %s5068_s28 = smov 0  }
   0x4   :  { %s5070_s29 = smov 0   ;;  %s5072_s30 = smov 0  }
   0x5 LB: > { %s5087_s9 = sadd.s32 4294967295, %s5010_s30   ;;  %s3940_s10 = sadd.s32 4294967294, %s5010_s30   ;;  %s5010_s30 = sphi %s5072_s30, %s6528_s30   ;;  %s5006_s29 = sphi %s5070_s29, %s6527_s29   ;;  %s5002_s28 = sphi %s5068_s28, %s6526_s28   ;;  %s4998_s27 = sphi %s5066_s27, %s6525_s27  }
   0x6   : > { %s5091_s11 = sadd.s32 1, %s5010_s30   ;;  %s189_s12 = sadd.s32 1, %s5006_s29 }
   0x7   : > { %s186_s13 = ssub.s32 %s5010_s30, %s5091_s11  ;;  %p199_p0 = scmp.ne.s32.totalorder %s5006_s29, %s5002_s28 }
   0x8   : > { %p187_p1 = scmp.eq.s32.totalorder %s186_s13, 0  ;;  %p200_p2 = scmp.eq.s32.totalorder %s5087_s9, 1 }
   0x9   : > { %p205_p3 = scmp.ne.s32.totalorder %s5002_s28, %s4998_s27  ;;  %p206_p4 = scmp.eq.s32.totalorder %s3940_s10, 1 }
   0xa   : > { %s5102_s14 = scalar_select %p187_p1, %s5006_s29, %s189_s12  }
   0xb   : > { %p5104_p5 = por %p200_p2, %p199_p0  ;;  %p5108_p6 = por %p206_p4, %p205_p3 }
   0xc   : > { %p3943_p7 = scmp.ge.s32.totalorder %s5010_s30, 1  ;;  %p284_p8 = scmp.lt.s32.totalorder %s5010_s30, 3 }
   0xe   : > { %p285_p9 = pnand %p3943_p7, %p284_p8 }
  0x10   : > { %288 = sbr.rel (%p285_p9) target bundleno = 9787 (0x263b), region = 48 }
  0x15   : > { %s3946_s17 = sshll.u32 %s5087_s9, 1  ;;  %vm388_vm0 = vcmask 261120   ;;  %v363_v9 = vld [vmem:[%s6430_s2 + $0x8] sm:$0xff]  ;;  %v362_v19 = vld [vmem:[%s6430_s2] sm:$0xff]  ;;  %v5156_v26 = vld [vmem:[%s6433_s5 + $0x30] sm:$0xff]  ;;  %s5012_s26 = smov 64  }
  0x16   : > { %p330_p10 = scmp.lt.s32.totalorder %s3946_s17, 3  ;;  %4303 = vmatprep.subr.mxu0 %v5156_v26  ;;  %v5162_v27 = vld [vmem:[%s6433_s5 + $0x20] sm:$0xff]  ;;  %v348_v28 = vld [vmem:[%s6433_s5 + $0x10] sm:$0xff]  ;;  %vm5014_vm1 = vmmov 0   ;;  %s6472_s12 = smov 96   ;;  %vm1063_vm2 = vcmask 523264  }
  0x17   : > { %4304 = vmatpush3.msra.mxu0 %v5156_v26  ;;  %v5173_v29 = vld [vmem:[%s6433_s5] sm:$0xff]  ;;  %s5016_s20 = smov 32   ;;  %s6471_s24 = sshll.u32 %s5087_s9, 8 }
  0x18   : > { %s6530_s17 = smov (!%p330_p10, %s3946_s17), 3  ;;  %4305 = vmatprep.subr.mxu0 %v5162_v27 }
  0x19   : > { %s4082_s18 = sshll.u32 %s6530_s17, 6  ;;  %s3950_s19 = sshll.u32 %s6530_s17, 3  ;;  %4306 = vmatpush3.msra.mxu0 %v5162_v27 }
  0x1a   : > { %s5118_s22 = scalar_lea.vmem %s6428_s0, %s4082_s18  ;;  %s340_s25 = scalar_lea.vmem %s6429_s1, %s3950_s19  ;;  %4307 = vmatprep.subr.mxu0 %v348_v28 }
  0x1b   : > { %v371_v0 = vld [vmem:[%s5118_s22] sm:$0xff]  ;;  %v373_v1 = vld [vmem:[%s5118_s22 + $0x10] sm:$0xff]  ;;  %v372_v2 = vld [vmem:[%s5118_s22 + $0x8] sm:$0xff]  ;;  %4308 = vmatpush3.msra.mxu0 %v348_v28  ;;  %s6340_s17 = scalar_lea.hbm %s6436_s8, %s6471_s24 }
  0x1c   : > { %v389_v3 = vsel %vm388_vm0, %v371_v0, 0.0  ;;  %v395_v4 = vsel %vm388_vm0, %v373_v1, 0.0  ;;  %v374_v5 = vld [vmem:[%s5118_s22 + $0x18] sm:$0xff]  ;;  %v392_v6 = vsel %vm388_vm0, %v372_v2, 0.0  ;;  %v375_v8 = vld [vmem:[%s5118_s22 + $0x20] sm:$0xff]  ;;  %v376_v10 = vld [vmem:[%s5118_s22 + $0x28] sm:$0xff]  ;;  %4309 = vmatprep.subr.mxu0 %v5173_v29 }
  0x1d   : > { %390 = vadd.xlane.f32.xlu0 %v389_v3  ;;  %396 = vadd.xlane.f32.xlu1 %v395_v4  ;;  %v398_v7 = vsel %vm388_vm0, %v374_v5, 0.0  ;;  %v364_v11 = vld [vmem:[%s340_s25] sm:$0xff]  ;;  %v3951_v12 = vld [vmem:[%s340_s25 + $0x8] sm:$0xff]  ;;  %v401_v13 = vsel %vm388_vm0, %v375_v8, 0.0  ;;  %v404_v14 = vsel %vm388_vm0, %v376_v10, 0.0  ;;  %v377_v17 = vld [vmem:[%s5118_s22 + $0x30] sm:$0xff] }
  0x1e   : > { %v367_v15 = vmul.f32 %v364_v11, %v363_v9  ;;  %v368_v16 = vmul.f32 %v3951_v12, %v363_v9  ;;  %v378_v18 = vld [vmem:[%s5118_s22 + $0x38] sm:$0xff]  ;;  %v407_v20 = vsel %vm388_vm0, %v377_v17, 0.0  ;;  %4310 = vmatpush3.msra.mxu0 %v5173_v29 }
  0x1f   : > { %v410_v21 = vsel %vm388_vm0, %v378_v18, 0.0 }
  0x20   : > { %v5145_v22 = vadd.f32 %v367_v15, %v362_v19  ;;  %v5147_v23 = vadd.f32 %v368_v16, %v362_v19 }
  0x21   : > { %393 = vadd.xlane.f32.xlu0 %v392_v6  ;;  %399 = vadd.xlane.f32.xlu1 %v398_v7 }
  0x22   : > { %v831_v24 = vsel %vm388_vm0, %v5145_v22, 0.0  ;;  %v834_v25 = vsel %vm388_vm0, %v5147_v23, 0.0 }
  0x25   : > { %402 = vadd.xlane.f32.xlu0 %v401_v13  ;;  %405 = vadd.xlane.f32.xlu1 %v404_v14  ;;  %v5232_v14 = vld [vmem:[%s5118_s22 + $0x40] sm:$0xff] }
  0x26   : > { %v413_v15 = vsel %vm388_vm0, %v5232_v14, 0.0 }
  0x29   : > { %408 = vadd.xlane.f32.xlu0 %v407_v20  ;;  %411 = vadd.xlane.f32.xlu1 %v410_v21  ;;  %v5245_v20 = vld [vmem:[%s5118_s22 + $0x58] sm:$0xff] }
  0x2a   : > { %v422_v21 = vsel %vm388_vm0, %v5245_v20, 0.0 }
  0x2d   : > { %832 = vadd.xlane.f32.xlu0 %v831_v24  ;;  %835 = vadd.xlane.f32.xlu1 %v834_v25  ;;  %v5250_v24 = vld [vmem:[%s5118_s22 + $0x60] sm:$0xff] }
  0x2e   : > { %v425_v25 = vsel %vm388_vm0, %v5250_v24, 0.0 }
  0xa6   : > { %v391_v30 = vpop.xlane.xlu0 %390  ;;  %v397_v31 = vpop.xlane.xlu1 %396 }
  0xa7   : > { %v438_v32 = vmul.f32 0.03125, %v391_v30  ;;  %v440_v33 = vmul.f32 0.03125, %v397_v31  ;;  %v5267_v31 = vld [vmem:[%s5118_s22 + $0x68] sm:$0xff] }
  0xa9   : > { %v5177_v34 = vsub.f32 %v371_v0, %v438_v32  ;;  %v5179_v35 = vsub.f32 %v373_v1, %v440_v33  ;;  %v428_v32 = vsel %vm388_vm0, %v5267_v31, 0.0  ;;  %v5272_v33 = vld [vmem:[%s5118_s22 + $0x78] sm:$0xff] }
  0xaa   : > { %v394_v36 = vpop.xlane.xlu0 %393  ;;  %v400_v37 = vpop.xlane.xlu1 %399 }
  0xab   : > { %v439_v38 = vmul.f32 0.03125, %v394_v36  ;;  %v441_v39 = vmul.f32 0.03125, %v400_v37  ;;  %v470_v40 = vmul.f32 %v5177_v34, %v5177_v34  ;;  %v472_v41 = vmul.f32 %v5179_v35, %v5179_v35 }
  0xac   : > { %v434_v36 = vsel %vm388_vm0, %v5272_v33, 0.0 }
  0xad   : > { %v5185_v42 = vsub.f32 %v372_v2, %v439_v38  ;;  %v5187_v43 = vsub.f32 %v374_v5, %v441_v39  ;;  %v486_v44 = vsel %vm388_vm0, %v470_v40, 0.0  ;;  %v492_v47 = vsel %vm388_vm0, %v472_v41, 0.0 }
  0xae   : > { %487 = vadd.xlane.f32.xlu0 %v486_v44  ;;  %v403_v45 = vpop.xlane.xlu0 %402  ;;  %v406_v46 = vpop.xlane.xlu1 %405 }
  0xaf   : > { %v442_v48 = vmul.f32 0.03125, %v403_v45  ;;  %v443_v49 = vmul.f32 0.03125, %v406_v46  ;;  %v471_v50 = vmul.f32 %v5185_v42, %v5185_v42  ;;  %v473_v51 = vmul.f32 %v5187_v43, %v5187_v43 }
  0xb0   : > { %v598_v45 = vlaneseq }
  0xb1   : > { %v5195_v52 = vsub.f32 %v375_v8, %v442_v48  ;;  %v5197_v53 = vsub.f32 %v376_v10, %v443_v49  ;;  %v489_v54 = vsel %vm388_vm0, %v471_v50, 0.0  ;;  %v495_v57 = vsel %vm388_vm0, %v473_v51, 0.0 }
  0xb2   : > { %493 = vadd.xlane.f32.xlu0 %v492_v47  ;;  %490 = vadd.xlane.f32.xlu1 %v489_v54  ;;  %v409_v55 = vpop.xlane.xlu0 %408  ;;  %v412_v56 = vpop.xlane.xlu1 %411  ;;  %v5276_v54 = vshrl.u32 %v598_v45, 7 }
  0xb3   : > { %v444_v58 = vmul.f32 0.03125, %v409_v55  ;;  %v445_v59 = vmul.f32 0.03125, %v412_v56  ;;  %v474_v60 = vmul.f32 %v5195_v52, %v5195_v52  ;;  %v475_v61 = vmul.f32 %v5197_v53, %v5197_v53 }
  0xb5   : > { %v5205_v62 = vsub.f32 %v377_v17, %v444_v58  ;;  %v5207_v63 = vsub.f32 %v378_v18, %v445_v59  ;;  %v498_v0 = vsel %vm388_vm0, %v474_v60, 0.0  ;;  %v501_v3 = vsel %vm388_vm0, %v475_v61, 0.0  ;;  %v5239_v17 = vld [vmem:[%s5118_s22 + $0x50] sm:$0xff] }
  0xb6   : > { %496 = vadd.xlane.f32.xlu1 %v495_v57  ;;  %499 = vadd.xlane.f32.xlu0 %v498_v0  ;;  %v833_v1 = vpop.xlane.xlu0 %832  ;;  %v836_v11 = vpop.xlane.xlu1 %835  ;;  %v419_v19 = vsel %vm388_vm0, %v5239_v17, 0.0  ;;  %v6439_v61 = vsub.s32 0, %v5276_v54  ;;  %v5282_v0 = vld [vmem:[%s6431_s3] sm:$0xff] }
  0xb7   : > { %v837_v2 = vmul.f32 0.03125, %v833_v1  ;;  %v476_v4 = vmul.f32 %v5205_v62, %v5205_v62  ;;  %v477_v5 = vmul.f32 %v5207_v63, %v5207_v63  ;;  %v838_v12 = vmul.f32 0.03125, %v836_v11 }
  0xb9   : > { %v5216_v6 = vsub.f32 %v5145_v22, %v837_v2  ;;  %v504_v7 = vsel %vm388_vm0, %v476_v4, 0.0  ;;  %v507_v8 = vsel %vm388_vm0, %v477_v5, 0.0  ;;  %v5229_v13 = vsub.f32 %v5147_v23, %v838_v12 }
  0xba   : > { %502 = vadd.xlane.f32.xlu1 %v501_v3  ;;  %505 = vadd.xlane.f32.xlu0 %v504_v7  ;;  %v620_v3 = vsub.s32 1, %v5276_v54 }
  0xbb   : > { %v841_v9 = vmul.f32 %v5216_v6, %v5216_v6  ;;  %v842_v16 = vmul.f32 %v5229_v13, %v5229_v13 }
  0xbd   : > { %v843_v10 = vsel %vm388_vm0, %v841_v9, 0.0  ;;  %v846_v18 = vsel %vm388_vm0, %v842_v16, 0.0  ;;  %v5288_v9 = vrot.slane %v5282_v0, %v6439_v61  ;;  %v5294_v16 = vrot.slane %v5282_v0, %v620_v3 }
  0xbe   : > { %508 = vadd.xlane.f32.xlu1 %v507_v8  ;;  %844 = vadd.xlane.f32.xlu0 %v843_v10 }
  0xcf   : > { %877 = vrot.lane.b32.xlu1 %v5162_v27, %s5012_s26 }
  0xd3   : > { %875 = vrot.lane.b32.xlu1 %v348_v28, %s5012_s26  ;;  %v5262_v28 = vld [vmem:[%s5118_s22 + $0x48] sm:$0xff] }
  0xd4   : > { %879 = vrot.lane.b32.xlu0 %v5156_v26, %s5012_s26  ;;  %v5255_v26 = vld [vmem:[%s5118_s22 + $0x70] sm:$0xff]  ;;  %v416_v30 = vsel %vm388_vm0, %v5262_v28, 0.0  ;;  %s6202_s22 = sand.u32 1, %s5002_s28  }
  0xd5   : > { %v431_v27 = vsel %vm388_vm0, %v5255_v26, 0.0  ;;  %s6470_s10 = sshll.u32 %s6202_s22, 4  ;;  %s3805_s18 = scalar_lea.sflag [#allocation5], %s6202_s22 }
  0xd6   : > { %s6208_s13 = scalar_lea.vmem [#allocation4], %s6470_s10 }
  0xf3   : > { %414 = vadd.xlane.f32.xlu0 %v413_v15 }
  0xf7   : > { %847 = vadd.xlane.f32.xlu1 %v846_v18  ;;  %420 = vadd.xlane.f32.xlu0 %v419_v19 }
  0xfb   : > { %423 = vadd.xlane.f32.xlu0 %v422_v21 }
  0xff   : > { %426 = vadd.xlane.f32.xlu0 %v425_v25 }
 0x103   : > { %432 = vadd.xlane.f32.xlu0 %v431_v27 }
 0x108   : > { %873 = vrot.lane.b32.xlu1 %v5173_v29, %s5012_s26 }
 0x12c   : > { %417 = vadd.xlane.f32.xlu1 %v416_v30 }
 0x130   : > { %429 = vadd.xlane.f32.xlu1 %v428_v32 }
 0x134   : > { %435 = vadd.xlane.f32.xlu1 %v434_v36 }
 0x137   : > { %v488_v37 = vpop.xlane.xlu0 %487 }
 0x138   : > { %v534_v29 = vmul.f32 0.03125, %v488_v37 }
 0x13a   : > { %v550_v38 = vadd.f32 1e-05, %v534_v29 }
 0x13b   : > { %v491_v39 = vpop.xlane.xlu1 %490  ;;  %v494_v40 = vpop.xlane.xlu0 %493 }
 0x13c   : > { %4779 = vrsqrt.f32 %v550_v38  ;;  %v535_v41 = vmul.f32 0.03125, %v491_v39  ;;  %v536_v44 = vmul.f32 0.03125, %v494_v40 }
 0x13e   : > { %v551_v46 = vadd.f32 1e-05, %v535_v41  ;;  %v552_v47 = vadd.f32 1e-05, %v536_v44 }
 0x13f   : > { %v497_v48 = vpop.xlane.xlu1 %496  ;;  %v500_v49 = vpop.xlane.xlu0 %499 }
 0x140   : > { %4781 = vrsqrt.f32 %v551_v46  ;;  %v537_v50 = vmul.f32 0.03125, %v497_v48  ;;  %v538_v51 = vmul.f32 0.03125, %v500_v49 }
 0x141   : > { %4783 = vrsqrt.f32 %v552_v47  ;;  %v859_v47 = vsub.s32 2, %v5276_v54 }
 0x142   : > { %v553_v55 = vadd.f32 1e-05, %v537_v50  ;;  %v554_v56 = vadd.f32 1e-05, %v538_v51  ;;  %v865_v51 = vsub.s32 3, %v5276_v54 }
 0x143   : > { %v503_v57 = vpop.xlane.xlu1 %502  ;;  %v506_v58 = vpop.xlane.xlu0 %505 }
 0x144   : > { %4785 = vrsqrt.f32 %v553_v55  ;;  %v539_v59 = vmul.f32 0.03125, %v503_v57  ;;  %v540_v60 = vmul.f32 0.03125, %v506_v58  ;;  %v5334_v58 = vrot.slane %v5282_v0, %v859_v47 }
 0x145   : > { %4787 = vrsqrt.f32 %v554_v56 }
 0x146   : > { %v555_v1 = vadd.f32 1e-05, %v539_v59  ;;  %v556_v2 = vadd.f32 1e-05, %v540_v60 }
 0x147   : > { %v509_v4 = vpop.xlane.xlu1 %508  ;;  %v845_v5 = vpop.xlane.xlu0 %844 }
 0x148   : > { %4789 = vrsqrt.f32 %v555_v1  ;;  %v541_v7 = vmul.f32 0.03125, %v509_v4  ;;  %v849_v8 = vmul.f32 0.03125, %v845_v5 }
 0x149   : > { %v4780_v10 = vpop.eup %4779  ;;  %4791 = vrsqrt.f32 %v556_v2  ;;  %v5341_v2 = vrot.slane %v5282_v0, %v865_v51 }
 0x14a   : > { %v557_v11 = vadd.f32 1e-05, %v541_v7  ;;  %v851_v12 = vadd.f32 1e-05, %v849_v8  ;;  %v582_v15 = vmul.f32 %v4780_v10, %v5177_v34 }
 0x14b   : > { %v5296_v18 = vpop.permute.xlu1 %877  ;;  %v5298_v19 = vpop.permute.xlu0 %879 }
 0x14c   : > { %4793 = vrsqrt.f32 %v557_v11  ;;  %4335 = vmatprep.subr.mxu1 %v5298_v19  ;;  %v602_v21 = vmul.f32 %v5288_v9, %v582_v15 }
 0x14d   : > { %v4782_v25 = vpop.eup %4781  ;;  %4795 = vrsqrt.f32 %v851_v12  ;;  %4336 = vmatpush3.msra.mxu1 %v5298_v19 }
 0x14e   : > { %v4784_v27 = vpop.eup %4783  ;;  %4337 = vmatprep.subr.mxu1 %v5296_v18  ;;  %v622_v34 = vadd.f32 %v5294_v16, %v602_v21  ;;  %v583_v30 = vmul.f32 %v4782_v25, %v5185_v42 }
 0x14f   : > { %v5306_v32 = vpop.permute.xlu1 %875  ;;  %4338 = vmatpush3.msra.mxu1 %v5296_v18  ;;  %v584_v36 = vmul.f32 %v4784_v27, %v5179_v35 }
 0x150   : > { %4311 = vmatprep.mubr.msk.f32.mxu0 %vm388_vm0, %v622_v34  ;;  %4339 = vmatprep.subr.mxu1 %v5306_v32  ;;  %v603_v37 = vmul.f32 %v5288_v9, %v583_v30 }
 0x151   : > { %v4786_v29 = vpop.eup %4785  ;;  %4340 = vmatpush3.msra.mxu1 %v5306_v32  ;;  %v604_v38 = vmul.f32 %v5288_v9, %v584_v36 }
 0x152   : > { %v4788_v39 = vpop.eup %4787  ;;  %v623_v42 = vadd.f32 %v5294_v16, %v603_v37  ;;  %v585_v40 = vmul.f32 %v4786_v29, %v5187_v43 }
 0x153   : > { %v624_v41 = vadd.f32 %v5294_v16, %v604_v38  ;;  %v586_v35 = vmul.f32 %v4788_v39, %v5195_v52 }
 0x154   : > { %4312 = vmatmul.mubr.msk.f32.vlgmr.msra.gmra.mxu0 %vm388_vm0, %v623_v42  ;;  %v605_v44 = vmul.f32 %v5288_v9, %v585_v40 }
 0x155   : > { %v4790_v45 = vpop.eup %4789  ;;  %4314 = vmatprep.mubr.msk.f32.mxu0 %vm388_vm0, %v624_v41  ;;  %v606_v46 = vmul.f32 %v5288_v9, %v586_v35 }
 0x156   : > { %v4792_v48 = vpop.eup %4791  ;;  %v625_v49 = vadd.f32 %v5294_v16, %v605_v44  ;;  %v587_v43 = vmul.f32 %v4790_v45, %v5197_v53 }
 0x157   : > { %v626_v50 = vadd.f32 %v5294_v16, %v606_v46  ;;  %v588_v52 = vmul.f32 %v4792_v48, %v5205_v62 }
 0x158   : > { %4315 = vmatmul.mubr.msk.f32.gmra.mxu0 %vm388_vm0, %v625_v49  ;;  %v607_v55 = vmul.f32 %v5288_v9, %v587_v43 }
 0x159   : > { %v4794_v56 = vpop.eup %4793  ;;  %4317 = vmatprep.mubr.msk.f32.mxu0 %vm388_vm0, %v626_v50  ;;  %v608_v57 = vmul.f32 %v5288_v9, %v588_v52 }
 0x15a   : > { %v4796_v59 = vpop.eup %4795  ;;  %v627_v53 = vadd.f32 %v5294_v16, %v607_v55  ;;  %v589_v60 = vmul.f32 %v4794_v56, %v5207_v63 }
 0x15b   : > { %v628_v62 = vadd.f32 %v5294_v16, %v608_v57  ;;  %v855_v1 = vmul.f32 %v4796_v59, %v5216_v6 }
 0x15c   : > { %4318 = vmatmul.mubr.msk.f32.gmra.mxu0 %vm388_vm0, %v627_v53  ;;  %v609_v4 = vmul.f32 %v5288_v9, %v589_v60 }
 0x15d   : > { %4320 = vmatprep.mubr.msk.f32.mxu0 %vm388_vm0, %v628_v62  ;;  %v861_v5 = vmul.f32 %v5334_v58, %v855_v1 }
 0x15e   : > { %v629_v7 = vadd.f32 %v5294_v16, %v609_v4 }
 0x15f   : > { %v867_v8 = vadd.f32 %v5341_v2, %v861_v5 }
 0x160   : > { %4321 = vmatmul.mubr.msk.f32.gmra.mxu0 %vm388_vm0, %v629_v7 }
 0x161   : > { %4343 = vmatprep.mubr.msk.f32.mxu1 %vm388_vm0, %v867_v8 }
 0x17c   : > { %v415_v63 = vpop.xlane.xlu0 %414 }
 0x17d   : > { %v446_v6 = vmul.f32 0.03125, %v415_v63 }
 0x17f   : > { %v5352_v0 = vsub.f32 %v5232_v14, %v446_v6 }
 0x180   : > { %v848_v10 = vpop.xlane.xlu1 %847  ;;  %v421_v11 = vpop.xlane.xlu0 %420 }
 0x181   : > { %v850_v12 = vmul.f32 0.03125, %v848_v10  ;;  %v448_v15 = vmul.f32 0.03125, %v421_v11  ;;  %v478_v21 = vmul.f32 %v5352_v0, %v5352_v0 }
 0x183   : > { %v852_v25 = vadd.f32 1e-05, %v850_v12  ;;  %v5357_v27 = vsub.f32 %v5239_v17, %v448_v15  ;;  %v510_v34 = vsel %vm388_vm0, %v478_v21, 0.0 }
 0x184   : > { %v5360_v30 = vpop.permute.xlu1 %873  ;;  %511 = vadd.xlane.f32.xlu0 %v510_v34  ;;  %v424_v36 = vpop.xlane.xlu0 %423 }
 0x185   : > { %6476 = vst [vmem:[#allocation8_spill] sm:$0xff] %v5360_v30  ;;  %4797 = vrsqrt.f32 %v852_v25  ;;  %4341 = vmatprep.subr.mxu1 %v5360_v30  ;;  %v480_v14 = vmul.f32 %v5357_v27, %v5357_v27  ;;  %v449_v49 = vmul.f32 0.03125, %v424_v36 }
 0x186   : > { %4342 = vmatpush3.msra.mxu1 %v5360_v30 }
 0x187   : > { %v516_v37 = vsel %vm388_vm0, %v480_v14, 0.0  ;;  %v5386_v50 = vsub.f32 %v5245_v20, %v449_v49 }
 0x188   : > { %517 = vadd.xlane.f32.xlu0 %v516_v37  ;;  %v427_v29 = vpop.xlane.xlu0 %426 }
 0x189   : > { %v450_v17 = vmul.f32 0.03125, %v427_v29  ;;  %v481_v57 = vmul.f32 %v5386_v50, %v5386_v50 }
 0x18b   : > { %v5368_v38 = vsub.f32 %v5250_v24, %v450_v17  ;;  %v519_v62 = vsel %vm388_vm0, %v481_v57, 0.0 }
 0x18c   : > { %v433_v39 = vpop.xlane.xlu0 %432 }
 0x18d   : > { %v452_v42 = vmul.f32 0.03125, %v433_v39  ;;  %v482_v40 = vmul.f32 %v5368_v38, %v5368_v38 }
 0x18f   : > { %v5373_v41 = vsub.f32 %v5255_v26, %v452_v42  ;;  %v522_v35 = vsel %vm388_vm0, %v482_v40, 0.0  ;;  %v6437_v26 = vmov 0.0  }
 0x190   : > { %523 = vadd.xlane.f32.xlu0 %v522_v35  ;;  %4346 = vmatprep.subr.mxu0 %v6437_v26 }
 0x191   : > { %v484_v44 = vmul.f32 %v5373_v41, %v5373_v41  ;;  %4365 = vmatprep.subr.mxu1 %v6437_v26 }
 0x192   : > { %v4798_v45 = vpop.eup %4797 }
 0x193   : > { %v528_v46 = vsel %vm388_vm0, %v484_v44, 0.0  ;;  %v856_v24 = vmul.f32 %v4798_v45, %v5229_v13 }
 0x194   : > { %529 = vadd.xlane.f32.xlu0 %v528_v46 }
 0x195   : > { %v862_v47 = vmul.f32 %v5334_v58, %v856_v24 }
 0x197   : > { %v868_v48 = vadd.f32 %v5341_v2, %v862_v47 }
 0x199   : > { %4344 = vmatmul.mubr.msk.f32.vlgmr.msra.gmra.mxu1 %vm388_vm0, %v868_v48 }
 0x19a   : > { %4381 = vmatprep.mubr.msk.f32.mxu1 %vm5014_vm1, %v6437_v26 }
 0x1b5   : > { %v418_v43 = vpop.xlane.xlu1 %417 }
 0x1b6   : > { %v447_v52 = vmul.f32 0.03125, %v418_v43 }
 0x1b8   : > { %v5389_v13 = vsub.f32 %v5262_v28, %v447_v52 }
 0x1b9   : > { %v430_v51 = vpop.xlane.xlu1 %429 }
 0x1ba   : > { %v479_v55 = vmul.f32 %v5389_v13, %v5389_v13  ;;  %v451_v56 = vmul.f32 0.03125, %v430_v51 }
 0x1bc   : > { %v513_v59 = vsel %vm388_vm0, %v479_v55, 0.0  ;;  %v5397_v53 = vsub.f32 %v5267_v31, %v451_v56 }
 0x1bd   : > { %514 = vadd.xlane.f32.xlu1 %v513_v59  ;;  %v436_v20 = vpop.xlane.xlu1 %435 }
 0x1be   : > { %v453_v60 = vmul.f32 0.03125, %v436_v20  ;;  %v483_v28 = vmul.f32 %v5397_v53, %v5397_v53 }
 0x1c0   : > { %v5403_v1 = vsub.f32 %v5272_v33, %v453_v60  ;;  %v525_v4 = vsel %vm388_vm0, %v483_v28, 0.0 }
 0x1c1   : > { %520 = vadd.xlane.f32.xlu1 %v519_v62 }
 0x1c2   : > { %v485_v5 = vmul.f32 %v5403_v1, %v5403_v1 }
 0x1c4   : > { %v531_v31 = vsel %vm388_vm0, %v485_v5, 0.0 }
 0x1c5   : > { %526 = vadd.xlane.f32.xlu1 %v525_v4 }
 0x1c9   : > { %532 = vadd.xlane.f32.xlu1 %v531_v31 }
 0x20d   : > { %v512_v7 = vpop.xlane.xlu0 %511 }
 0x20e   : > { %v542_v8 = vmul.f32 0.03125, %v512_v7 }
 0x210   : > { %v558_v63 = vadd.f32 1e-05, %v542_v8 }
 0x212   : > { %4799 = vrsqrt.f32 %v558_v63 }
 0x214   : > { %v5411_v33 = vpop.f32.mrf.mxu0 }
 0x215   : > { %6477 = vst [vmem:[#allocation9_spill] sm:$0xff] %v5411_v33 }
 0x216   : > { %v5413_v6 = vpop.f32.mrf.mxu0 }
 0x217   : > { %6478 = vst [vmem:[#allocation10_spill] sm:$0xff] %v5413_v6 }
 0x218   : > { %v5415_v10 = vpop.f32.mrf.mxu0 }
 0x219   : > { %6479 = vst [vmem:[#allocation11_spill] sm:$0xff] %v5415_v10 }
 0x21a   : > { %v5417_v11 = vpop.f32.mrf.mxu0 }
 0x21b   : > { %6480 = vst [vmem:[#allocation12_spill] sm:$0xff] %v5417_v11 }
 0x21c   : > { %v5419_v12 = vpop.f32.mrf.mxu0 }
 0x21d   : > { %6481 = vst [vmem:[#allocation13_spill] sm:$0xff] %v5419_v12  ;;  %1103 = vrot.lane.b32.xlu1 %v5419_v12, %s6472_s12 }
 0x21e   : > { %v5423_v15 = vpop.f32.mrf.mxu0 }
 0x21f   : > { %6482 = vst [vmem:[#allocation14_spill] sm:$0xff] %v5423_v15  ;;  %v4800_v21 = vpop.eup %4799 }
 0x220   : > { %v5425_v25 = vpop.f32.mrf.mxu0  ;;  %v590_v34 = vmul.f32 %v4800_v21, %v5352_v0  ;;  %v518_v0 = vpop.xlane.xlu0 %517 }
 0x221   : > { %6483 = vst [vmem:[#allocation15_spill] sm:$0xff] %v5425_v25  ;;  %4347 = vmatpush3.xpose.msk.msra.mxu0 %vm388_vm0, %v5425_v25  ;;  %1107 = vrot.lane.b32.xlu0 %v5425_v25, %s6472_s12  ;;  %v544_v17 = vmul.f32 0.03125, %v518_v0 }
 0x222   : > { %v5432_v36 = vpop.f32.mrf.mxu0  ;;  %4348 = vmatprep.subr.mxu0 %v6437_v26  ;;  %v610_v14 = vmul.f32 %v5288_v9, %v590_v34 }
 0x223   : > { %6484 = vst [vmem:[#allocation16_spill] sm:$0xff] %v5432_v36  ;;  %1105 = vrot.lane.b32.xlu1 %v5432_v36, %s6472_s12  ;;  %v560_v39 = vadd.f32 1e-05, %v544_v17 }
 0x224   : > { %v630_v37 = vadd.f32 %v5294_v16, %v610_v14  ;;  %v524_v29 = vpop.xlane.xlu0 %523 }
 0x225   : > { %4349 = vmatpush3.xpose.msk.msra.mxu0 %vm388_vm0, %v5432_v36  ;;  %1099 = vrot.lane.b32.xlu0 %v5415_v10, %s6472_s12  ;;  %v546_v42 = vmul.f32 0.03125, %v524_v29  ;;  %4801 = vrsqrt.f32 %v560_v39 }
 0x226   : > { %4323 = vmatprep.mubr.msk.f32.mxu0 %vm388_vm0, %v630_v37  ;;  %4350 = vmatprep.subr.mxu0 %v6437_v26 }
 0x227   : > { %1101 = vrot.lane.b32.xlu1 %v5423_v15, %s6472_s12  ;;  %v562_v35 = vadd.f32 1e-05, %v546_v42 }
 0x228   : > { %v530_v40 = vpop.xlane.xlu0 %529 }
 0x229   : > { %4351 = vmatpush3.xpose.msk.msra.mxu0 %vm388_vm0, %v5419_v12  ;;  %1095 = vrot.lane.b32.xlu0 %v5411_v33, %s6472_s12  ;;  %v548_v44 = vmul.f32 0.03125, %v530_v40  ;;  %4803 = vrsqrt.f32 %v562_v35 }
 0x22a   : > { %4352 = vmatprep.subr.mxu0 %v6437_v26 }
 0x22b   : > { %1097 = vrot.lane.b32.xlu1 %v5417_v11, %s6472_s12  ;;  %v564_v47 = vadd.f32 1e-05, %v548_v44 }
 0x22d   : > { %4353 = vmatpush3.xpose.msk.msra.mxu0 %vm388_vm0, %v5423_v15 }
 0x22e   : > { %4354 = vmatprep.subr.mxu0 %v6437_v26 }
 0x22f   : > { %1093 = vrot.lane.b32.xlu1 %v5413_v6, %s6472_s12 }
 0x231   : > { %4355 = vmatpush3.xpose.msk.msra.mxu0 %vm388_vm0, %v5415_v10 }
 0x232   : > { %4356 = vmatprep.subr.mxu0 %v6437_v26  ;;  %v4802_v57 = vpop.eup %4801 }
 0x233   : > { %v592_v60 = vmul.f32 %v4802_v57, %v5357_v27 }
 0x235   : > { %4357 = vmatpush3.xpose.msk.msra.mxu0 %vm388_vm0, %v5417_v11  ;;  %v612_v5 = vmul.f32 %v5288_v9, %v592_v60 }
 0x236   : > { %4358 = vmatprep.subr.mxu0 %v6437_v26  ;;  %v4804_v62 = vpop.eup %4803 }
 0x237   : > { %v594_v31 = vmul.f32 %v4804_v62, %v5368_v38  ;;  %v632_v14 = vadd.f32 %v5294_v16, %v612_v5 }
 0x239   : > { %4359 = vmatpush3.xpose.msk.msra.mxu0 %vm388_vm0, %v5411_v33  ;;  %v614_v27 = vmul.f32 %v5288_v9, %v594_v31 }
 0x23a   : > { %4360 = vmatprep.subr.mxu0 %v6437_v26 }
 0x23b   : > { %v634_v17 = vadd.f32 %v5294_v16, %v614_v27 }
 0x23d   : > { %4361 = vmatpush3.xpose.msk.msra.mxu0 %vm388_vm0, %v5413_v6 }
 0x23e   : > { %4403 = vmatprep.subr.mxu0 %v6437_v26 }
 0x246   : > { %v515_v45 = vpop.xlane.xlu1 %514 }
 0x247   : > { %v543_v46 = vmul.f32 0.03125, %v515_v45 }
 0x249   : > { %v559_v24 = vadd.f32 1e-05, %v543_v46 }
 0x24a   : > { %v521_v48 = vpop.xlane.xlu1 %520 }
 0x24b   : > { %4805 = vrsqrt.f32 %v559_v24  ;;  %v545_v49 = vmul.f32 0.03125, %v521_v48 }
 0x24c   : > { %4807 = vrsqrt.f32 %v564_v47 }
 0x24d   : > { %v561_v43 = vadd.f32 1e-05, %v545_v49 }
 0x24e   : > { %v527_v52 = vpop.xlane.xlu1 %526 }
 0x24f   : > { %4809 = vrsqrt.f32 %v561_v43  ;;  %v547_v51 = vmul.f32 0.03125, %v527_v52 }
 0x251   : > { %v563_v55 = vadd.f32 1e-05, %v547_v51 }
 0x252   : > { %v533_v56 = vpop.xlane.xlu1 %532 }
 0x253   : > { %4811 = vrsqrt.f32 %v563_v55  ;;  %v549_v59 = vmul.f32 0.03125, %v533_v56 }
 0x255   : > { %v565_v20 = vadd.f32 1e-05, %v549_v59 }
 0x257   : > { %4813 = vrsqrt.f32 %v565_v20 }
 0x258   : > { %v4806_v28 = vpop.eup %4805 }
 0x259   : > { %v591_v4 = vmul.f32 %v4806_v28, %v5389_v13  ;;  %v4808_v7 = vpop.eup %4807  ;;  %v5498_v45 = vpop.f32.mrf.mxu1 }
 0x25a   : > { %v596_v37 = vmul.f32 %v4808_v7, %v5373_v41 }
 0x25b   : > { %v611_v8 = vmul.f32 %v5288_v9, %v591_v4  ;;  %v957_v46 = vpop.f32.mrf.mxu1 }
 0x25c   : > { %v4810_v63 = vpop.eup %4809 }
 0x25d   : > { %v631_v21 = vadd.f32 %v5294_v16, %v611_v8  ;;  %v593_v34 = vmul.f32 %v4810_v63, %v5386_v50  ;;  %v616_v50 = vmul.f32 %v5288_v9, %v596_v37 }
 0x25f   : > { %4324 = vmatmul.mubr.msk.f32.gmra.mxu0 %vm388_vm0, %v631_v21  ;;  %v613_v13 = vmul.f32 %v5288_v9, %v593_v34  ;;  %v636_v35 = vadd.f32 %v5294_v16, %v616_v50 }
 0x260   : > { %v4812_v0 = vpop.eup %4811  ;;  %4326 = vmatprep.mubr.msk.f32.mxu0 %vm388_vm0, %v632_v14 }
 0x261   : > { %v633_v38 = vadd.f32 %v5294_v16, %v613_v13  ;;  %v595_v29 = vmul.f32 %v4812_v0, %v5397_v53 }
 0x263   : > { %4327 = vmatmul.mubr.msk.f32.gmra.mxu0 %vm388_vm0, %v633_v38  ;;  %v615_v39 = vmul.f32 %v5288_v9, %v595_v29 }
 0x264   : > { %v4814_v41 = vpop.eup %4813  ;;  %4329 = vmatprep.mubr.msk.f32.mxu0 %vm388_vm0, %v634_v17 }
 0x265   : > { %v635_v42 = vadd.f32 %v5294_v16, %v615_v39  ;;  %v597_v40 = vmul.f32 %v4814_v41, %v5403_v1 }
 0x267   : > { %4330 = vmatmul.mubr.msk.f32.gmra.mxu0 %vm388_vm0, %v635_v42  ;;  %v617_v53 = vmul.f32 %v5288_v9, %v597_v40 }
 0x268   : > { %4332 = vmatprep.mubr.msk.f32.mxu0 %vm388_vm0, %v636_v35 }
 0x269   : > { %v637_v44 = vadd.f32 %v5294_v16, %v617_v53 }
 0x26b   : > { %4333 = vmatmul.mubr.msk.f32.gmra.mxu0 %vm388_vm0, %v637_v44 }
 0x26c   : > { %4362 = vmatprep.mubr.msk.f32.mxu0 %vm5014_vm1, %v6437_v26 }
 0x26f   : > { %4363 = vmatmul.mubr.msk.f32.vlgmr.msra.gmra.mxu0 %vm388_vm0, %v957_v46 }
 0x270   : > { %4419 = vmatprep.mubr.msk.f32.mxu0 %vm5014_vm1, %v6437_v26 }
 0x28f   : > { %v5506_v1 = vpop.permute.xlu1 %1103 }
 0x293   : > { %v5508_v9 = vpop.permute.xlu0 %1107 }
 0x294   : > { %4366 = vmatpush3.msra.mxu1 %v5508_v9 }
 0x295   : > { %v5511_v16 = vpop.permute.xlu1 %1105  ;;  %4367 = vmatprep.subr.mxu1 %v6437_v26 }
 0x296   : > { %4368 = vmatpush3.msra.mxu1 %v5511_v16 }
 0x297   : > { %4369 = vmatprep.subr.mxu1 %v6437_v26  ;;  %v5517_v24 = vpop.permute.xlu0 %1099 }
 0x298   : > { %4370 = vmatpush3.msra.mxu1 %v5506_v1 }
 0x299   : > { %v5519_v47 = vpop.permute.xlu1 %1101  ;;  %4371 = vmatprep.subr.mxu1 %v6437_v26 }
 0x29a   : > { %4372 = vmatpush3.msra.mxu1 %v5519_v47 }
 0x29b   : > { %4373 = vmatprep.subr.mxu1 %v6437_v26  ;;  %v5529_v49 = vpop.permute.xlu0 %1095 }
 0x29c   : > { %4374 = vmatpush3.msra.mxu1 %v5517_v24 }
 0x29d   : > { %v5525_v48 = vpop.permute.xlu1 %1097  ;;  %4375 = vmatprep.subr.mxu1 %v6437_v26 }
 0x29e   : > { %4376 = vmatpush3.msra.mxu1 %v5525_v48 }
 0x29f   : > { %4377 = vmatprep.subr.mxu1 %v6437_v26 }
 0x2a0   : > { %4378 = vmatpush3.msra.mxu1 %v5529_v49 }
 0x2a1   : > { %v5533_v43 = vpop.permute.xlu1 %1093  ;;  %4379 = vmatprep.subr.mxu1 %v6437_v26 }
 0x2a2   : > { %4380 = vmatpush3.msra.mxu1 %v5533_v43 }
 0x2a3   : > { %4384 = vmatprep.subr.mxu1 %v6437_v26 }
 0x31f   : > { %v5538_v52 = vpop.f32.mrf.mxu0 }
 0x321   : > { %v5540_v51 = vpop.f32.mrf.mxu0 }
 0x323   : > { %v5542_v55 = vpop.f32.mrf.mxu0 }
 0x325   : > { %v5544_v56 = vpop.f32.mrf.mxu0 }
 0x327   : > { %v5546_v57 = vpop.f32.mrf.mxu0 }
 0x329   : > { %v5548_v59 = vpop.f32.mrf.mxu0 }
 0x32b   : > { %v5550_v20 = vpop.f32.mrf.mxu0 }
 0x32c   : > { %1330 = vrot.lane.b32.xlu0 %v5550_v20, %s6472_s12 }
 0x32d   : > { %v5554_v60 = vpop.f32.mrf.mxu0 }
 0x32e   : > { %1328 = vrot.lane.b32.xlu1 %v5554_v60, %s6472_s12 }
 0x32f   : > { %v1059_v62 = vpop.f32.mrf.mxu0 }
 0x330   : > { %v1064_v28 = vsel %vm1063_vm2, %v1059_v62, -inf  ;;  %1326 = vrot.lane.b32.xlu0 %v5546_v57, %s6472_s12 }
 0x331   : > { %v1065_v4 = vrot.slane %v1064_v28, 4  ;;  %v4364_v5 = vpop.f32.mrf.mxu0 }
 0x332   : > { %1324 = vrot.lane.b32.xlu1 %v5548_v59, %s6472_s12 }
 0x333   : > { %v1066_v31 = vmax.f32 %v1064_v28, %v1065_v4 }
 0x334   : > { %1322 = vrot.lane.b32.xlu0 %v5542_v55, %s6472_s12 }
 0x335   : > { %v1067_v7 = vrot.slane %v1066_v31, 2 }
 0x336   : > { %1320 = vrot.lane.b32.xlu1 %v5544_v56, %s6472_s12 }
 0x337   : > { %v1068_v8 = vmax.f32 %v1066_v31, %v1067_v7 }
 0x338   : > { %1318 = vrot.lane.b32.xlu0 %v5538_v52, %s6472_s12 }
 0x339   : > { %v1069_v63 = vrot.slane %v1068_v8, 1 }
 0x33a   : > { %1316 = vrot.lane.b32.xlu1 %v5540_v51, %s6472_s12 }
 0x33b   : > { %v1070_v21 = vmax.f32 %v1068_v8, %v1069_v63 }
 0x33d   : > { %v1071_v34 = vsub.f32 %v1059_v62, %v1070_v21 }
 0x33f   : > { %v1072_v14 = vmul.f32 1.442695, %v1071_v34 }
 0x341   : > { %4815 = vpow2.f32 %v1072_v14 }
 0x34e   : > { %v4816_v27 = vpop.eup %4815 }
 0x34f   : > { %v1074_v37 = vsel %vm1063_vm2, %v4816_v27, 0.0 }
 0x350   : > { %v1075_v13 = vrot.slane %v1074_v37, 4 }
 0x352   : > { %v1076_v0 = vadd.f32 %v1075_v13, %v1074_v37  ;;  %v5637_v37 = vld [vmem:[%s6434_s6 + $0x30] sm:$0xff]  ;;  %v5648_v13 = vld [vmem:[%s6434_s6 + $0x20] sm:$0xff] }
 0x353   : > { %1522 = vrot.lane.b32.xlu0 %v5637_v37, %s5016_s20  ;;  %6491 = vst [vmem:[#allocation23_spill] sm:$0xff] %v5648_v13 }
 0x354   : > { %v1077_v38 = vrot.slane %v1076_v0, 2 }
 0x356   : > { %v1078_v29 = vadd.f32 %v1077_v38, %v1076_v0  ;;  %v359_v0 = vld [vmem:[%s6434_s6 + $0x28] sm:$0xff]  ;;  %v5660_v38 = vld [vmem:[%s6434_s6 + $0x10] sm:$0xff] }
 0x357   : > { %1518 = vrot.lane.b32.xlu0 %v5648_v13, %s5016_s20  ;;  %6492 = vst [vmem:[#allocation24_spill] sm:$0xff] %v5660_v38 }
 0x358   : > { %v1079_v17 = vrot.slane %v1078_v29, 1 }
 0x35a   : > { %v1080_v50 = vadd.f32 %v1079_v17, %v1078_v29  ;;  %v357_v29 = vld [vmem:[%s6434_s6 + $0x18] sm:$0xff]  ;;  %v5671_v17 = vld [vmem:[%s6434_s6] sm:$0xff] }
 0x35b   : > { %1514 = vrot.lane.b32.xlu0 %v5660_v38, %s5016_s20  ;;  %6493 = vst [vmem:[#allocation25_spill] sm:$0xff] %v5671_v17 }
 0x35c   : > { %4817 = vrcp.f32 %v1080_v50  ;;  %v355_v50 = vld [vmem:[%s6434_s6 + $0x8] sm:$0xff] }
 0x35f   : > { %1510 = vrot.lane.b32.xlu0 %v5671_v17, %s5016_s20 }
 0x369   : > { %v4818_v39 = vpop.eup %4817 }
 0x36a   : > { %v1082_v41 = vmul.f32 %v4818_v39, %v4816_v27 }
 0x36c   : > { %v1083_v42 = vadd.f32 1e-08, %v1082_v41 }
 0x36e   : > { %v1084_v40 = vsel %vm1063_vm2, %v1083_v42, 0.0 }
 0x36f   : > { %v1085_v35 = vrot.slane %v1084_v40, 4 }
 0x371   : > { %v1086_v53 = vadd.f32 %v1085_v35, %v1084_v40 }
 0x373   : > { %v1087_v44 = vrot.slane %v1086_v53, 2 }
 0x375   : > { %v1088_v46 = vadd.f32 %v1087_v44, %v1086_v53 }
 0x377   : > { %v1089_v62 = vrot.slane %v1088_v46, 1 }
 0x379   : > { %v1090_v28 = vadd.f32 %v1089_v62, %v1088_v46 }
 0x37b   : > { %4819 = vrcp.f32 %v1090_v28 }
 0x388   : > { %v4820_v4 = vpop.eup %4819 }
 0x389   : > { %v1092_v5 = vmul.f32 %v4820_v4, %v1083_v42 }
 0x38b   : > { %4382 = vmatmul.mubr.msk.f32.vlgmr.msra.gmra.mxu1 %vm1063_vm2, %v1092_v5 }
 0x38c   : > { %4385 = vmatpush3.xpose.msk.msra.mxu1 %vm388_vm0, %v5550_v20  ;;  %4400 = vmatprep.mubr.msk.f32.mxu1 %vm5014_vm1, %v6437_v26 }
 0x38d   : > { %4386 = vmatprep.subr.mxu1 %v6437_v26 }
 0x390   : > { %4387 = vmatpush3.xpose.msk.msra.mxu1 %vm388_vm0, %v5554_v60 }
 0x391   : > { %4388 = vmatprep.subr.mxu1 %v6437_v26 }
 0x394   : > { %4389 = vmatpush3.xpose.msk.msra.mxu1 %vm388_vm0, %v5546_v57 }
 0x395   : > { %4390 = vmatprep.subr.mxu1 %v6437_v26 }
 0x398   : > { %4391 = vmatpush3.xpose.msk.msra.mxu1 %vm388_vm0, %v5548_v59 }
 0x399   : > { %4392 = vmatprep.subr.mxu1 %v6437_v26 }
 0x39c   : > { %4393 = vmatpush3.xpose.msk.msra.mxu1 %vm388_vm0, %v5542_v55 }
 0x39d   : > { %4394 = vmatprep.subr.mxu1 %v6437_v26 }
 0x39e   : > { %v5591_v31 = vpop.permute.xlu0 %1330 }
 0x39f   : > { %4404 = vmatpush3.msra.mxu0 %v5591_v31 }
 0x3a0   : > { %4395 = vmatpush3.xpose.msk.msra.mxu1 %vm388_vm0, %v5544_v56  ;;  %v5596_v7 = vpop.permute.xlu1 %1328  ;;  %4405 = vmatprep.subr.mxu0 %v6437_v26 }
 0x3a1   : > { %4406 = vmatpush3.msra.mxu0 %v5596_v7  ;;  %4396 = vmatprep.subr.mxu1 %v6437_v26 }
 0x3a2   : > { %4407 = vmatprep.subr.mxu0 %v6437_v26  ;;  %v5602_v8 = vpop.permute.xlu0 %1326 }
 0x3a3   : > { %6485 = vst [vmem:[#allocation17_spill] sm:$0xff] %v5602_v8  ;;  %4408 = vmatpush3.msra.mxu0 %v5602_v8 }
 0x3a4   : > { %4397 = vmatpush3.xpose.msk.msra.mxu1 %vm388_vm0, %v5538_v52  ;;  %v5607_v63 = vpop.permute.xlu1 %1324  ;;  %4409 = vmatprep.subr.mxu0 %v6437_v26 }
 0x3a5   : > { %6486 = vst [vmem:[#allocation18_spill] sm:$0xff] %v5607_v63  ;;  %4410 = vmatpush3.msra.mxu0 %v5607_v63  ;;  %4398 = vmatprep.subr.mxu1 %v6437_v26 }
 0x3a6   : > { %4411 = vmatprep.subr.mxu0 %v6437_v26  ;;  %v5613_v21 = vpop.permute.xlu0 %1322 }
 0x3a7   : > { %6487 = vst [vmem:[#allocation19_spill] sm:$0xff] %v5613_v21  ;;  %4412 = vmatpush3.msra.mxu0 %v5613_v21 }
 0x3a8   : > { %4399 = vmatpush3.xpose.msk.msra.mxu1 %vm388_vm0, %v5540_v51  ;;  %v5618_v34 = vpop.permute.xlu1 %1320  ;;  %4413 = vmatprep.subr.mxu0 %v6437_v26 }
 0x3a9   : > { %6488 = vst [vmem:[#allocation20_spill] sm:$0xff] %v5618_v34  ;;  %4414 = vmatpush3.msra.mxu0 %v5618_v34 }
 0x3aa   : > { %4415 = vmatprep.subr.mxu0 %v6437_v26  ;;  %v5623_v14 = vpop.permute.xlu0 %1318 }
 0x3ab   : > { %6489 = vst [vmem:[#allocation21_spill] sm:$0xff] %v5623_v14  ;;  %4401 = vmatmul.mubr.msk.f32.vlgmr.msra.gmra.mxu1 %vm388_vm0, %v5498_v45  ;;  %4416 = vmatpush3.msra.mxu0 %v5623_v14  ;;  %v361_v45 = vld [vmem:[%s6434_s6 + $0x38] sm:$0xff] }
 0x3ac   : > { %v5628_v27 = vpop.permute.xlu1 %1316  ;;  %4417 = vmatprep.subr.mxu0 %v6437_v26  ;;  %4441 = vmatprep.mubr.msk.f32.mxu1 %vm388_vm0, %v5145_v22 }
 0x3ad   : > { %6490 = vst [vmem:[#allocation22_spill] sm:$0xff] %v5628_v27  ;;  %4418 = vmatpush3.msra.mxu0 %v5628_v27  ;;  %1524 = vrot.lane.b32.xlu1 %v361_v45, %s5016_s20 }
 0x3ae   : > { %4422 = vmatprep.subr.mxu0 %v5637_v37 }
 0x3b1   : > { %1520 = vrot.lane.b32.xlu1 %v359_v0, %s5016_s20 }
 0x3b5   : > { %1516 = vrot.lane.b32.xlu1 %v357_v29, %s5016_s20 }
 0x3b9   : > { %1512 = vrot.lane.b32.xlu1 %v355_v50, %s5016_s20 }
 0x3c5   : > { %v1523_v50 = vpop.permute.xlu0 %1522 }
 0x41f   : > { %v1525_v26 = vpop.permute.xlu1 %1524 }
 0x44b   : > { %v1186_v39 = vpop.f32.mrf.mxu1 }
 0x44d   : > { %v4383_v41 = vpop.f32.mrf.mxu1 }
 0x44e   : > { %v5682_v41 = vsel %vm388_vm0, %v1523_v50, %v1525_v26 }
 0x44f   : > { %4433 = vmatprep.subr.mxu1 %v5682_v41 }
 0x450   : > { %4434 = vmatpush3.msra.mxu1 %v5682_v41 }
 0x46b   : > { %v1283_v42 = vpop.f32.mrf.mxu1 }
 0x46c   : > { %v1287_v40 = vsel %vm1063_vm2, %v1283_v42, -inf }
 0x46d   : > { %v1288_v35 = vrot.slane %v1287_v40, 4  ;;  %v4402_v53 = vpop.f32.mrf.mxu1 }
 0x46f   : > { %v1289_v44 = vmax.f32 %v1287_v40, %v1288_v35  ;;  %v1521_v40 = vpop.permute.xlu1 %1520  ;;  %v1519_v35 = vpop.permute.xlu0 %1518 }
 0x471   : > { %v1290_v46 = vrot.slane %v1289_v44, 2 }
 0x473   : > { %v1291_v62 = vmax.f32 %v1289_v44, %v1290_v46 }
 0x475   : > { %v1292_v28 = vrot.slane %v1291_v62, 1 }
 0x477   : > { %v1293_v4 = vmax.f32 %v1291_v62, %v1292_v28  ;;  %v1517_v62 = vpop.permute.xlu1 %1516  ;;  %v1515_v28 = vpop.permute.xlu0 %1514 }
 0x479   : > { %v1294_v5 = vsub.f32 %v1283_v42, %v1293_v4  ;;  %v5687_v42 = vsel %vm388_vm0, %v1519_v35, %v1521_v40  ;;  %v5692_v4 = vsel %vm388_vm0, %v1515_v28, %v1517_v62 }
 0x47a   : > { %4435 = vmatprep.subr.mxu1 %v5687_v42  ;;  %6494 = vst [vmem:[#allocation26_spill] sm:$0xff] %v5692_v4 }
 0x47b   : > { %v1295_v45 = vmul.f32 1.442695, %v1294_v5  ;;  %4436 = vmatpush3.msra.mxu1 %v5687_v42  ;;  %v1513_v5 = vpop.permute.xlu1 %1512 }
 0x47c   : > { %4437 = vmatprep.subr.mxu1 %v5692_v4 }
 0x47d   : > { %4821 = vpow2.f32 %v1295_v45  ;;  %4438 = vmatpush3.msra.mxu1 %v5692_v4  ;;  %v1511_v45 = vpop.permute.xlu0 %1510 }
 0x48a   : > { %v4822_v0 = vpop.eup %4821 }
 0x48b   : > { %v1297_v29 = vsel %vm1063_vm2, %v4822_v0, 0.0 }
 0x48c   : > { %v1298_v61 = vrot.slane %v1297_v29, 4 }
 0x48e   : > { %v1299_v53 = vadd.f32 %v1298_v61, %v1297_v29  ;;  %v5697_v29 = vsel %vm388_vm0, %v1511_v45, %v1513_v5 }
 0x48f   : > { %6495 = vst [vmem:[#allocation27_spill] sm:$0xff] %v5697_v29  ;;  %4439 = vmatprep.subr.mxu1 %v5697_v29 }
 0x490   : > { %v1300_v44 = vrot.slane %v1299_v53, 2  ;;  %4440 = vmatpush3.msra.mxu1 %v5697_v29 }
 0x491   : > { %4442 = vmatmul.mubr.msk.f32.vlgmr.msra.gmra.mxu1 %vm388_vm0, %v5147_v23 }
 0x492   : > { %v1301_v46 = vadd.f32 %v1300_v44, %v1299_v53 }
 0x494   : > { %v1302_v26 = vrot.slane %v1301_v46, 1 }
 0x496   : > { %v1303_v61 = vadd.f32 %v1302_v26, %v1301_v46 }
 0x498   : > { %4823 = vrcp.f32 %v1303_v61 }
 0x4a5   : > { %v4824_v50 = vpop.eup %4823 }
 0x4a6   : > { %v1305_v53 = vmul.f32 %v4824_v50, %v4822_v0  ;;  %v345_v0 = vld [vmem:[%s6432_s4] sm:$0x3] }
 0x4a8   : > { %v1306_v40 = vadd.f32 1e-08, %v1305_v53 }
 0x4aa   : > { %v1307_v35 = vsel %vm1063_vm2, %v1306_v40, 0.0 }
 0x4ab   : > { %v1308_v44 = vrot.slane %v1307_v35, 4 }
 0x4ad   : > { %v1309_v46 = vadd.f32 %v1308_v44, %v1307_v35 }
 0x4af   : > { %v1310_v62 = vrot.slane %v1309_v46, 2 }
 0x4b1   : > { %v1311_v28 = vadd.f32 %v1310_v62, %v1309_v46  ;;  %v6497_v62 = vsub.s32 0, %v5276_v54 }
 0x4b3   : > { %v1312_v26 = vrot.slane %v1311_v28, 1 }
 0x4b5   : > { %v1313_v61 = vadd.f32 %v1312_v26, %v1311_v28  ;;  %v5727_v28 = vrot.slane %v345_v0, %v6497_v62 }
 0x4b7   : > { %4825 = vrcp.f32 %v1313_v61 }
 0x4c4   : > { %v4826_v5 = vpop.eup %4825 }
 0x4c5   : > { %v1315_v45 = vmul.f32 %v4826_v5, %v1306_v40 }
 0x4c7   : > { %4420 = vmatmul.mubr.msk.f32.vlgmr.msra.gmra.mxu0 %vm1063_vm2, %v1315_v45 }
 0x4c8   : > { %4430 = vmatprep.mubr.msk.f32.mxu0 %vm388_vm0, %v1186_v39  ;;  %4423 = vmatpush3.msra.mxu0 %v5637_v37  ;;  %v5718_v39 = vrot.slane %v345_v0, %v620_v3 }
 0x4c9   : > { %4424 = vmatprep.subr.mxu0 %v5648_v13 }
 0x4ca   : > { %4425 = vmatpush3.msra.mxu0 %v5648_v13  ;;  %6496 = vst [vmem:[#allocation28_spill] sm:$0xff] %v5718_v39 }
 0x4cb   : > { %4426 = vmatprep.subr.mxu0 %v5660_v38 }
 0x4cc   : > { %4427 = vmatpush3.msra.mxu0 %v5660_v38 }
 0x4cd   : > { %4428 = vmatprep.subr.mxu0 %v5671_v17 }
 0x4ce   : > { %4429 = vmatpush3.msra.mxu0 %v5671_v17 }
 0x551   : > { %v4443_v50 = vpop.f32.mrf.mxu1 }
 0x552   : > { %v1612_v53 = vadd.f32 %v4443_v50, %v5718_v39 }
 0x553   : > { %v1606_v40 = vpop.f32.mrf.mxu1 }
 0x554   : > { %v1607_v35 = vadd.f32 %v1606_v40, %v5718_v39  ;;  %1633 = vrot.lane.b32.xlu1 %v1612_v53, %s5012_s26 }
 0x556   : > { %1631 = vrot.lane.b32.xlu0 %v1607_v35, %s5012_s26 }
 0x587   : > { %v1409_v44 = vpop.f32.mrf.mxu0 }
 0x588   : > { %4431 = vmatmul.mubr.msk.f32.vlgmr.msra.gmra.mxu0 %vm388_vm0, %v1409_v44 }
 0x589   : > { %v4421_v46 = vpop.f32.mrf.mxu0 }
 0x5c6   : > { %v1634_v0 = vpop.permute.xlu1 %1633 }
 0x648   : > { %v4432_v3 = vpop.f32.mrf.mxu0 }
 0x649   : > { %v1495_v26 = vadd.f32 %v4432_v3, %v5727_v28  ;;  %v1632_v3 = vpop.permute.xlu0 %1631 }
 0x64a   : > { %v1489_v61 = vpop.f32.mrf.mxu0 }
 0x64b   : > { %v1616_v5 = vadd.f32 %v1612_v53, %v1495_v26  ;;  %v1490_v45 = vadd.f32 %v1489_v61, %v5727_v28 }
 0x64d   : > { %v4003_v50 = vmul.f32 -1.442695, %v1616_v5  ;;  %v1615_v40 = vadd.f32 %v1607_v35, %v1490_v45 }
 0x64f   : > { %4827 = vpow2.f32 %v4003_v50  ;;  %v4002_v17 = vmul.f32 -1.442695, %v1615_v40 }
 0x651   : > { %4829 = vpow2.f32 %v4002_v17 }
 0x65c   : > { %v4828_v38 = vpop.eup %4827 }
 0x65d   : > { %v1624_v13 = vadd.f32 1.0, %v4828_v38 }
 0x65e   : > { %v4830_v44 = vpop.eup %4829 }
 0x65f   : > { %4831 = vrcp.f32 %v1624_v13  ;;  %v1623_v46 = vadd.f32 1.0, %v4830_v44 }
 0x661   : > { %4833 = vrcp.f32 %v1623_v46 }
 0x66c   : > { %v4832_v62 = vpop.eup %4831 }
 0x66d   : > { %v1638_v39 = vmul.f32 %v4832_v62, %v1634_v0 }
 0x66e   : > { %v4834_v29 = vpop.eup %4833 }
 0x66f   : > { %v1637_v4 = vmul.f32 %v4834_v29, %v1632_v3  ;;  %1643 = vrot.lane.b32.xlu1 %v1638_v39, %s5012_s26 }
 0x671   : > { %1641 = vrot.lane.b32.xlu0 %v1637_v4, %s5012_s26  ;;  %v1651_v4 = vsub.f32 1.0, %v4834_v29 }
 0x673   : > { %1663 = vrot.lane.b32.xlu1 %v5145_v22, %s5016_s20 }
 0x677   : > { %1665 = vrot.lane.b32.xlu1 %v5147_v23, %s5016_s20  ;;  %v1652_v23 = vsub.f32 1.0, %v4832_v62 }
 0x6e1   : > { %v1644_v38 = vpop.permute.xlu1 %1643 }
 0x6e2   : > { %v1648_v53 = vadd.f32 %v1644_v38, %v1495_v26 }
 0x6e3   : > { %v1642_v13 = vpop.permute.xlu0 %1641 }
 0x6e4   : > { %v1647_v17 = vadd.f32 %v1642_v13, %v1490_v45 }
 0x6e5   : > { %v1664_v39 = vpop.permute.xlu1 %1663 }
 0x6e6   : > { %4835 = vtanh.f32 %v1647_v17  ;;  %v1669_v50 = vmul.f32 %v4834_v29, %v1664_v39 }
 0x6e7   : > { %4837 = vtanh.f32 %v1648_v53 }
 0x6e9   : > { %v1666_v40 = vpop.permute.xlu1 %1665 }
 0x6ea   : > { %v1670_v45 = vmul.f32 %v4832_v62, %v1666_v40 }
 0x6f3   : > { %v4836_v35 = vpop.eup %4835 }
 0x6f4   : > { %1655 = vrot.lane.b32.xlu0 %v4836_v35, %s6472_s12  ;;  %v4838_v61 = vpop.eup %4837 }
 0x6f8   : > { %1657 = vrot.lane.b32.xlu0 %v4838_v61, %s6472_s12 }
 0x766   : > { %v1656_v5 = vpop.permute.xlu0 %1655 }
 0x767   : > { %v1661_v22 = vmul.f32 %v1656_v5, %v1651_v4 }
 0x769   : > { %v5739_v44 = vadd.f32 %v1669_v50, %v1661_v22 }
 0x76a   : > { %v1658_v46 = vpop.permute.xlu0 %1657 }
 0x76b   : > { %v1662_v26 = vmul.f32 %v1658_v46, %v1652_v23  ;;  %1675 = vrot.lane.b32.xlu0 %v5739_v44, %s6472_s12  ;;  %v1727_v46 = vsub.s32 5, %v5276_v54 }
 0x76d   : > { %v5743_v0 = vadd.f32 %v1670_v45, %v1662_v26  ;;  %v1717_v45 = vsub.s32 4, %v5276_v54  ;;  %v5760_v26 = vld [vmem:[%s6431_s3] sm:$0xff] }
 0x76f   : > { %1677 = vrot.lane.b32.xlu1 %v5743_v0, %s6472_s12 }
 0x7dd   : > { %v1676_v3 = vpop.permute.xlu0 %1675 }
 0x7de   : > { %v1681_v38 = vsel %vm388_vm0, %v1676_v3, 0.0  ;;  %v1728_v3 = vrot.slane %v5760_v26, %v1727_v46 }
 0x7df   : > { %1682 = vadd.xlane.f32.xlu0 %v1681_v38  ;;  %v1718_v38 = vrot.slane %v5760_v26, %v1717_v45 }
 0x7e1   : > { %v1678_v29 = vpop.permute.xlu1 %1677 }
 0x7e2   : > { %v1684_v13 = vsel %vm388_vm0, %v1678_v29, 0.0  ;;  %v4908_v29 = vld [vmem:[%s6433_s5 + $0x20] sm:$0xff] }
 0x7e3   : > { %1685 = vadd.xlane.f32.xlu1 %v1684_v13  ;;  %v4909_v13 = vld [vmem:[%s6433_s5 + $0x30] sm:$0xff] }
 0x868   : > { %v1683_v17 = vpop.xlane.xlu0 %1682 }
 0x869   : > { %v1687_v53 = vmul.f32 0.03125, %v1683_v17  ;;  %v4910_v17 = vld [vmem:[%s6433_s5] sm:$0xff] }
 0x86b   : > { %v1689_v62 = vsub.f32 %v5739_v44, %v1687_v53  ;;  %v4911_v53 = vld [vmem:[%s6433_s5 + $0x10] sm:$0xff] }
 0x86c   : > { %v1686_v35 = vpop.xlane.xlu1 %1685 }
 0x86d   : > { %v1688_v61 = vmul.f32 0.03125, %v1686_v35  ;;  %v1691_v39 = vmul.f32 %v1689_v62, %v1689_v62 }
 0x86f   : > { %v1690_v4 = vsub.f32 %v5743_v0, %v1688_v61  ;;  %1695 = vrot.lane.b32.xlu0 %v1691_v39, %s6472_s12 }
 0x871   : > { %v1692_v5 = vmul.f32 %v1690_v4, %v1690_v4 }
 0x873   : > { %1697 = vrot.lane.b32.xlu1 %v1692_v5, %s6472_s12 }
 0x8e1   : > { %v1696_v50 = vpop.permute.xlu0 %1695 }
 0x8e2   : > { %v1701_v22 = vsel %vm388_vm0, %v1696_v50, 0.0 }
 0x8e3   : > { %1702 = vadd.xlane.f32.xlu0 %v1701_v22 }
 0x8e5   : > { %v1698_v40 = vpop.permute.xlu1 %1697 }
 0x8e6   : > { %v1704_v23 = vsel %vm388_vm0, %v1698_v40, 0.0 }
 0x8e7   : > { %1705 = vadd.xlane.f32.xlu1 %v1704_v23 }
 0x8f8   : > { %1730 = vrot.lane.b32.xlu1 %v1728_v3, %s5016_s20 }
 0x8f9   : > { %1720 = vrot.lane.b32.xlu0 %v1718_v38, %s5016_s20 }
 0x8fc   : > { %1749 = vrot.lane.b32.xlu1 %v4908_v29, %s5016_s20 }
 0x8fd   : > { %1751 = vrot.lane.b32.xlu0 %v4909_v13, %s5016_s20 }
 0x900   : > { %1745 = vrot.lane.b32.xlu1 %v4910_v17, %s5016_s20 }
 0x901   : > { %1747 = vrot.lane.b32.xlu0 %v4911_v53, %s5016_s20 }
 0x96c   : > { %v1703_v35 = vpop.xlane.xlu0 %1702 }
 0x96d   : > { %v1707_v61 = vmul.f32 0.03125, %v1703_v35 }
 0x96f   : > { %v1709_v39 = vadd.f32 1e-05, %v1707_v61 }
 0x970   : > { %v1706_v5 = vpop.xlane.xlu1 %1705  ;;  %v5782_v50 = vpop.permute.xlu0 %1720 }
 0x971   : > { %4839 = vrsqrt.f32 %v1709_v39  ;;  %v1708_v22 = vmul.f32 0.03125, %v1706_v5  ;;  %v5808_v39 = vld [vmem:[%s6433_s5 + $0x38] sm:$0xff] }
 0x972   : > { %4455 = vmatprep.subr.mxu1 %v5808_v39 }
 0x973   : > { %v1710_v40 = vadd.f32 1e-05, %v1708_v22  ;;  %4456 = vmatpush3.msra.mxu1 %v5808_v39 }
 0x974   : > { %v5784_v23 = vpop.permute.xlu1 %1730  ;;  %v5786_v46 = vpop.permute.xlu0 %1751 }
 0x975   : > { %4841 = vrsqrt.f32 %v1710_v40  ;;  %4444 = vmatprep.subr.mxu0 %v5786_v46  ;;  %v6498_v40 = vmov 0.0  }
 0x976   : > { %4445 = vmatpush3.msra.mxu0 %v5786_v46 }
 0x978   : > { %v5790_v45 = vpop.permute.xlu1 %1749  ;;  %v5792_v3 = vpop.permute.xlu0 %1747 }
 0x979   : > { %4446 = vmatprep.subr.mxu0 %v5790_v45 }
 0x97a   : > { %4447 = vmatpush3.msra.mxu0 %v5790_v45 }
 0x97b   : > { %4448 = vmatprep.subr.mxu0 %v5792_v3 }
 0x97c   : > { %v5797_v38 = vpop.permute.xlu1 %1745  ;;  %4449 = vmatpush3.msra.mxu0 %v5792_v3 }
 0x97d   : > { %4450 = vmatprep.subr.mxu0 %v5797_v38 }
 0x97e   : > { %v4840_v29 = vpop.eup %4839  ;;  %4451 = vmatpush3.msra.mxu0 %v5797_v38 }
 0x97f   : > { %4466 = vmatprep.subr.mxu0 %v5298_v19  ;;  %v1713_v13 = vmul.f32 %v4840_v29, %v1689_v62  ;;  %v5829_v29 = vld [vmem:[%s6433_s5 + $0x28] sm:$0xff] }
 0x980   : > { %4457 = vmatprep.subr.mxu1 %v5829_v29 }
 0x981   : > { %v1723_v17 = vmul.f32 %v5782_v50, %v1713_v13  ;;  %4458 = vmatpush3.msra.mxu1 %v5829_v29  ;;  %v5836_v13 = vld [vmem:[%s6433_s5 + $0x18] sm:$0xff] }
 0x982   : > { %v4842_v53 = vpop.eup %4841  ;;  %4459 = vmatprep.subr.mxu1 %v5836_v13 }
 0x983   : > { %v1733_v35 = vadd.f32 %v5784_v23, %v1723_v17  ;;  %v1714_v61 = vmul.f32 %v4842_v53, %v1690_v4  ;;  %4460 = vmatpush3.msra.mxu1 %v5836_v13  ;;  %v5843_v17 = vld [vmem:[%s6433_s5 + $0x8] sm:$0xff]  ;;  %v1737_v53 = vsub.s32 6, %v5276_v54 }
 0x984   : > { %4461 = vmatprep.subr.mxu1 %v5843_v17 }
 0x985   : > { %1741 = vrot.lane.b32.xlu0 %v1733_v35, %s6472_s12  ;;  %v1724_v5 = vmul.f32 %v5782_v50, %v1714_v61  ;;  %4462 = vmatpush3.msra.mxu1 %v5843_v17  ;;  %v5850_v35 = vrot.slane %v5760_v26, %v1737_v53 }
 0x986   : > { %4477 = vmatprep.subr.mxu1 %v6498_v40 }
 0x987   : > { %v1734_v62 = vadd.f32 %v5784_v23, %v1724_v5 }
 0x989   : > { %1743 = vrot.lane.b32.xlu1 %v1734_v62, %s6472_s12 }
 0x9f7   : > { %v1742_v22 = vpop.permute.xlu0 %1741 }
 0x9f8   : > { %4452 = vmatprep.mubr.msk.f32.mxu0 %vm388_vm0, %v1742_v22 }
 0x9fb   : > { %v1744_v4 = vpop.permute.xlu1 %1743 }
 0x9fc   : > { %4453 = vmatmul.mubr.msk.f32.vlgmr.msra.gmra.mxu0 %vm388_vm0, %v1744_v4 }
 0x9fd   : > { %4467 = vmatpush3.msra.mxu0 %v5298_v19 }
 0x9fe   : > { %4468 = vmatprep.subr.mxu0 %v5296_v18 }
 0x9ff   : > { %4469 = vmatpush3.msra.mxu0 %v5296_v18 }
 0xa00   : > { %4470 = vmatprep.subr.mxu0 %v5306_v32 }
 0xa01   : > { %4471 = vmatpush3.msra.mxu0 %v5306_v32 }
 0xa02   : > { %4472 = vmatprep.subr.mxu0 %v5360_v30 }
 0xa03   : > { %4473 = vmatpush3.msra.mxu0 %v5360_v30 }
 0xa04   : > { %4496 = vmatprep.subr.mxu0 %v6498_v40 }
 0xabc   : > { %v4454_v61 = vpop.f32.mrf.mxu0 }
 0xabd   : > { %v1833_v5 = vadd.f32 %v4454_v61, %v5850_v35 }
 0xabe   : > { %v1827_v62 = vpop.f32.mrf.mxu0 }
 0xabf   : > { %v1828_v22 = vadd.f32 %v1827_v62, %v5850_v35  ;;  %v1837_v30 = vmax.f32 %v1833_v5, 0.0 }
 0xac1   : > { %v1836_v4 = vmax.f32 %v1828_v22, 0.0 }
 0xac3   : > { %4463 = vmatprep.mubr.msk.f32.mxu1 %vm388_vm0, %v1836_v4 }
 0xac4   : > { %4464 = vmatmul.mubr.msk.f32.vlgmr.msra.gmra.mxu1 %vm388_vm0, %v1837_v30  ;;  %v1931_v30 = vsub.s32 7, %v5276_v54 }
 0xac5   : > { %4478 = vmatpush3.xpose.msk.msra.mxu1 %vm388_vm0, %v5425_v25  ;;  %4493 = vmatprep.mubr.msk.f32.mxu1 %vm5014_vm1, %v6498_v40 }
 0xac6   : > { %4479 = vmatprep.subr.mxu1 %v6498_v40  ;;  %v1932_v5 = vrot.slane %v5760_v26, %v1931_v30 }
 0xac9   : > { %4480 = vmatpush3.xpose.msk.msra.mxu1 %vm388_vm0, %v5432_v36 }
 0xaca   : > { %4481 = vmatprep.subr.mxu1 %v6498_v40 }
 0xacd   : > { %4482 = vmatpush3.xpose.msk.msra.mxu1 %vm388_vm0, %v5419_v12 }
 0xace   : > { %4483 = vmatprep.subr.mxu1 %v6498_v40 }
 0xad1   : > { %4484 = vmatpush3.xpose.msk.msra.mxu1 %vm388_vm0, %v5423_v15 }
 0xad2   : > { %4485 = vmatprep.subr.mxu1 %v6498_v40 }
 0xad5   : > { %4486 = vmatpush3.xpose.msk.msra.mxu1 %vm388_vm0, %v5415_v10 }
 0xad6   : > { %4487 = vmatprep.subr.mxu1 %v6498_v40 }
 0xad9   : > { %4488 = vmatpush3.xpose.msk.msra.mxu1 %vm388_vm0, %v5417_v11 }
 0xada   : > { %4489 = vmatprep.subr.mxu1 %v6498_v40 }
 0xadd   : > { %4490 = vmatpush3.xpose.msk.msra.mxu1 %vm388_vm0, %v5411_v33 }
 0xade   : > { %4491 = vmatprep.subr.mxu1 %v6498_v40 }
 0xae1   : > { %4492 = vmatpush3.xpose.msk.msra.mxu1 %vm388_vm0, %v5413_v6 }
 0xae2   : > { %4534 = vmatprep.subr.mxu1 %v6498_v40 }
 0xb84   : > { %v4465_v53 = vpop.f32.mrf.mxu1 }
 0xb85   : > { %1923 = vrot.lane.b32.xlu1 %v4465_v53, %s5016_s20 }
 0xb86   : > { %v1910_v61 = vpop.f32.mrf.mxu1 }
 0xb87   : > { %1921 = vrot.lane.b32.xlu0 %v1910_v61, %s5016_s20 }
 0xb8b   : > { %1934 = vrot.lane.b32.xlu0 %v1932_v5, %s5016_s20 }
 0xbf7   : > { %v1924_v62 = vpop.permute.xlu1 %1923 }
 0xbf8   : > { %v1928_v4 = vadd.f32 %v1924_v62, %v5743_v0 }
 0xbf9   : > { %v1922_v22 = vpop.permute.xlu0 %1921 }
 0xbfa   : > { %v1927_v6 = vadd.f32 %v1922_v22, %v5739_v44 }
 0xbfd   : > { %v5889_v33 = vpop.permute.xlu0 %1934 }
 0xbfe   : > { %6499 = vst [vmem:[#allocation29_spill] sm:$0xff] %v5889_v33  ;;  %v5892_v54 = vadd.f32 %v5889_v33, %v1928_v4  ;;  %v5895_v53 = vadd.f32 %v5889_v33, %v1927_v6 }
 0xc00   : > { %1943 = vrot.lane.b32.xlu0 %v5892_v54, %s6472_s12  ;;  %1941 = vrot.lane.b32.xlu1 %v5895_v53, %s6472_s12 }
 0xc72   : > { %v5901_v26 = vpop.permute.xlu0 %1943  ;;  %v5903_v30 = vpop.permute.xlu1 %1941 }
 0xc73   : > { %v1950_v44 = vsel %vm388_vm0, %v5901_v26, 0.0  ;;  %v1947_v0 = vsel %vm388_vm0, %v5903_v30, 0.0 }
 0xc74   : > { %1951 = vadd.xlane.f32.xlu0 %v1950_v44  ;;  %1948 = vadd.xlane.f32.xlu1 %v1947_v0 }
 0xcfd   : > { %v1952_v6 = vpop.xlane.xlu0 %1951  ;;  %v1949_v61 = vpop.xlane.xlu1 %1948 }
 0xcfe   : > { %v1954_v5 = vmul.f32 0.03125, %v1952_v6  ;;  %v1953_v62 = vmul.f32 0.03125, %v1949_v61 }
 0xd00   : > { %v1956_v22 = vsub.f32 %v5892_v54, %v1954_v5  ;;  %v1955_v4 = vsub.f32 %v5895_v53, %v1953_v62 }
 0xd02   : > { %v1958_v33 = vmul.f32 %v1956_v22, %v1956_v22  ;;  %v1957_v11 = vmul.f32 %v1955_v4, %v1955_v4 }
 0xd04   : > { %1963 = vrot.lane.b32.xlu1 %v1958_v33, %s6472_s12  ;;  %1961 = vrot.lane.b32.xlu0 %v1957_v11, %s6472_s12 }
 0xd76   : > { %v1962_v10 = vpop.permute.xlu0 %1961  ;;  %v1964_v15 = vpop.permute.xlu1 %1963 }
 0xd77   : > { %v1967_v12 = vsel %vm388_vm0, %v1962_v10, 0.0  ;;  %v1970_v44 = vsel %vm388_vm0, %v1964_v15, 0.0 }
 0xd78   : > { %1968 = vadd.xlane.f32.xlu1 %v1967_v12  ;;  %1971 = vadd.xlane.f32.xlu0 %v1970_v44 }
 0xd89   : > { %1988 = vrot.lane.b32.xlu1 %v5341_v2, %s5016_s20 }
 0xd8e   : > { %1982 = vrot.lane.b32.xlu0 %v5334_v58, %s5016_s20 }
 0xe01   : > { %v1972_v0 = vpop.xlane.xlu0 %1971  ;;  %v1969_v6 = vpop.xlane.xlu1 %1968 }
 0xe02   : > { %v1974_v61 = vmul.f32 0.03125, %v1972_v0  ;;  %v1973_v33 = vmul.f32 0.03125, %v1969_v6 }
 0xe04   : > { %v1976_v5 = vadd.f32 1e-05, %v1974_v61  ;;  %v1975_v11 = vadd.f32 1e-05, %v1973_v33 }
 0xe05   : > { %v5919_v10 = vpop.permute.xlu0 %1982  ;;  %v5921_v36 = vpop.permute.xlu1 %1988 }
 0xe06   : > { %4843 = vrsqrt.f32 %v1976_v5 }
 0xe07   : > { %4845 = vrsqrt.f32 %v1975_v11 }
 0xe13   : > { %v4844_v62 = vpop.eup %4843 }
 0xe14   : > { %v4846_v15 = vpop.eup %4845  ;;  %v1980_v12 = vmul.f32 %v4844_v62, %v1956_v22 }
 0xe15   : > { %v1979_v44 = vmul.f32 %v4846_v15, %v1955_v4 }
 0xe16   : > { %v1986_v2 = vmul.f32 %v5919_v10, %v1980_v12 }
 0xe17   : > { %v1985_v58 = vmul.f32 %v5919_v10, %v1979_v44 }
 0xe18   : > { %v1992_v25 = vadd.f32 %v5921_v36, %v1986_v2 }
 0xe19   : > { %v1991_v0 = vadd.f32 %v5921_v36, %v1985_v58 }
 0xe1a   : > { %1997 = vrot.lane.b32.xlu0 %v1992_v25, %s6472_s12 }
 0xe1b   : > { %1995 = vrot.lane.b32.xlu1 %v1991_v0, %s6472_s12 }
 0xe8c   : > { %v1998_v6 = vpop.permute.xlu0 %1997 }
 0xe8d   : > { %v1996_v61 = vpop.permute.xlu1 %1995 }
 0xe8e   : > { %4474 = vmatprep.mubr.msk.f32.mxu0 %vm388_vm0, %v1996_v61 }
 0xe8f   : > { %4475 = vmatmul.mubr.msk.f32.vlgmr.msra.gmra.mxu0 %vm388_vm0, %v1998_v6 }
 0xe90   : > { %4497 = vmatpush3.msra.mxu0 %v5508_v9  ;;  %4512 = vmatprep.mubr.msk.f32.mxu0 %vm5014_vm1, %v6498_v40 }
 0xe91   : > { %4498 = vmatprep.subr.mxu0 %v6498_v40 }
 0xe92   : > { %4499 = vmatpush3.msra.mxu0 %v5511_v16 }
 0xe93   : > { %4500 = vmatprep.subr.mxu0 %v6498_v40 }
 0xe94   : > { %4501 = vmatpush3.msra.mxu0 %v5506_v1 }
 0xe95   : > { %4502 = vmatprep.subr.mxu0 %v6498_v40 }
 0xe96   : > { %4503 = vmatpush3.msra.mxu0 %v5519_v47 }
 0xe97   : > { %4504 = vmatprep.subr.mxu0 %v6498_v40 }
 0xe98   : > { %4505 = vmatpush3.msra.mxu0 %v5517_v24 }
 0xe99   : > { %4506 = vmatprep.subr.mxu0 %v6498_v40 }
 0xe9a   : > { %4507 = vmatpush3.msra.mxu0 %v5525_v48 }
 0xe9b   : > { %4508 = vmatprep.subr.mxu0 %v6498_v40 }
 0xe9c   : > { %4509 = vmatpush3.msra.mxu0 %v5529_v49 }
 0xe9d   : > { %4510 = vmatprep.subr.mxu0 %v6498_v40 }
 0xe9e   : > { %4511 = vmatpush3.msra.mxu0 %v5533_v43 }
 0xe9f   : > { %4515 = vmatprep.subr.mxu0 %v6498_v40 }
 0xf4f   : > { %v5949_v25 = vpop.f32.mrf.mxu0 }
 0xf51   : > { %v2069_v22 = vpop.f32.mrf.mxu0 }
 0xf52   : > { %4494 = vmatmul.mubr.msk.f32.vlgmr.msra.gmra.mxu1 %vm388_vm0, %v2069_v22 }
 0xf53   : > { %4535 = vmatpush3.msra.mxu1 %v5591_v31  ;;  %4550 = vmatprep.mubr.msk.f32.mxu1 %vm5014_vm1, %v6498_v40 }
 0xf54   : > { %4536 = vmatprep.subr.mxu1 %v6498_v40 }
 0xf55   : > { %4537 = vmatpush3.msra.mxu1 %v5596_v7 }
 0xf56   : > { %4538 = vmatprep.subr.mxu1 %v6498_v40 }
 0xf57   : > { %4539 = vmatpush3.msra.mxu1 %v5602_v8 }
 0xf58   : > { %4540 = vmatprep.subr.mxu1 %v6498_v40 }
 0xf59   : > { %4541 = vmatpush3.msra.mxu1 %v5607_v63 }
 0xf5a   : > { %4542 = vmatprep.subr.mxu1 %v6498_v40 }
 0xf5b   : > { %4543 = vmatpush3.msra.mxu1 %v5613_v21 }
 0xf5c   : > { %4544 = vmatprep.subr.mxu1 %v6498_v40 }
 0xf5d   : > { %4545 = vmatpush3.msra.mxu1 %v5618_v34 }
 0xf5e   : > { %4546 = vmatprep.subr.mxu1 %v6498_v40 }
 0xf5f   : > { %4547 = vmatpush3.msra.mxu1 %v5623_v14 }
 0xf60   : > { %4548 = vmatprep.subr.mxu1 %v6498_v40 }
 0xf61   : > { %4549 = vmatpush3.msra.mxu1 %v5628_v27 }
 0xf62   : > { %4553 = vmatprep.subr.mxu1 %v5637_v37 }
0x1012   : > { %v2147_v4 = vpop.f32.mrf.mxu1 }
0x1013   : > { %v2151_v33 = vsel %vm1063_vm2, %v2147_v4, -inf }
0x1014   : > { %v2152_v5 = vrot.slane %v2151_v33, 4  ;;  %v4495_v11 = vpop.f32.mrf.mxu1 }
0x1016   : > { %v2153_v62 = vmax.f32 %v2151_v33, %v2152_v5 }
0x1018   : > { %v2154_v15 = vrot.slane %v2153_v62, 2 }
0x101a   : > { %v2155_v12 = vmax.f32 %v2153_v62, %v2154_v15 }
0x101c   : > { %v2156_v44 = vrot.slane %v2155_v12, 1 }
0x101e   : > { %v2157_v2 = vmax.f32 %v2155_v12, %v2156_v44 }
0x1020   : > { %v2158_v58 = vsub.f32 %v2147_v4, %v2157_v2 }
0x1022   : > { %v2159_v0 = vmul.f32 1.442695, %v2158_v58 }
0x1024   : > { %4847 = vpow2.f32 %v2159_v0 }
0x1031   : > { %v4848_v6 = vpop.eup %4847 }
0x1032   : > { %v2161_v61 = vsel %vm1063_vm2, %v4848_v6, 0.0 }
0x1033   : > { %v2162_v22 = vrot.slane %v2161_v61, 4 }
0x1035   : > { %v2163_v27 = vadd.f32 %v2162_v22, %v2161_v61  ;;  %v6502_v61 = vld [vmem:[#allocation28_spill] sm:$0xff] }
0x1037   : > { %v2164_v14 = vrot.slane %v2163_v27, 2 }
0x1039   : > { %v2165_v34 = vadd.f32 %v2164_v14, %v2163_v27 }
0x103b   : > { %v2166_v21 = vrot.slane %v2165_v34, 1 }
0x103d   : > { %v2167_v63 = vadd.f32 %v2166_v21, %v2165_v34 }
0x103f   : > { %4849 = vrcp.f32 %v2167_v63  ;;  %v6501_v63 = vld [vmem:[#allocation27_spill] sm:$0xff] }
0x104c   : > { %v4850_v8 = vpop.eup %4849 }
0x104d   : > { %v2169_v11 = vmul.f32 %v4850_v8, %v4848_v6  ;;  %v6500_v8 = vld [vmem:[#allocation26_spill] sm:$0xff] }
0x104f   : > { %v2170_v33 = vadd.f32 1e-08, %v2169_v11 }
0x1051   : > { %v2171_v5 = vsel %vm1063_vm2, %v2170_v33, 0.0 }
0x1052   : > { %v2172_v62 = vrot.slane %v2171_v5, 4 }
0x1054   : > { %v2173_v15 = vadd.f32 %v2172_v62, %v2171_v5 }
0x1056   : > { %v2174_v4 = vrot.slane %v2173_v15, 2 }
0x1058   : > { %v2175_v12 = vadd.f32 %v2174_v4, %v2173_v15 }
0x105a   : > { %v2176_v44 = vrot.slane %v2175_v12, 1 }
0x105c   : > { %v2177_v2 = vadd.f32 %v2176_v44, %v2175_v12 }
0x105e   : > { %4851 = vrcp.f32 %v2177_v2 }
0x106b   : > { %v4852_v58 = vpop.eup %4851 }
0x106c   : > { %v2179_v0 = vmul.f32 %v4852_v58, %v2170_v33 }
0x106e   : > { %4513 = vmatmul.mubr.msk.f32.vlgmr.msra.gmra.mxu0 %vm1063_vm2, %v2179_v0 }
0x106f   : > { %4516 = vmatpush3.xpose.msk.msra.mxu0 %vm388_vm0, %v5550_v20  ;;  %4531 = vmatprep.mubr.msk.f32.mxu0 %vm5014_vm1, %v6498_v40 }
0x1070   : > { %4517 = vmatprep.subr.mxu0 %v6498_v40 }
0x1073   : > { %4518 = vmatpush3.xpose.msk.msra.mxu0 %vm388_vm0, %v5554_v60 }
0x1074   : > { %4519 = vmatprep.subr.mxu0 %v6498_v40 }
0x1077   : > { %4520 = vmatpush3.xpose.msk.msra.mxu0 %vm388_vm0, %v5546_v57 }
0x1078   : > { %4521 = vmatprep.subr.mxu0 %v6498_v40 }
0x107b   : > { %4522 = vmatpush3.xpose.msk.msra.mxu0 %vm388_vm0, %v5548_v59 }
0x107c   : > { %4523 = vmatprep.subr.mxu0 %v6498_v40 }
0x107f   : > { %4524 = vmatpush3.xpose.msk.msra.mxu0 %vm388_vm0, %v5542_v55 }
0x1080   : > { %4525 = vmatprep.subr.mxu0 %v6498_v40 }
0x1083   : > { %4526 = vmatpush3.xpose.msk.msra.mxu0 %vm388_vm0, %v5544_v56 }
0x1084   : > { %4527 = vmatprep.subr.mxu0 %v6498_v40 }
0x1087   : > { %4528 = vmatpush3.xpose.msk.msra.mxu0 %vm388_vm0, %v5538_v52 }
0x1088   : > { %4529 = vmatprep.subr.mxu0 %v6498_v40 }
0x108b   : > { %4530 = vmatpush3.xpose.msk.msra.mxu0 %vm388_vm0, %v5540_v51 }
0x108c   : > { %4564 = vmatprep.subr.mxu0 %v5682_v41 }
0x108e   : > { %4532 = vmatmul.mubr.msk.f32.vlgmr.msra.gmra.mxu0 %vm388_vm0, %v5949_v25 }
0x108f   : > { %4565 = vmatpush3.msra.mxu0 %v5682_v41  ;;  %4572 = vmatprep.mubr.msk.f32.mxu0 %vm388_vm0, %v5903_v30 }
0x1090   : > { %4566 = vmatprep.subr.mxu0 %v5687_v42 }
0x1091   : > { %4567 = vmatpush3.msra.mxu0 %v5687_v42 }
0x1092   : > { %4568 = vmatprep.subr.mxu0 %v6500_v8 }
0x1093   : > { %4569 = vmatpush3.msra.mxu0 %v6500_v8 }
0x1094   : > { %4570 = vmatprep.subr.mxu0 %v6501_v63 }
0x1095   : > { %4571 = vmatpush3.msra.mxu0 %v6501_v63 }
0x1096   : > { %4573 = vmatmul.mubr.msk.f32.vlgmr.msra.gmra.mxu0 %vm388_vm0, %v5901_v26  ;;  %4586 = vmatprep.subr.mxu0 %v5808_v39 }
0x1097   : > { %4587 = vmatpush3.msra.mxu0 %v5808_v39 }
0x1098   : > { %4588 = vmatprep.subr.mxu0 %v5829_v29 }
0x1099   : > { %4589 = vmatpush3.msra.mxu0 %v5829_v29 }
0x109a   : > { %4590 = vmatprep.subr.mxu0 %v5836_v13 }
0x109b   : > { %4591 = vmatpush3.msra.mxu0 %v5836_v13 }
0x109c   : > { %4592 = vmatprep.subr.mxu0 %v5843_v17 }
0x109d   : > { %4593 = vmatpush3.msra.mxu0 %v5843_v17 }
0x109e   : > { %4608 = vmatprep.subr.mxu0 %v6498_v40 }
0x112e   : > { %v2249_v21 = vpop.f32.mrf.mxu0 }
0x1130   : > { %v4514_v34 = vpop.f32.mrf.mxu0 }
0x114e   : > { %v2322_v14 = vpop.f32.mrf.mxu0 }
0x114f   : > { %v2326_v27 = vsel %vm1063_vm2, %v2322_v14, -inf }
0x1150   : > { %v2327_v39 = vrot.slane %v2326_v27, 4  ;;  %v4533_v26 = vpop.f32.mrf.mxu0 }
0x1152   : > { %v2328_v30 = vmax.f32 %v2326_v27, %v2327_v39 }
0x1154   : > { %v2329_v25 = vrot.slane %v2328_v30, 2 }
0x1156   : > { %v2330_v29 = vmax.f32 %v2328_v30, %v2329_v25  ;;  %v4574_v6 = vpop.f32.mrf.mxu0 }
0x1157   : > { %v2585_v22 = vadd.f32 %v4574_v6, %v6502_v61 }
0x1158   : > { %v2331_v13 = vrot.slane %v2330_v29, 1  ;;  %v2579_v11 = vpop.f32.mrf.mxu0 }
0x1159   : > { %v2580_v33 = vadd.f32 %v2579_v11, %v6502_v61  ;;  %2606 = vrot.lane.b32.xlu0 %v2585_v22, %s5012_s26 }
0x115a   : > { %v2332_v17 = vmax.f32 %v2330_v29, %v2331_v13 }
0x115b   : > { %2604 = vrot.lane.b32.xlu1 %v2580_v33, %s5012_s26 }
0x115c   : > { %v2333_v5 = vsub.f32 %v2322_v14, %v2332_v17 }
0x115e   : > { %v2334_v62 = vmul.f32 1.442695, %v2333_v5 }
0x1160   : > { %4853 = vpow2.f32 %v2334_v62  ;;  %v6503_v62 = vld [vmem:[#allocation23_spill] sm:$0xff] }
0x116d   : > { %v4854_v15 = vpop.eup %4853 }
0x116e   : > { %v2336_v4 = vsel %vm1063_vm2, %v4854_v15, 0.0 }
0x116f   : > { %v2337_v12 = vrot.slane %v2336_v4, 4 }
0x1171   : > { %v2338_v44 = vadd.f32 %v2337_v12, %v2336_v4  ;;  %v6505_v4 = vld [vmem:[#allocation25_spill] sm:$0xff] }
0x1173   : > { %v2339_v2 = vrot.slane %v2338_v44, 2 }
0x1175   : > { %v2340_v58 = vadd.f32 %v2339_v2, %v2338_v44 }
0x1177   : > { %v2341_v0 = vrot.slane %v2340_v58, 1 }
0x1179   : > { %v2342_v34 = vadd.f32 %v2341_v0, %v2340_v58 }
0x117b   : > { %4855 = vrcp.f32 %v2342_v34 }
0x1188   : > { %v4856_v27 = vpop.eup %4855 }
0x1189   : > { %v2344_v39 = vmul.f32 %v4856_v27, %v4854_v15  ;;  %v6504_v15 = vld [vmem:[#allocation24_spill] sm:$0xff] }
0x118b   : > { %v2345_v26 = vadd.f32 1e-08, %v2344_v39 }
0x118d   : > { %v2346_v30 = vsel %vm1063_vm2, %v2345_v26, 0.0 }
0x118e   : > { %v2347_v25 = vrot.slane %v2346_v30, 4 }
0x1190   : > { %v2348_v29 = vadd.f32 %v2347_v25, %v2346_v30 }
0x1192   : > { %v2349_v14 = vrot.slane %v2348_v29, 2 }
0x1194   : > { %v2350_v6 = vadd.f32 %v2349_v14, %v2348_v29 }
0x1196   : > { %v2351_v13 = vrot.slane %v2350_v6, 1 }
0x1198   : > { %v2352_v11 = vadd.f32 %v2351_v13, %v2350_v6 }
0x119a   : > { %4857 = vrcp.f32 %v2352_v11 }
0x11a7   : > { %v4858_v17 = vpop.eup %4857 }
0x11a8   : > { %v2354_v5 = vmul.f32 %v4858_v17, %v2345_v26 }
0x11aa   : > { %4551 = vmatmul.mubr.msk.f32.vlgmr.msra.gmra.mxu1 %vm1063_vm2, %v2354_v5 }
0x11ab   : > { %4554 = vmatpush3.msra.mxu1 %v5637_v37  ;;  %4561 = vmatprep.mubr.msk.f32.mxu1 %vm388_vm0, %v2249_v21 }
0x11ac   : > { %4555 = vmatprep.subr.mxu1 %v6503_v62 }
0x11ad   : > { %4556 = vmatpush3.msra.mxu1 %v6503_v62 }
0x11ae   : > { %4557 = vmatprep.subr.mxu1 %v6504_v15 }
0x11af   : > { %4558 = vmatpush3.msra.mxu1 %v6504_v15 }
0x11b0   : > { %4559 = vmatprep.subr.mxu1 %v6505_v4 }
0x11b1   : > { %4560 = vmatpush3.msra.mxu1 %v6505_v4 }
0x11b2   : > { %4575 = vmatprep.subr.mxu1 %v5786_v46 }
0x11cb   : > { %v2607_v6 = vpop.permute.xlu0 %2606 }
0x11cd   : > { %v2605_v17 = vpop.permute.xlu1 %2604 }
0x126a   : > { %v2424_v12 = vpop.f32.mrf.mxu1 }
0x126b   : > { %4562 = vmatmul.mubr.msk.f32.vlgmr.msra.gmra.mxu1 %vm388_vm0, %v2424_v12 }
0x126c   : > { %4576 = vmatpush3.msra.mxu1 %v5786_v46  ;;  %v4552_v37 = vpop.f32.mrf.mxu1 }
0x126d   : > { %4577 = vmatprep.subr.mxu1 %v5790_v45 }
0x126e   : > { %4578 = vmatpush3.msra.mxu1 %v5790_v45 }
0x126f   : > { %4579 = vmatprep.subr.mxu1 %v5792_v3 }
0x1270   : > { %4580 = vmatpush3.msra.mxu1 %v5792_v3 }
0x1271   : > { %4581 = vmatprep.subr.mxu1 %v5797_v38 }
0x1272   : > { %4582 = vmatpush3.msra.mxu1 %v5797_v38 }
0x1273   : > { %4597 = vmatprep.subr.mxu1 %v5298_v19 }
0x132b   : > { %v4563_v21 = vpop.f32.mrf.mxu1 }
0x132c   : > { %v2506_v44 = vadd.f32 %v4563_v21, %v5727_v28 }
0x132d   : > { %v2500_v2 = vpop.f32.mrf.mxu1 }
0x132e   : > { %v2589_v58 = vadd.f32 %v2585_v22, %v2506_v44  ;;  %v2501_v0 = vadd.f32 %v2500_v2, %v5727_v28 }
0x1330   : > { %v4035_v34 = vmul.f32 -1.442695, %v2589_v58  ;;  %v2588_v27 = vadd.f32 %v2580_v33, %v2501_v0 }
0x1332   : > { %4859 = vpow2.f32 %v4035_v34  ;;  %v4034_v39 = vmul.f32 -1.442695, %v2588_v27 }
0x1334   : > { %4861 = vpow2.f32 %v4034_v39 }
0x133f   : > { %v4860_v26 = vpop.eup %4859 }
0x1340   : > { %v2597_v30 = vadd.f32 1.0, %v4860_v26 }
0x1341   : > { %v4862_v25 = vpop.eup %4861 }
0x1342   : > { %4863 = vrcp.f32 %v2597_v30  ;;  %v2596_v29 = vadd.f32 1.0, %v4862_v25 }
0x1344   : > { %4865 = vrcp.f32 %v2596_v29 }
0x134f   : > { %v4864_v14 = vpop.eup %4863 }
0x1350   : > { %v2611_v13 = vmul.f32 %v4864_v14, %v2607_v6  ;;  %v2625_v37 = vsub.f32 1.0, %v4864_v14  ;;  %v2637_v2 = vmul.f32 %v4864_v14, %v5892_v54 }
0x1351   : > { %v4866_v11 = vpop.eup %4865 }
0x1352   : > { %2616 = vrot.lane.b32.xlu0 %v2611_v13, %s5012_s26  ;;  %v2610_v22 = vmul.f32 %v4866_v11, %v2605_v17  ;;  %v2624_v34 = vsub.f32 1.0, %v4866_v11 }
0x1354   : > { %2614 = vrot.lane.b32.xlu1 %v2610_v22, %s5012_s26 }
0x13c4   : > { %v2617_v33 = vpop.permute.xlu0 %2616 }
0x13c5   : > { %v2621_v5 = vadd.f32 %v2617_v33, %v2506_v44  ;;  %v2636_v44 = vmul.f32 %v4866_v11, %v5895_v53 }
0x13c6   : > { %v2615_v62 = vpop.permute.xlu1 %2614 }
0x13c7   : > { %4867 = vtanh.f32 %v2621_v5  ;;  %v2620_v15 = vadd.f32 %v2615_v62, %v2501_v0 }
0x13c9   : > { %4869 = vtanh.f32 %v2620_v15 }
0x13d4   : > { %v4868_v4 = vpop.eup %4867 }
0x13d5   : > { %2630 = vrot.lane.b32.xlu0 %v4868_v4, %s6472_s12 }
0x13d6   : > { %v4870_v12 = vpop.eup %4869 }
0x13d7   : > { %2628 = vrot.lane.b32.xlu1 %v4870_v12, %s6472_s12 }
0x1447   : > { %v2631_v21 = vpop.permute.xlu0 %2630 }
0x1448   : > { %v2635_v58 = vmul.f32 %v2631_v21, %v2625_v37 }
0x1449   : > { %v2629_v27 = vpop.permute.xlu1 %2628 }
0x144a   : > { %v6055_v39 = vadd.f32 %v2637_v2, %v2635_v58  ;;  %v2634_v26 = vmul.f32 %v2629_v27, %v2624_v34 }
0x144c   : > { %v6058_v0 = vadd.f32 %v2636_v44, %v2634_v26  ;;  %2644 = vrot.lane.b32.xlu0 %v6055_v39, %s6472_s12 }
0x144e   : > { %2642 = vrot.lane.b32.xlu1 %v6058_v0, %s6472_s12 }
0x14be   : > { %v2645_v30 = vpop.permute.xlu0 %2644 }
0x14bf   : > { %v2651_v25 = vsel %vm388_vm0, %v2645_v30, 0.0 }
0x14c0   : > { %2652 = vadd.xlane.f32.xlu0 %v2651_v25  ;;  %v2643_v54 = vpop.permute.xlu1 %2642 }
0x14c1   : > { %v2648_v29 = vsel %vm388_vm0, %v2643_v54, 0.0 }
0x14c2   : > { %2649 = vadd.xlane.f32.xlu1 %v2648_v29 }
0x1549   : > { %v2653_v14 = vpop.xlane.xlu0 %2652 }
0x154a   : > { %v2655_v6 = vmul.f32 0.03125, %v2653_v14 }
0x154b   : > { %v2650_v53 = vpop.xlane.xlu1 %2649 }
0x154c   : > { %v2657_v13 = vsub.f32 %v6055_v39, %v2655_v6  ;;  %v2654_v11 = vmul.f32 0.03125, %v2650_v53 }
0x154e   : > { %v2659_v17 = vmul.f32 %v2657_v13, %v2657_v13  ;;  %v2656_v22 = vsub.f32 %v6058_v0, %v2654_v11 }
0x1550   : > { %v2658_v33 = vmul.f32 %v2656_v22, %v2656_v22  ;;  %2664 = vrot.lane.b32.xlu1 %v2659_v17, %s6472_s12 }
0x1552   : > { %2662 = vrot.lane.b32.xlu0 %v2658_v33, %s6472_s12 }
0x15c2   : > { %v2665_v5 = vpop.permute.xlu1 %2664 }
0x15c3   : > { %v2671_v62 = vsel %vm388_vm0, %v2665_v5, 0.0 }
0x15c4   : > { %v2663_v15 = vpop.permute.xlu0 %2662  ;;  %2672 = vadd.xlane.f32.xlu0 %v2671_v62  ;;  %v6509_v62 = vld [vmem:[#allocation13_spill] sm:$0xff] }
0x15c5   : > { %v2668_v4 = vsel %vm388_vm0, %v2663_v15, 0.0  ;;  %v6510_v15 = vld [vmem:[#allocation14_spill] sm:$0xff] }
0x15c6   : > { %2669 = vadd.xlane.f32.xlu1 %v2668_v4  ;;  %v6511_v4 = vld [vmem:[#allocation11_spill] sm:$0xff] }
0x164d   : > { %v2673_v12 = vpop.xlane.xlu0 %2672 }
0x164e   : > { %v2675_v37 = vmul.f32 0.03125, %v2673_v12  ;;  %v6512_v12 = vld [vmem:[#allocation12_spill] sm:$0xff] }
0x164f   : > { %v2670_v21 = vpop.xlane.xlu1 %2669 }
0x1650   : > { %v2677_v2 = vadd.f32 1e-05, %v2675_v37  ;;  %v2674_v58 = vmul.f32 0.03125, %v2670_v21  ;;  %v6513_v37 = vld [vmem:[#allocation9_spill] sm:$0xff]  ;;  %v6514_v21 = vld [vmem:[#allocation10_spill] sm:$0xff] }
0x1652   : > { %4871 = vrsqrt.f32 %v2677_v2  ;;  %v2676_v34 = vadd.f32 1e-05, %v2674_v58 }
0x1654   : > { %4873 = vrsqrt.f32 %v2676_v34 }
0x165f   : > { %v4872_v27 = vpop.eup %4871 }
0x1660   : > { %v2681_v44 = vmul.f32 %v4872_v27, %v2657_v13  ;;  %v6506_v13 = vld [vmem:[#allocation8_spill] sm:$0xff] }
0x1661   : > { %v4874_v26 = vpop.eup %4873 }
0x1662   : > { %v2683_v30 = vmul.f32 %v2681_v44, %v5782_v50  ;;  %v2680_v25 = vmul.f32 %v4874_v26, %v2656_v22  ;;  %v6515_v26 = vld [vmem:[#allocation29_spill] sm:$0xff] }
0x1664   : > { %v2685_v54 = vadd.f32 %v2683_v30, %v5784_v23  ;;  %v2682_v29 = vmul.f32 %v2680_v25, %v5782_v50 }
0x1666   : > { %2690 = vrot.lane.b32.xlu1 %v2685_v54, %s6472_s12  ;;  %v2684_v14 = vadd.f32 %v2682_v29, %v5784_v23 }
0x1668   : > { %2688 = vrot.lane.b32.xlu0 %v2684_v14, %s6472_s12 }
0x16d8   : > { %v2691_v53 = vpop.permute.xlu1 %2690 }
0x16da   : > { %v2689_v6 = vpop.permute.xlu0 %2688 }
0x16db   : > { %4583 = vmatprep.mubr.msk.f32.mxu1 %vm388_vm0, %v2689_v6 }
0x16dc   : > { %4584 = vmatmul.mubr.msk.f32.vlgmr.msra.gmra.mxu1 %vm388_vm0, %v2691_v53 }
0x16dd   : > { %4598 = vmatpush3.msra.mxu1 %v5298_v19 }
0x16de   : > { %4599 = vmatprep.subr.mxu1 %v5296_v18 }
0x16df   : > { %4600 = vmatpush3.msra.mxu1 %v5296_v18  ;;  %v6507_v18 = vld [vmem:[#allocation15_spill] sm:$0xff] }
0x16e0   : > { %4601 = vmatprep.subr.mxu1 %v5306_v32 }
0x16e1   : > { %4602 = vmatpush3.msra.mxu1 %v5306_v32  ;;  %v6508_v32 = vld [vmem:[#allocation16_spill] sm:$0xff] }
0x16e2   : > { %4603 = vmatprep.subr.mxu1 %v6506_v13 }
0x16e3   : > { %4604 = vmatpush3.msra.mxu1 %v6506_v13 }
0x16e4   : > { %4627 = vmatprep.subr.mxu1 %v6498_v40 }
0x179c   : > { %v4585_v11 = vpop.f32.mrf.mxu1 }
0x179d   : > { %v2768_v17 = vadd.f32 %v4585_v11, %v5850_v35 }
0x179e   : > { %v2762_v22 = vpop.f32.mrf.mxu1 }
0x179f   : > { %v2763_v19 = vadd.f32 %v2762_v22, %v5850_v35  ;;  %v2772_v5 = vmax.f32 %v2768_v17, 0.0 }
0x17a1   : > { %v2771_v33 = vmax.f32 %v2763_v19, 0.0 }
0x17a3   : > { %4594 = vmatprep.mubr.msk.f32.mxu0 %vm388_vm0, %v2771_v33 }
0x17a4   : > { %4595 = vmatmul.mubr.msk.f32.vlgmr.msra.gmra.mxu0 %vm388_vm0, %v2772_v5 }
0x17a5   : > { %4609 = vmatpush3.xpose.msk.msra.mxu0 %vm388_vm0, %v6507_v18  ;;  %4624 = vmatprep.mubr.msk.f32.mxu0 %vm5014_vm1, %v6498_v40 }
0x17a6   : > { %4610 = vmatprep.subr.mxu0 %v6498_v40 }
0x17a9   : > { %4611 = vmatpush3.xpose.msk.msra.mxu0 %vm388_vm0, %v6508_v32 }
0x17aa   : > { %4612 = vmatprep.subr.mxu0 %v6498_v40 }
0x17ad   : > { %4613 = vmatpush3.xpose.msk.msra.mxu0 %vm388_vm0, %v6509_v62 }
0x17ae   : > { %4614 = vmatprep.subr.mxu0 %v6498_v40 }
0x17b1   : > { %4615 = vmatpush3.xpose.msk.msra.mxu0 %vm388_vm0, %v6510_v15 }
0x17b2   : > { %4616 = vmatprep.subr.mxu0 %v6498_v40 }
0x17b5   : > { %4617 = vmatpush3.xpose.msk.msra.mxu0 %vm388_vm0, %v6511_v4 }
0x17b6   : > { %4618 = vmatprep.subr.mxu0 %v6498_v40 }
0x17b9   : > { %4619 = vmatpush3.xpose.msk.msra.mxu0 %vm388_vm0, %v6512_v12 }
0x17ba   : > { %4620 = vmatprep.subr.mxu0 %v6498_v40 }
0x17bd   : > { %4621 = vmatpush3.xpose.msk.msra.mxu0 %vm388_vm0, %v6513_v37 }
0x17be   : > { %4622 = vmatprep.subr.mxu0 %v6498_v40 }
0x17c1   : > { %4623 = vmatpush3.xpose.msk.msra.mxu0 %vm388_vm0, %v6514_v21 }
0x17c2   : > { %4665 = vmatprep.subr.mxu0 %v6498_v40 }
0x1864   : > { %v4596_v2 = vpop.f32.mrf.mxu0 }
0x1865   : > { %2858 = vrot.lane.b32.xlu0 %v4596_v2, %s5016_s20 }
0x1866   : > { %v2845_v58 = vpop.f32.mrf.mxu0 }
0x1867   : > { %2856 = vrot.lane.b32.xlu1 %v2845_v58, %s5016_s20 }
0x18d7   : > { %v2859_v34 = vpop.permute.xlu0 %2858 }
0x18d8   : > { %v2863_v27 = vadd.f32 %v2859_v34, %v6055_v39 }
0x18d9   : > { %v2857_v44 = vpop.permute.xlu1 %2856 }
0x18da   : > { %v6122_v30 = vadd.f32 %v2863_v27, %v6515_v26  ;;  %v2862_v25 = vadd.f32 %v2857_v44, %v6058_v0 }
0x18dc   : > { %v6126_v54 = vadd.f32 %v2862_v25, %v6515_v26  ;;  %2870 = vrot.lane.b32.xlu0 %v6122_v30, %s6472_s12 }
0x18de   : > { %2868 = vrot.lane.b32.xlu1 %v6126_v54, %s6472_s12 }
0x194e   : > { %v6132_v29 = vpop.permute.xlu0 %2870 }
0x194f   : > { %v2877_v39 = vsel %vm388_vm0, %v6132_v29, 0.0 }
0x1950   : > { %2878 = vadd.xlane.f32.xlu0 %v2877_v39  ;;  %v6136_v14 = vpop.permute.xlu1 %2868 }
0x1951   : > { %v2874_v0 = vsel %vm388_vm0, %v6136_v14, 0.0 }
0x1952   : > { %2875 = vadd.xlane.f32.xlu1 %v2874_v0 }
0x19d9   : > { %v2879_v6 = vpop.xlane.xlu0 %2878 }
0x19da   : > { %v2881_v53 = vmul.f32 0.03125, %v2879_v6 }
0x19db   : > { %v2876_v13 = vpop.xlane.xlu1 %2875 }
0x19dc   : > { %v2883_v11 = vsub.f32 %v6122_v30, %v2881_v53  ;;  %v2880_v17 = vmul.f32 0.03125, %v2876_v13 }
0x19de   : > { %v2885_v22 = vmul.f32 %v2883_v11, %v2883_v11  ;;  %v2882_v19 = vsub.f32 %v6126_v54, %v2880_v17 }
0x19e0   : > { %v2884_v33 = vmul.f32 %v2882_v19, %v2882_v19  ;;  %2890 = vrot.lane.b32.xlu1 %v2885_v22, %s6472_s12 }
0x19e2   : > { %2888 = vrot.lane.b32.xlu0 %v2884_v33, %s6472_s12 }
0x1a52   : > { %v2891_v5 = vpop.permute.xlu1 %2890 }
0x1a53   : > { %v2897_v18 = vsel %vm388_vm0, %v2891_v5, 0.0 }
0x1a54   : > { %v2889_v32 = vpop.permute.xlu0 %2888  ;;  %2898 = vadd.xlane.f32.xlu0 %v2897_v18 }
0x1a55   : > { %v2894_v62 = vsel %vm388_vm0, %v2889_v32, 0.0 }
0x1a56   : > { %2895 = vadd.xlane.f32.xlu1 %v2894_v62 }
0x1add   : > { %v2899_v15 = vpop.xlane.xlu0 %2898 }
0x1ade   : > { %v2901_v4 = vmul.f32 0.03125, %v2899_v15 }
0x1adf   : > { %v2896_v12 = vpop.xlane.xlu1 %2895 }
0x1ae0   : > { %v2903_v37 = vadd.f32 1e-05, %v2901_v4  ;;  %v2900_v21 = vmul.f32 0.03125, %v2896_v12 }
0x1ae2   : > { %4875 = vrsqrt.f32 %v2903_v37  ;;  %v2902_v2 = vadd.f32 1e-05, %v2900_v21 }
0x1ae4   : > { %4877 = vrsqrt.f32 %v2902_v2 }
0x1aef   : > { %v4876_v58 = vpop.eup %4875 }
0x1af0   : > { %v2907_v34 = vmul.f32 %v4876_v58, %v2883_v11 }
0x1af1   : > { %v4878_v27 = vpop.eup %4877 }
0x1af2   : > { %v2909_v44 = vmul.f32 %v2907_v34, %v5919_v10  ;;  %v2906_v25 = vmul.f32 %v4878_v27, %v2882_v19 }
0x1af4   : > { %v2911_v39 = vadd.f32 %v2909_v44, %v5921_v36  ;;  %v2908_v0 = vmul.f32 %v2906_v25, %v5919_v10 }
0x1af6   : > { %2916 = vrot.lane.b32.xlu1 %v2911_v39, %s6472_s12  ;;  %v2910_v6 = vadd.f32 %v2908_v0, %v5921_v36 }
0x1af8   : > { %2914 = vrot.lane.b32.xlu0 %v2910_v6, %s6472_s12 }
0x1b68   : > { %v2917_v13 = vpop.permute.xlu1 %2916 }
0x1b6a   : > { %v2915_v53 = vpop.permute.xlu0 %2914 }
0x1b6b   : > { %4605 = vmatprep.mubr.msk.f32.mxu1 %vm388_vm0, %v2915_v53 }
0x1b6c   : > { %4606 = vmatmul.mubr.msk.f32.vlgmr.msra.gmra.mxu1 %vm388_vm0, %v2917_v13 }
0x1b6d   : > { %4628 = vmatpush3.msra.mxu1 %v5508_v9  ;;  %4643 = vmatprep.mubr.msk.f32.mxu1 %vm5014_vm1, %v6498_v40  ;;  %v6516_v9 = vld [vmem:[#allocation17_spill] sm:$0xff] }
0x1b6e   : > { %4629 = vmatprep.subr.mxu1 %v6498_v40 }
0x1b6f   : > { %4630 = vmatpush3.msra.mxu1 %v5511_v16  ;;  %v6517_v16 = vld [vmem:[#allocation18_spill] sm:$0xff] }
0x1b70   : > { %4631 = vmatprep.subr.mxu1 %v6498_v40 }
0x1b71   : > { %4632 = vmatpush3.msra.mxu1 %v5506_v1 }
0x1b72   : > { %4633 = vmatprep.subr.mxu1 %v6498_v40 }
0x1b73   : > { %4634 = vmatpush3.msra.mxu1 %v5519_v47  ;;  %v6519_v47 = vld [vmem:[#allocation20_spill] sm:$0xff] }
0x1b74   : > { %4635 = vmatprep.subr.mxu1 %v6498_v40 }
0x1b75   : > { %4636 = vmatpush3.msra.mxu1 %v5517_v24  ;;  %v6518_v24 = vld [vmem:[#allocation19_spill] sm:$0xff] }
0x1b76   : > { %4637 = vmatprep.subr.mxu1 %v6498_v40 }
0x1b77   : > { %4638 = vmatpush3.msra.mxu1 %v5525_v48  ;;  %v6520_v48 = vld [vmem:[#allocation21_spill] sm:$0xff] }
0x1b78   : > { %4639 = vmatprep.subr.mxu1 %v6498_v40 }
0x1b79   : > { %4640 = vmatpush3.msra.mxu1 %v5529_v49  ;;  %v6521_v49 = vld [vmem:[#allocation22_spill] sm:$0xff] }
0x1b7a   : > { %4641 = vmatprep.subr.mxu1 %v6498_v40 }
0x1b7b   : > { %4642 = vmatpush3.msra.mxu1 %v5533_v43  ;;  %v6195_v43 = vld [vmem:[%s6434_s6 + $0x30] sm:$0xff] }
0x1b7c   : > { %4646 = vmatprep.subr.mxu1 %v6498_v40 }
0x1c2c   : > { %v6172_v36 = vpop.f32.mrf.mxu1 }
0x1c2e   : > { %v2988_v1 = vpop.f32.mrf.mxu1 }
0x1c2f   : > { %4625 = vmatmul.mubr.msk.f32.vlgmr.msra.gmra.mxu0 %vm388_vm0, %v2988_v1 }
0x1c30   : > { %4666 = vmatpush3.msra.mxu0 %v5591_v31  ;;  %4681 = vmatprep.mubr.msk.f32.mxu0 %vm5014_vm1, %v6498_v40 }
0x1c31   : > { %4667 = vmatprep.subr.mxu0 %v6498_v40 }
0x1c32   : > { %4668 = vmatpush3.msra.mxu0 %v5596_v7 }
0x1c33   : > { %4669 = vmatprep.subr.mxu0 %v6498_v40 }
0x1c34   : > { %4670 = vmatpush3.msra.mxu0 %v6516_v9 }
0x1c35   : > { %4671 = vmatprep.subr.mxu0 %v6498_v40 }
0x1c36   : > { %4672 = vmatpush3.msra.mxu0 %v6517_v16 }
0x1c37   : > { %4673 = vmatprep.subr.mxu0 %v6498_v40 }
0x1c38   : > { %4674 = vmatpush3.msra.mxu0 %v6518_v24 }
0x1c39   : > { %4675 = vmatprep.subr.mxu0 %v6498_v40 }
0x1c3a   : > { %4676 = vmatpush3.msra.mxu0 %v6519_v47 }
0x1c3b   : > { %4677 = vmatprep.subr.mxu0 %v6498_v40 }
0x1c3c   : > { %4678 = vmatpush3.msra.mxu0 %v6520_v48 }
0x1c3d   : > { %4679 = vmatprep.subr.mxu0 %v6498_v40 }
0x1c3e   : > { %4680 = vmatpush3.msra.mxu0 %v6521_v49 }
0x1c3f   : > { %4684 = vmatprep.subr.mxu0 %v6195_v43 }
0x1cef   : > { %v3066_v31 = vpop.f32.mrf.mxu0 }
0x1cf0   : > { %v3070_v7 = vsel %vm1063_vm2, %v3066_v31, -inf }
0x1cf1   : > { %v3071_v10 = vrot.slane %v3070_v7, 4  ;;  %v4626_v11 = vpop.f32.mrf.mxu0 }
0x1cf3   : > { %v3072_v17 = vmax.f32 %v3070_v7, %v3071_v10 }
0x1cf5   : > { %v3073_v22 = vrot.slane %v3072_v17, 2 }
0x1cf7   : > { %v3074_v19 = vmax.f32 %v3072_v17, %v3073_v22 }
0x1cf9   : > { %v3075_v33 = vrot.slane %v3074_v19, 1 }
0x1cfb   : > { %v3076_v5 = vmax.f32 %v3074_v19, %v3075_v33 }
0x1cfd   : > { %v3077_v18 = vsub.f32 %v3066_v31, %v3076_v5 }
0x1cff   : > { %v3078_v32 = vmul.f32 1.442695, %v3077_v18 }
0x1d01   : > { %4879 = vpow2.f32 %v3078_v32 }
0x1d0e   : > { %v4880_v62 = vpop.eup %4879 }
0x1d0f   : > { %v3080_v15 = vsel %vm1063_vm2, %v4880_v62, 0.0 }
0x1d10   : > { %v3081_v4 = vrot.slane %v3080_v15, 4 }
0x1d12   : > { %v3082_v12 = vadd.f32 %v3081_v4, %v3080_v15 }
0x1d14   : > { %v3083_v37 = vrot.slane %v3082_v12, 2 }
0x1d16   : > { %v3084_v21 = vadd.f32 %v3083_v37, %v3082_v12 }
0x1d18   : > { %v3085_v2 = vrot.slane %v3084_v21, 1 }
0x1d1a   : > { %v3086_v58 = vadd.f32 %v3085_v2, %v3084_v21 }
0x1d1c   : > { %4881 = vrcp.f32 %v3086_v58 }
0x1d29   : > { %v4882_v34 = vpop.eup %4881 }
0x1d2a   : > { %v3088_v27 = vmul.f32 %v4882_v34, %v4880_v62 }
0x1d2c   : > { %v3089_v44 = vadd.f32 1e-08, %v3088_v27  ;;  %v4917_v27 = vld [vmem:[%s6434_s6 + $0x20] sm:$0xff] }
0x1d2e   : > { %v3090_v25 = vsel %vm1063_vm2, %v3089_v44, 0.0 }
0x1d2f   : > { %v3091_v39 = vrot.slane %v3090_v25, 4 }
0x1d31   : > { %v3092_v0 = vadd.f32 %v3091_v39, %v3090_v25  ;;  %v4919_v25 = vld [vmem:[%s6434_s6] sm:$0xff] }
0x1d33   : > { %v3093_v6 = vrot.slane %v3092_v0, 2 }
0x1d35   : > { %v3094_v53 = vadd.f32 %v3093_v6, %v3092_v0 }
0x1d37   : > { %v3095_v13 = vrot.slane %v3094_v53, 1 }
0x1d39   : > { %v3096_v1 = vadd.f32 %v3095_v13, %v3094_v53 }
0x1d3b   : > { %4883 = vrcp.f32 %v3096_v1 }
0x1d48   : > { %v4884_v9 = vpop.eup %4883 }
0x1d49   : > { %v3098_v16 = vmul.f32 %v4884_v9, %v3089_v44  ;;  %v4918_v44 = vld [vmem:[%s6434_s6 + $0x10] sm:$0xff] }
0x1d4b   : > { %4644 = vmatmul.mubr.msk.f32.vlgmr.msra.gmra.mxu1 %vm1063_vm2, %v3098_v16  ;;  %3099 = vst.msk [vmem:[%s6208_s13] sm:$0xff] %vm1063_vm2, %v3098_v16 }
0x1d4c   : > { %4647 = vmatpush3.xpose.msk.msra.mxu1 %vm388_vm0, %v5550_v20  ;;  %4662 = vmatprep.mubr.msk.f32.mxu1 %vm5014_vm1, %v6498_v40 }
0x1d4d   : > { %4648 = vmatprep.subr.mxu1 %v6498_v40 }
0x1d50   : > { %4649 = vmatpush3.xpose.msk.msra.mxu1 %vm388_vm0, %v5554_v60 }
0x1d51   : > { %4650 = vmatprep.subr.mxu1 %v6498_v40 }
0x1d54   : > { %4651 = vmatpush3.xpose.msk.msra.mxu1 %vm388_vm0, %v5546_v57 }
0x1d55   : > { %4652 = vmatprep.subr.mxu1 %v6498_v40 }
0x1d58   : > { %4653 = vmatpush3.xpose.msk.msra.mxu1 %vm388_vm0, %v5548_v59 }
0x1d59   : > { %4654 = vmatprep.subr.mxu1 %v6498_v40 }
0x1d5c   : > { %4655 = vmatpush3.xpose.msk.msra.mxu1 %vm388_vm0, %v5542_v55  ;;  %v4915_v55 = vld [vmem:[%s6433_s5 + $0x18] sm:$0xff] }
0x1d5d   : > { %4656 = vmatprep.subr.mxu1 %v6498_v40 }
0x1d60   : > { %4657 = vmatpush3.xpose.msk.msra.mxu1 %vm388_vm0, %v5544_v56  ;;  %v4916_v56 = vld [vmem:[%s6433_s5 + $0x8] sm:$0xff] }
0x1d61   : > { %4658 = vmatprep.subr.mxu1 %v6498_v40 }
0x1d64   : > { %4659 = vmatpush3.xpose.msk.msra.mxu1 %vm388_vm0, %v5538_v52  ;;  %v4913_v52 = vld [vmem:[%s6433_s5 + $0x38] sm:$0xff] }
0x1d65   : > { %4660 = vmatprep.subr.mxu1 %v6498_v40 }
0x1d68   : > { %4661 = vmatpush3.xpose.msk.msra.mxu1 %vm388_vm0, %v5540_v51  ;;  %v4914_v51 = vld [vmem:[%s6433_s5 + $0x28] sm:$0xff] }
0x1d69   : > { %4695 = vmatprep.subr.mxu1 %v5682_v41 }
0x1d6b   : > { %4663 = vmatmul.mubr.msk.f32.vlgmr.msra.gmra.mxu1 %vm388_vm0, %v6172_v36 }
0x1d6c   : > { %4696 = vmatpush3.msra.mxu1 %v5682_v41  ;;  %4703 = vmatprep.mubr.msk.f32.mxu1 %vm388_vm0, %v6136_v14 }
0x1d6d   : > { %4697 = vmatprep.subr.mxu1 %v5687_v42 }
0x1d6e   : > { %4698 = vmatpush3.msra.mxu1 %v5687_v42 }
0x1d6f   : > { %4699 = vmatprep.subr.mxu1 %v6500_v8 }
0x1d70   : > { %4700 = vmatpush3.msra.mxu1 %v6500_v8 }
0x1d71   : > { %4701 = vmatprep.subr.mxu1 %v6501_v63 }
0x1d72   : > { %4702 = vmatpush3.msra.mxu1 %v6501_v63 }
0x1d73   : > { %4704 = vmatmul.mubr.msk.f32.vlgmr.msra.gmra.mxu1 %vm388_vm0, %v6132_v29  ;;  %4717 = vmatprep.subr.mxu1 %v4913_v52 }
0x1d74   : > { %4718 = vmatpush3.msra.mxu1 %v4913_v52 }
0x1d75   : > { %4719 = vmatprep.subr.mxu1 %v4914_v51 }
0x1d76   : > { %4720 = vmatpush3.msra.mxu1 %v4914_v51 }
0x1d77   : > { %4721 = vmatprep.subr.mxu1 %v4915_v55 }
0x1d78   : > { %4722 = vmatpush3.msra.mxu1 %v4915_v55 }
0x1d79   : > { %4723 = vmatprep.subr.mxu1 %v4916_v56 }
0x1d7a   : > { %4724 = vmatpush3.msra.mxu1 %v4916_v56 }
0x1e0b   : > { %v3169_v57 = vpop.f32.mrf.mxu1 }
0x1e0d   : > { %v4645_v59 = vpop.f32.mrf.mxu1 }
0x1e2b   : > { %v3242_v20 = vpop.f32.mrf.mxu1 }
0x1e2c   : > { %v3246_v60 = vsel %vm1063_vm2, %v3242_v20, -inf }
0x1e2d   : > { %v3247_v41 = vrot.slane %v3246_v60, 4  ;;  %v4664_v42 = vpop.f32.mrf.mxu1 }
0x1e2f   : > { %v3248_v40 = vmax.f32 %v3246_v60, %v3247_v41 }
0x1e31   : > { %v3249_v8 = vrot.slane %v3248_v40, 2 }
0x1e33   : > { %v3250_v63 = vmax.f32 %v3248_v40, %v3249_v8  ;;  %v4705_v29 = vpop.f32.mrf.mxu1 }
0x1e34   : > { %v3507_v14 = vadd.f32 %v4705_v29, %v6502_v61 }
0x1e35   : > { %v3251_v36 = vrot.slane %v3250_v63, 1  ;;  %v3501_v24 = vpop.f32.mrf.mxu1 }
0x1e36   : > { %v3502_v47 = vadd.f32 %v3501_v24, %v6502_v61  ;;  %3528 = vrot.lane.b32.xlu0 %v3507_v14, %s5012_s26 }
0x1e37   : > { %v3252_v48 = vmax.f32 %v3250_v63, %v3251_v36 }
0x1e38   : > { %3526 = vrot.lane.b32.xlu1 %v3502_v47, %s5012_s26 }
0x1e39   : > { %v3253_v49 = vsub.f32 %v3242_v20, %v3252_v48 }
0x1e3b   : > { %v3254_v31 = vmul.f32 1.442695, %v3253_v49 }
0x1e3d   : > { %4885 = vpow2.f32 %v3254_v31 }
0x1e4a   : > { %v4886_v7 = vpop.eup %4885 }
0x1e4b   : > { %v3256_v10 = vsel %vm1063_vm2, %v4886_v7, 0.0 }
0x1e4c   : > { %v3257_v11 = vrot.slane %v3256_v10, 4 }
0x1e4e   : > { %v3258_v17 = vadd.f32 %v3257_v11, %v3256_v10 }
0x1e50   : > { %v3259_v22 = vrot.slane %v3258_v17, 2 }
0x1e52   : > { %v3260_v19 = vadd.f32 %v3259_v22, %v3258_v17 }
0x1e54   : > { %v3261_v33 = vrot.slane %v3260_v19, 1 }
0x1e56   : > { %v3262_v5 = vadd.f32 %v3261_v33, %v3260_v19 }
0x1e58   : > { %4887 = vrcp.f32 %v3262_v5 }
0x1e65   : > { %v4888_v61 = vpop.eup %4887 }
0x1e66   : > { %v3264_v18 = vmul.f32 %v4888_v61, %v4886_v7 }
0x1e68   : > { %v3265_v32 = vadd.f32 1e-08, %v3264_v18 }
0x1e6a   : > { %v3266_v62 = vsel %vm1063_vm2, %v3265_v32, 0.0 }
0x1e6b   : > { %v3267_v15 = vrot.slane %v3266_v62, 4 }
0x1e6d   : > { %v3268_v4 = vadd.f32 %v3267_v15, %v3266_v62 }
0x1e6f   : > { %v3269_v12 = vrot.slane %v3268_v4, 2 }
0x1e71   : > { %v3270_v37 = vadd.f32 %v3269_v12, %v3268_v4 }
0x1e73   : > { %v3271_v21 = vrot.slane %v3270_v37, 1 }
0x1e75   : > { %v3272_v2 = vadd.f32 %v3271_v21, %v3270_v37 }
0x1e77   : > { %4889 = vrcp.f32 %v3272_v2 }
0x1e84   : > { %v4890_v58 = vpop.eup %4889 }
0x1e85   : > { %v3274_v34 = vmul.f32 %v4890_v58, %v3265_v32 }
0x1e87   : > { %4682 = vmatmul.mubr.msk.f32.vlgmr.msra.gmra.mxu0 %vm1063_vm2, %v3274_v34  ;;  %4061 = vst.msk [vmem:[%s6208_s13 + $0x8] sm:$0xff] %vm1063_vm2, %v3274_v34 }
0x1e88   : > { %4685 = vmatpush3.msra.mxu0 %v6195_v43  ;;  %4692 = vmatprep.mubr.msk.f32.mxu0 %vm388_vm0, %v3169_v57 }
0x1e89   : > { %4686 = vmatprep.subr.mxu0 %v4917_v27 }
0x1e8a   : > { %4687 = vmatpush3.msra.mxu0 %v4917_v27 }
0x1e8b   : > { %4688 = vmatprep.subr.mxu0 %v4918_v44 }
0x1e8c   : > { %4689 = vmatpush3.msra.mxu0 %v4918_v44 }
0x1e8d   : > { %4690 = vmatprep.subr.mxu0 %v4919_v25 }
0x1e8e   : > { %4691 = vmatpush3.msra.mxu0 %v4919_v25 }
0x1e8f   : > { %4706 = vmatprep.subr.mxu0 %v5786_v46 }
0x1eaa   : > { %v3527_v59 = vpop.permute.xlu1 %3526 }
0x1f47   : > { %v3346_v43 = vpop.f32.mrf.mxu0 }
0x1f48   : > { %4693 = vmatmul.mubr.msk.f32.vlgmr.msra.gmra.mxu0 %vm388_vm0, %v3346_v43 }
0x1f49   : > { %4707 = vmatpush3.msra.mxu0 %v5786_v46  ;;  %v4683_v39 = vpop.f32.mrf.mxu0 }
0x1f4a   : > { %4708 = vmatprep.subr.mxu0 %v5790_v45 }
0x1f4b   : > { %4709 = vmatpush3.msra.mxu0 %v5790_v45 }
0x1f4c   : > { %4710 = vmatprep.subr.mxu0 %v5792_v3 }
0x1f4d   : > { %4711 = vmatpush3.msra.mxu0 %v5792_v3 }
0x1f4e   : > { %4712 = vmatprep.subr.mxu0 %v5797_v38 }
0x1f4f   : > { %4713 = vmatpush3.msra.mxu0 %v5797_v38  ;;  %v3529_v38 = vpop.permute.xlu0 %3528 }
0x2008   : > { %v4694_v0 = vpop.f32.mrf.mxu0 }
0x2009   : > { %v3428_v6 = vadd.f32 %v4694_v0, %v5727_v28 }
0x200a   : > { %v3422_v53 = vpop.f32.mrf.mxu0 }
0x200b   : > { %v3511_v13 = vadd.f32 %v3507_v14, %v3428_v6  ;;  %v3423_v46 = vadd.f32 %v3422_v53, %v5727_v28 }
0x200d   : > { %v4068_v1 = vmul.f32 -1.442695, %v3511_v13  ;;  %v3510_v9 = vadd.f32 %v3502_v47, %v3423_v46 }
0x200f   : > { %4891 = vpow2.f32 %v4068_v1  ;;  %v4067_v16 = vmul.f32 -1.442695, %v3510_v9 }
0x2011   : > { %4893 = vpow2.f32 %v4067_v16 }
0x201c   : > { %v4892_v45 = vpop.eup %4891 }
0x201d   : > { %v3519_v52 = vadd.f32 1.0, %v4892_v45 }
0x201e   : > { %v4894_v51 = vpop.eup %4893 }
0x201f   : > { %4895 = vrcp.f32 %v3519_v52  ;;  %v3518_v3 = vadd.f32 1.0, %v4894_v51 }
0x2021   : > { %4897 = vrcp.f32 %v3518_v3 }
0x202c   : > { %v4896_v55 = vpop.eup %4895 }
0x202d   : > { %v3533_v56 = vmul.f32 %v4896_v55, %v3529_v38  ;;  %v3547_v63 = vsub.f32 1.0, %v4896_v55  ;;  %v3559_v14 = vmul.f32 %v4896_v55, %v6122_v30 }
0x202e   : > { %v4898_v57 = vpop.eup %4897 }
0x202f   : > { %3538 = vrot.lane.b32.xlu0 %v3533_v56, %s5012_s26  ;;  %v3532_v20 = vmul.f32 %v4898_v57, %v3527_v59  ;;  %v3546_v24 = vsub.f32 1.0, %v4898_v57  ;;  %v3558_v49 = vmul.f32 %v4898_v57, %v6126_v54 }
0x2031   : > { %3536 = vrot.lane.b32.xlu1 %v3532_v20, %s5012_s26  ;;  %s3834_s26 = sshll.u32 %s6208_s13, 4  ;;  %s6332_s26 = int_to_ptr.vmem [resolvable:$true] %s3834_s26 }
0x2032   : > { %s4920_s19 = scalar_lea.vmem %s6332_s26, 256 }
0x2033   : > { %p4921_p11 = scmp.ne.s32.totalorder %s6332_s26, %s4920_s19 }
0x2035   : > { %p4922_p12 = pnand %p4921_p11, %p5104_p5 }
0x2037   : > { %p4923_p13 = pneg %p4922_p12 }
0x20a1   : > { %v3539_v28 = vpop.permute.xlu0 %3538 }
0x20a2   : > { %v3543_v60 = vadd.f32 %v3539_v28, %v3428_v6 }
0x20a3   : > { %v3537_v41 = vpop.permute.xlu1 %3536 }
0x20a4   : > { %4899 = vtanh.f32 %v3543_v60  ;;  %v3542_v42 = vadd.f32 %v3537_v41, %v3423_v46 }
0x20a6   : > { %4901 = vtanh.f32 %v3542_v42 }
0x20b1   : > { %v4900_v40 = vpop.eup %4899 }
0x20b2   : > { %3552 = vrot.lane.b32.xlu0 %v4900_v40, %s6472_s12 }
0x20b3   : > { %v4902_v8 = vpop.eup %4901 }
0x20b4   : > { %3550 = vrot.lane.b32.xlu1 %v4902_v8, %s6472_s12 }
0x2124   : > { %v3553_v29 = vpop.permute.xlu0 %3552 }
0x2125   : > { %v3557_v36 = vmul.f32 %v3553_v29, %v3547_v63 }
0x2126   : > { %v3551_v47 = vpop.permute.xlu1 %3550 }
0x2127   : > { %v6300_v48 = vadd.f32 %v3559_v14, %v3557_v36  ;;  %v3556_v31 = vmul.f32 %v3551_v47, %v3546_v24 }
0x2129   : > { %v6303_v7 = vadd.f32 %v3558_v49, %v3556_v31  ;;  %3566 = vrot.lane.b32.xlu0 %v6300_v48, %s6472_s12 }
0x212b   : > { %3564 = vrot.lane.b32.xlu1 %v6303_v7, %s6472_s12 }
0x219b   : > { %v3567_v10 = vpop.permute.xlu0 %3566 }
0x219c   : > { %v3573_v11 = vsel %vm388_vm0, %v3567_v10, 0.0 }
0x219d   : > { %3574 = vadd.xlane.f32.xlu0 %v3573_v11  ;;  %v3565_v30 = vpop.permute.xlu1 %3564 }
0x219e   : > { %v3570_v17 = vsel %vm388_vm0, %v3565_v30, 0.0 }
0x219f   : > { %3571 = vadd.xlane.f32.xlu1 %v3570_v17 }
0x2226   : > { %v3575_v22 = vpop.xlane.xlu0 %3574 }
0x2227   : > { %v3577_v19 = vmul.f32 0.03125, %v3575_v22 }
0x2228   : > { %v3572_v54 = vpop.xlane.xlu1 %3571 }
0x2229   : > { %v3579_v33 = vsub.f32 %v6300_v48, %v3577_v19  ;;  %v3576_v5 = vmul.f32 0.03125, %v3572_v54 }
0x222b   : > { %v3581_v61 = vmul.f32 %v3579_v33, %v3579_v33  ;;  %v3578_v18 = vsub.f32 %v6303_v7, %v3576_v5 }
0x222d   : > { %v3580_v32 = vmul.f32 %v3578_v18, %v3578_v18  ;;  %3586 = vrot.lane.b32.xlu1 %v3581_v61, %s6472_s12 }
0x222f   : > { %3584 = vrot.lane.b32.xlu0 %v3580_v32, %s6472_s12 }
0x229f   : > { %v3587_v62 = vpop.permute.xlu1 %3586 }
0x22a0   : > { %v3593_v15 = vsel %vm388_vm0, %v3587_v62, 0.0 }
0x22a1   : > { %v3585_v4 = vpop.permute.xlu0 %3584  ;;  %3594 = vadd.xlane.f32.xlu0 %v3593_v15 }
0x22a2   : > { %v3590_v12 = vsel %vm388_vm0, %v3585_v4, 0.0 }
0x22a3   : > { %3591 = vadd.xlane.f32.xlu1 %v3590_v12 }
0x232a   : > { %v3595_v37 = vpop.xlane.xlu0 %3594 }
0x232b   : > { %v3597_v21 = vmul.f32 0.03125, %v3595_v37 }
0x232c   : > { %v3592_v2 = vpop.xlane.xlu1 %3591 }
0x232d   : > { %v3599_v58 = vadd.f32 1e-05, %v3597_v21  ;;  %v3596_v34 = vmul.f32 0.03125, %v3592_v2 }
0x232f   : > { %4903 = vrsqrt.f32 %v3599_v58  ;;  %v3598_v27 = vadd.f32 1e-05, %v3596_v34 }
0x2331   : > { %4905 = vrsqrt.f32 %v3598_v27 }
0x233c   : > { %v4904_v44 = vpop.eup %4903 }
0x233d   : > { %v3603_v25 = vmul.f32 %v4904_v44, %v3579_v33 }
0x233e   : > { %v4906_v43 = vpop.eup %4905 }
0x233f   : > { %v3605_v39 = vmul.f32 %v3603_v25, %v5782_v50  ;;  %v3602_v0 = vmul.f32 %v4906_v43, %v3578_v18 }
0x2341   : > { %v3607_v6 = vadd.f32 %v3605_v39, %v5784_v23  ;;  %v3604_v53 = vmul.f32 %v3602_v0, %v5782_v50 }
0x2343   : > { %3612 = vrot.lane.b32.xlu1 %v3607_v6, %s6472_s12  ;;  %v3606_v13 = vadd.f32 %v3604_v53, %v5784_v23 }
0x2345   : > { %3610 = vrot.lane.b32.xlu0 %v3606_v13, %s6472_s12 }
0x23b5   : > { %v3613_v1 = vpop.permute.xlu1 %3612 }
0x23b7   : > { %v3611_v46 = vpop.permute.xlu0 %3610 }
0x23b8   : > { %4714 = vmatprep.mubr.msk.f32.mxu0 %vm388_vm0, %v3611_v46 }
0x23b9   : > { %4715 = vmatmul.mubr.msk.f32.vlgmr.msra.gmra.mxu0 %vm388_vm0, %v3613_v1 }
0x2479   : > { %v4716_v9 = vpop.f32.mrf.mxu0 }
0x247a   : > { %v3690_v16 = vadd.f32 %v4716_v9, %v5850_v35 }
0x247b   : > { %v3684_v50 = vpop.f32.mrf.mxu0 }
0x247c   : > { %v3685_v45 = vadd.f32 %v3684_v50, %v5850_v35  ;;  %v3694_v52 = vmax.f32 %v3690_v16, 0.0 }
0x247e   : > { %v3693_v23 = vmax.f32 %v3685_v45, 0.0 }
0x2480   : > { %4725 = vmatprep.mubr.msk.f32.mxu1 %vm388_vm0, %v3693_v23 }
0x2481   : > { %4726 = vmatmul.mubr.msk.f32.vlgmr.msra.gmra.mxu1 %vm388_vm0, %v3694_v52 }
0x2541   : > { %v4727_v51 = vpop.f32.mrf.mxu1 }
0x2542   : > { %3780 = vrot.lane.b32.xlu0 %v4727_v51, %s5016_s20 }
0x2543   : > { %v3767_v3 = vpop.f32.mrf.mxu1 }
0x2544   : > { %3778 = vrot.lane.b32.xlu1 %v3767_v3, %s5016_s20  ;;  %s5017_s20 = smov [#allocation4]  }
0x2545   : > { %s4924_s13 = sshll.u32 %s5017_s20, 4  ;;  %s4925_s13 = int_to_ptr.vmem [resolvable:$false] %s4924_s13 }
0x2546   : > { %s4926_s21 = scalar_lea.vmem %s4925_s13, 512  ;;  %p4927_p0 = scmp.lt.s32.totalorder %s6332_s26, %s4925_s13 }
0x2547   : > { %p4928_p1 = scmp.lt.s32.totalorder %s4926_s21, %s4920_s19 }
0x2549   : > { %p4929_p2 = por %p4928_p1, %p4927_p0 }
0x254b   : > { %p4930_p3 = pnand %p4929_p2, %p4923_p13 }
0x254d   : > { %4933 = shalt.err (!%p4930_p3)
}
0x254e   : > { %s4934_s23 = scalar_lea.hbm %s6340_s17, 256  ;;  %s4938_s20 = scalar_lea.hbm %s6436_s8, 512 }
0x254f   : > { %p4935_p4 = scmp.ne.s32.totalorder %s6340_s17, %s4934_s23  ;;  %p4939_p9 = scmp.lt.s32.totalorder %s6340_s17, %s6436_s8 }
0x2550   : > { %p4940_p10 = scmp.lt.s32.totalorder %s4938_s20, %s4934_s23 }
0x2551   : > { %p4936_p7 = pnand %p4935_p4, %p5104_p5 }
0x2552   : > { %p4941_p11 = por %p4940_p10, %p4939_p9 }
0x2553   : > { %p4937_p8 = pneg %p4936_p7 }
0x2555   : > { %p4942_p12 = pnand %p4941_p11, %p4937_p8 }
0x2557   : > { %4945 = shalt.err (!%p4942_p12)
}
0x2558   : > { %s5018_s19 = smov 128   ;;  %s5019_s13 = smov 8  }
0x2559   : > { %4729 = dma.vmem_to_hbm [thread:$0]  (%p5104_p5), %s6332_s26, 256, %s6340_s17, %s3805_s18, %s5018_s19, %s5018_s19, %s5019_s13  }
0x255a   : > { %s6522_s12 = smov 96   ;;  %s6523_s24 = sshll.u32 %s6202_s22, 4 }
0x255b   : > { %s321_s21 = scalar_lea.vmem [#allocation2], %s6523_s24  ;;  %s6524_s26 = sshll.u32 %s5087_s9, 8 }
0x255c   : > { %s3818_s23 = sshll.u32 %s321_s21, 4  ;;  %s6384_s25 = scalar_lea.hbm %s6435_s7, %s6524_s26  ;;  %s6377_s23 = int_to_ptr.vmem [resolvable:$true] %s3818_s23 }
0x255d   : > { %s3800_s10 = scalar_lea.sflag [#allocation3], %s6202_s22  ;;  %s4946_s20 = scalar_lea.vmem %s6377_s23, 256 }
0x255e   : > { %p4947_p13 = scmp.ne.s32.totalorder %s6377_s23, %s4946_s20 }
0x2560   : > { %p4948_p0 = pnand %p4947_p13, %p5104_p5 }
0x2562   : > { %p4949_p1 = pneg %p4948_p0 }
0x25b4   : > { %v3781_v35 = vpop.permute.xlu0 %3780 }
0x25b5   : > { %v3785_v55 = vadd.f32 %v3781_v35, %v6300_v48 }
0x25b6   : > { %v3779_v38 = vpop.permute.xlu1 %3778 }
0x25b7   : > { %v3787_v56 = vadd.f32 %v3785_v55, %v6515_v26  ;;  %v3784_v57 = vadd.f32 %v3779_v38, %v6303_v7 }
0x25b9   : > { %v3786_v59 = vadd.f32 %v3784_v57, %v6515_v26  ;;  %3794 = vrot.lane.b32.xlu0 %v3787_v56, %s6522_s12 }
0x25bb   : > { %3789 = vrot.lane.b32.xlu1 %v3786_v59, %s6522_s12  ;;  %s5020_s12 = smov [#allocation2]  }
0x25bc   : > { %s4950_s24 = sshll.u32 %s5020_s12, 4  ;;  %s4951_s24 = int_to_ptr.vmem [resolvable:$false] %s4950_s24 }
0x25bd   : > { %s4952_s9 = scalar_lea.vmem %s4951_s24, 512  ;;  %p4953_p2 = scmp.lt.s32.totalorder %s6377_s23, %s4951_s24 }
0x25be   : > { %p4954_p3 = scmp.lt.s32.totalorder %s4952_s9, %s4946_s20 }
0x25c0   : > { %p4955_p4 = por %p4954_p3, %p4953_p2 }
0x25c2   : > { %p4956_p7 = pnand %p4955_p4, %p4949_p1 }
0x262b   : > { %v3795_v20 = vpop.permute.xlu0 %3794 }
0x262c   : > { %4073 = vst.msk [vmem:[%s321_s21 + $0x8] sm:$0xff] %vm388_vm0, %v3795_v20 }
0x262d   : > { %v3790_v26 = vpop.permute.xlu1 %3789 }
0x262e   : > { %3792 = vst.msk [vmem:[%s321_s21] sm:$0xff] %vm388_vm0, %v3790_v26 }
0x262f   : > { %4959 = shalt.err (!%p4956_p7)
}
0x2630   : > { %s4960_s21 = scalar_lea.hbm %s6384_s25, 256  ;;  %s4964_s17 = scalar_lea.hbm %s6435_s7, 512 }
0x2631   : > { %p4961_p8 = scmp.ne.s32.totalorder %s6384_s25, %s4960_s21  ;;  %p4965_p11 = scmp.lt.s32.totalorder %s6384_s25, %s6435_s7 }
0x2632   : > { %p4966_p12 = scmp.lt.s32.totalorder %s4964_s17, %s4960_s21 }
0x2633   : > { %p4962_p9 = pnand %p4961_p8, %p5104_p5 }
0x2634   : > { %p4967_p13 = por %p4966_p12, %p4965_p11 }
0x2635   : > { %p4963_p10 = pneg %p4962_p9 }
0x2637   : > { %p4968_p0 = pnand %p4967_p13, %p4963_p10 }
0x2639   : > { %4971 = shalt.err (!%p4968_p0)
}
0x263a   : > { %4728 = dma.vmem_to_hbm [thread:$0]  (%p5104_p5), %s6377_s23, 256, %s6384_s25, %s3800_s10, %s5018_s19, %s5018_s19, %s5019_s13  }
0x263b PF: > { %p4739_p1 = scmp.ge.s32.totalorder %s5010_s30, 2  ;;  %s3849_s20 = sand.u32 1, %s4998_s27  }
0x263c   : > { %s3850_s24 = scalar_lea.sflag [#allocation3], %s3849_s20 }
0x263d   : > { %p4733_p2 = pnand %p4739_p1, %p5108_p6 }
0x263f   : > { %p4734_p3 = pneg %p4733_p2 }
0x2641   : > { %4989 = dma.done.wait (%p4734_p3), %s3850_s24, 256  }
0x2642   : > { %4991 = vsyncadd (%p4734_p3), %s3850_s24, 4294967040  ;;  %s3859_s9 = scalar_lea.sflag [#allocation5], %s3849_s20 }
0x2643   : > { %4993 = dma.done.wait (%p4734_p3), %s3859_s9, 256  }
0x2644   : > { %4995 = vsyncadd (%p4734_p3), %s3859_s9, 4294967040  ;;  %p22_p5 = scmp.ge.s32.totalorder %s5091_s11, 4   ;;  %s6525_s27 = smov %s5002_s28 }
0x2645   : > { %s6526_s28 = smov %s5006_s29  ;;  %s6527_s29 = smov %s5102_s14 }
0x2646   : > { %s6528_s30 = smov %s5091_s11  ;;  %24 = sbr.rel (!%p22_p5) target bundleno = 5 (0x5), region = 107 }
0x264b   :  { %3864 = vsyncpa [#allocation3], 1 }
0x264c   :  { %3866 = vsyncpa [#allocation3 + $0x1], 1 }
0x264d   :  { %3867 = vsyncpa [#allocation5], 1 }
0x264e   :  { %3869 = vsyncpa [#allocation5 + $0x1], 1 }

</bundles_post_ra>
